<compile_context>
chip_gen: v7x
topology: tpu7x:2x2x1
jax: 0.10.0
libtpu: 0.0.40
codegen_flags: <defaults>
</compile_context>

<pallas_src>
import jax
import jax.numpy as jnp
from jax import lax
from jax.experimental import pallas as pl
from jax.experimental.pallas import tpu as pltpu

LATENT = 99
HIDDEN = 1000
LATENT_PAD = 128    # 99  -> single aligned 128-lane K tile
HIDDEN_PAD = 1024   # 1000 -> 4x256 (v6e/v7x MXU) == 8x128 (v5e MXU)
EPS = 1e-3          # nn.BatchNorm1d(1000, 0.001)


# ----------------------------------------------------------------------------
# Kernel: one batch tile per grid step.  BN-folded bf16 weights are VMEM
# resident (constant index maps, single-buffered); accumulation and the
# bias/ReLU/sigmoid epilogue are f32.
# ----------------------------------------------------------------------------
def _disc_kernel(x_ref, w1_ref, b1_ref, w2_ref, b2_ref, w3_ref, b3_ref, out_ref):
    # fc1 (+ folded bn1) -> dropout(identity in eval) -> relu
    x = x_ref[...].astype(jnp.bfloat16)                                  # (bm, 128)
    h1 = jnp.dot(x, w1_ref[...], preferred_element_type=jnp.float32) + b1_ref[...]
    h1 = jnp.maximum(h1, 0.0)                                            # (bm, 1024)

    # fc2 (+ folded bn2) -> dropout(identity in eval) -> relu
    h2 = jnp.dot(h1.astype(jnp.bfloat16), w2_ref[...],
                 preferred_element_type=jnp.float32) + b2_ref[...]
    h2 = jnp.maximum(h2, 0.0)                                            # (bm, 1024)

    # fc3 (N=1): VPU multiply + lane reduce instead of a 1-column MXU matmul.
    logits = jnp.sum(h2 * w3_ref[...], axis=-1) + b3_ref[0]              # (bm,)

    # Lane-dense (1, bm) store.
    out_ref[0, :] = jax.nn.sigmoid(logits)


# ----------------------------------------------------------------------------
# Parameter preparation: fold eval-mode BN into the Linear, pad to aligned
# shapes (zero pads stay zero through ReLU), cast weights bf16.
# ----------------------------------------------------------------------------
def prepare_params(p):
    def fold(w, b, g, be, m, v):
        s = g * lax.rsqrt(v + EPS)          # (1, out)
        return w * s, (b - m) * s + be

    w1, b1 = fold(p["w1"], p["b1"], p["g1"], p["be1"], p["m1"], p["v1"])
    w2, b2 = fold(p["w2"], p["b2"], p["g2"], p["be2"], p["m2"], p["v2"])

    dh = HIDDEN_PAD - HIDDEN
    dl = LATENT_PAD - LATENT
    w1p = jnp.pad(w1, ((0, dl), (0, dh))).astype(jnp.bfloat16)           # (128, 1024)
    b1p = jnp.pad(b1, ((0, 0), (0, dh))).astype(jnp.float32)             # (1, 1024)
    w2p = jnp.pad(w2, ((0, dh), (0, dh))).astype(jnp.bfloat16)           # (1024, 1024)
    b2p = jnp.pad(b2, ((0, 0), (0, dh))).astype(jnp.float32)             # (1, 1024)
    # fc3 weight as a lane-dense row for the VPU/XLU reduction path.
    w3p = jnp.pad(p["w3"].reshape(1, HIDDEN), ((0, 0), (0, dh))).astype(jnp.float32)
    b3p = p["b3"].reshape(-1).astype(jnp.float32)                        # (1,) SMEM scalar
    return dict(w1=w1p, b1=b1p, w2=w2p, b2=b2p, w3=w3p, b3=b3p)


def _pick_bm(B, bm_max=512):
    """Batch tile: multiple of 128, <= bm_max, keeping >=2 grid steps when the
    batch allows it (so the 'parallel' axis can span both v7x TensorCores)."""
    bm = bm_max
    while bm > 128 and pl.cdiv(B, bm) < 2:
        bm //= 2
    return bm


# ----------------------------------------------------------------------------
# Wrapper: 1-D parallel grid over aligned batch tiles; weights VMEM-resident.
# ----------------------------------------------------------------------------
def discriminator_forward(x, fp, *, bm_max=512):
    B = x.shape[0]
    bm = _pick_bm(B, bm_max)
    num_tiles = pl.cdiv(B, bm)
    Bp = num_tiles * bm
    # Pad batch to the tile multiple and the feature dim to 128 (aligned DMA/MXU K).
    xp = jnp.pad(x, ((0, Bp - B), (0, LATENT_PAD - x.shape[1])))

    param_bytes = sum(int(a.size) * a.dtype.itemsize
                      for a in (fp["w1"], fp["b1"], fp["w2"], fp["b2"],
                                fp["w3"], fp["b3"]))
    cost = pl.CostEstimate(
        flops=2 * Bp * (LATENT_PAD * HIDDEN_PAD + HIDDEN_PAD * HIDDEN_PAD + HIDDEN_PAD),
        transcendentals=Bp,
        bytes_accessed=int(xp.size) * xp.dtype.itemsize + param_bytes + Bp * 4,
    )

    resident = dict(pipeline_mode=pl.Buffered(1))   # fetched once, single buffer
    out = pl.pallas_call(
        _disc_kernel,
        grid=(num_tiles,),
        in_specs=[
            pl.BlockSpec((bm, LATENT_PAD), lambda i: (i, 0)),                 # x tile (pipelined)
            pl.BlockSpec((LATENT_PAD, HIDDEN_PAD), lambda i: (0, 0), **resident),  # w1
            pl.BlockSpec((1, HIDDEN_PAD), lambda i: (0, 0), **resident),           # b1
            pl.BlockSpec((HIDDEN_PAD, HIDDEN_PAD), lambda i: (0, 0), **resident),  # w2
            pl.BlockSpec((1, HIDDEN_PAD), lambda i: (0, 0), **resident),           # b2
            pl.BlockSpec((1, HIDDEN_PAD), lambda i: (0, 0), **resident),           # w3 row
            pl.BlockSpec(memory_space=pltpu.MemorySpace.SMEM),                     # b3 scalar
        ],
        out_specs=pl.BlockSpec((1, bm), lambda i: (0, i)),                    # lane-dense row
        out_shape=jax.ShapeDtypeStruct((1, Bp), jnp.float32),
        compiler_params=pltpu.CompilerParams(
            dimension_semantics=("parallel",),
            vmem_limit_bytes=16 << 20,
        ),
        cost_estimate=cost,
    )(xp, fp["w1"], fp["b1"], fp["w2"], fp["b2"], fp["w3"], fp["b3"])
    return out[0, :B].reshape(B, 1)


# ----------------------------------------------------------------------------
# Raw (torch-style) parameters and references.
# ----------------------------------------------------------------------------
def init_params(key):
    ks = jax.random.split(key, 8)
    f32 = jnp.float32

    def lin(k, fan_in, fan_out):
        kw, kb = jax.random.split(k)
        bound = 1.0 / jnp.sqrt(f32(fan_in))
        w = jax.random.uniform(kw, (fan_in, fan_out), f32, -bound, bound)
        b = jax.random.uniform(kb, (1, fan_out), f32, -bound, bound)
        return w, b

    w1, b1 = lin(ks[0], LATENT, HIDDEN)
    w2, b2 = lin(ks[1], HIDDEN, HIDDEN)
    w3, b3 = lin(ks[2], HIDDEN, 1)

    def bn(k):
        k1, k2, k3, k4 = jax.random.split(k, 4)
        g = 1.0 + 0.1 * jax.random.normal(k1, (1, HIDDEN), f32)
        be = 0.1 * jax.random.normal(k2, (1, HIDDEN), f32)
        m = 0.1 * jax.random.normal(k3, (1, HIDDEN), f32)
        v = 1.0 + jnp.abs(0.1 * jax.random.normal(k4, (1, HIDDEN), f32))
        return g, be, m, v

    g1, be1, m1, v1 = bn(ks[3])
    g2, be2, m2, v2 = bn(ks[4])

    return dict(w1=w1, b1=b1, g1=g1, be1=be1, m1=m1, v1=v1,
                w2=w2, b2=b2, g2=g2, be2=be2, m2=m2, v2=v2,
                w3=w3, b3=b3)


def reference_forward_f32(x, p):
    """Original eval-mode semantics, full f32."""
    h1 = x @ p["w1"] + p["b1"]
    h1 = (h1 - p["m1"]) / jnp.sqrt(p["v1"] + EPS) * p["g1"] + p["be1"]
    h1 = jnp.maximum(h1, 0.0)
    h2 = h1 @ p["w2"] + p["b2"]
    h2 = (h2 - p["m2"]) / jnp.sqrt(p["v2"] + EPS) * p["g2"] + p["be2"]
    h2 = jnp.maximum(h2, 0.0)
    return jax.nn.sigmoid(h2 @ p["w3"] + p["b3"])


def reference_forward_fused(x, fp):
    """Same folded-BN / padded / bf16-weight math as the kernel, in plain JAX."""
    xp = jnp.pad(x, ((0, 0), (0, LATENT_PAD - x.shape[1]))).astype(jnp.bfloat16)
    h1 = jnp.maximum(
        jnp.dot(xp, fp["w1"], preferred_element_type=jnp.float32) + fp["b1"], 0.0)
    h2 = jnp.maximum(
        jnp.dot(h1.astype(jnp.bfloat16), fp["w2"],
                preferred_element_type=jnp.float32) + fp["b2"], 0.0)
    logits = jnp.sum(h2 * fp["w3"], axis=-1, keepdims=True) + fp["b3"][0]
    return jax.nn.sigmoid(logits)


if __name__ == "__main__":
    key = jax.random.PRNGKey(0)
    kx, kp = jax.random.split(key)

    B = 256  # -> two 128-row tiles: exercises the parallel grid (both v7x TCs)
    x = jax.random.normal(kx, (B, LATENT), jnp.float32)

    raw = init_params(kp)
    fused = prepare_params(raw)

    out = jax.block_until_ready(discriminator_forward(x, fused))
    assert out.shape == (B, 1)

    # Exact-math check (same folded/padded bf16 weights as the kernel).
    ref_match = reference_forward_fused(x, fused)
    assert jnp.allclose(out, ref_match, atol=1e-4, rtol=1e-4), \
        "mismatch vs fused JAX reference"

    # Semantics check vs the original f32 eval-mode module (loose tolerance:
    # intentional bf16-weight precision trade-off).
    ref_f32 = reference_forward_f32(x, raw)
    assert jnp.allclose(out, ref_f32, atol=2e-2), \
        "mismatch vs f32 eval-mode reference"

    print("KERNEL_OK")
</pallas_src>

<mosaic_0001>
module attributes {stable_mosaic.version = 11 : i64} {
  func.func @_disc_kernel(%arg0: i32, %arg1: memref<128x128xf32, #tpu.memory_space<vmem>>, %arg2: memref<128x1024xbf16, #tpu.memory_space<vmem>>, %arg3: memref<1x1024xf32, #tpu.memory_space<vmem>>, %arg4: memref<1024x1024xbf16, #tpu.memory_space<vmem>>, %arg5: memref<1x1024xf32, #tpu.memory_space<vmem>>, %arg6: memref<1x1024xf32, #tpu.memory_space<vmem>>, %arg7: memref<1xf32, #tpu.memory_space<smem>>, %arg8: memref<1x128xf32, #tpu.memory_space<vmem>>) attributes {dimension_semantics = [#tpu.dimension_semantics<parallel>], iteration_bounds = array<i64: 2>, scalar_prefetch = 0 : i64, scratch_operands = 0 : i64, tpu.core_type = #tpu.core_type<tc>, window_params = [{transform_indices = @transform_0, window_bounds = array<i64: 128, 128>}, {pipeline_mode = #tpu.pipeline_mode<synchronous>, transform_indices = @transform_1, window_bounds = array<i64: 128, 1024>}, {pipeline_mode = #tpu.pipeline_mode<synchronous>, transform_indices = @transform_2, window_bounds = array<i64: 1, 1024>}, {pipeline_mode = #tpu.pipeline_mode<synchronous>, transform_indices = @transform_3, window_bounds = array<i64: 1024, 1024>}, {pipeline_mode = #tpu.pipeline_mode<synchronous>, transform_indices = @transform_4, window_bounds = array<i64: 1, 1024>}, {pipeline_mode = #tpu.pipeline_mode<synchronous>, transform_indices = @transform_5, window_bounds = array<i64: 1, 1024>}, {transform_indices = @transform_6, window_bounds = array<i64: 1>}, {transform_indices = @transform_7, window_bounds = array<i64: 1, 128>}]} {
    %c0 = arith.constant 0 : index
    %c0_0 = arith.constant 0 : index
    %0 = vector.load %arg1[%c0, %c0_0] : memref<128x128xf32, #tpu.memory_space<vmem>>, vector<128x128xf32>
    %1 = arith.truncf %0 : vector<128x128xf32> to vector<128x128xbf16>
    %c0_1 = arith.constant 0 : index
    %c0_2 = arith.constant 0 : index
    %2 = vector.load %arg2[%c0_1, %c0_2] : memref<128x1024xbf16, #tpu.memory_space<vmem>>, vector<128x1024xbf16>
    %cst = arith.constant dense<0.000000e+00> : vector<128x1024xf32>
    %3 = tpu.matmul %1, %2, %cst {dimension_numbers = #tpu.dot_dimension_numbers<[1], [0], [0], [1], [0, 0, 1, 1], [], []>} : vector<128x128xbf16>, vector<128x1024xbf16>, vector<128x1024xf32> -> vector<128x1024xf32>
    %c0_3 = arith.constant 0 : index
    %c0_4 = arith.constant 0 : index
    %4 = vector.load %arg3[%c0_3, %c0_4] : memref<1x1024xf32, #tpu.memory_space<vmem>>, vector<1x1024xf32>
    %5 = vector.broadcast %4 : vector<1x1024xf32> to vector<128x1024xf32>
    %6 = arith.addf %3, %5 : vector<128x1024xf32>
    %cst_5 = arith.constant 0.000000e+00 : f32
    %7 = vector.broadcast %cst_5 : f32 to vector<128x1024xf32>
    %8 = arith.maximumf %6, %7 : vector<128x1024xf32>
    %9 = arith.truncf %8 : vector<128x1024xf32> to vector<128x1024xbf16>
    %c0_6 = arith.constant 0 : index
    %c0_7 = arith.constant 0 : index
    %10 = vector.load %arg4[%c0_6, %c0_7] : memref<1024x1024xbf16, #tpu.memory_space<vmem>>, vector<1024x1024xbf16>
    %cst_8 = arith.constant dense<0.000000e+00> : vector<128x1024xf32>
    %11 = tpu.matmul %9, %10, %cst_8 {dimension_numbers = #tpu.dot_dimension_numbers<[1], [0], [0], [1], [0, 0, 1, 1], [], []>} : vector<128x1024xbf16>, vector<1024x1024xbf16>, vector<128x1024xf32> -> vector<128x1024xf32>
    %c0_9 = arith.constant 0 : index
    %c0_10 = arith.constant 0 : index
    %12 = vector.load %arg5[%c0_9, %c0_10] : memref<1x1024xf32, #tpu.memory_space<vmem>>, vector<1x1024xf32>
    %13 = vector.broadcast %12 : vector<1x1024xf32> to vector<128x1024xf32>
    %14 = arith.addf %11, %13 : vector<128x1024xf32>
    %cst_11 = arith.constant 0.000000e+00 : f32
    %15 = vector.broadcast %cst_11 : f32 to vector<128x1024xf32>
    %16 = arith.maximumf %14, %15 : vector<128x1024xf32>
    %c0_12 = arith.constant 0 : index
    %c0_13 = arith.constant 0 : index
    %17 = vector.load %arg6[%c0_12, %c0_13] : memref<1x1024xf32, #tpu.memory_space<vmem>>, vector<1x1024xf32>
    %18 = vector.broadcast %17 : vector<1x1024xf32> to vector<128x1024xf32>
    %19 = arith.mulf %16, %18 : vector<128x1024xf32>
    %cst_14 = arith.constant dense<0.000000e+00> : vector<128xf32>
    %20 = vector.multi_reduction <add>, %19, %cst_14 [1] : vector<128x1024xf32> to vector<128xf32>
    %c0_15 = arith.constant 0 : index
    %21 = memref.load %arg7[%c0_15] : memref<1xf32, #tpu.memory_space<smem>>
    %22 = vector.broadcast %21 : f32 to vector<128xf32>
    %23 = arith.addf %20, %22 : vector<128xf32>
    %24 = arith.negf %23 : vector<128xf32>
    %25 = math.exp %24 : vector<128xf32>
    %cst_16 = arith.constant 1.000000e+00 : f32
    %26 = vector.broadcast %cst_16 : f32 to vector<128xf32>
    %27 = arith.addf %26, %25 : vector<128xf32>
    %28 = arith.divf %26, %27 : vector<128xf32>
    %c0_17 = arith.constant 0 : index
    %c0_18 = arith.constant 0 : index
    %29 = vector.load %arg8[%c0_17, %c0_18] : memref<1x128xf32, #tpu.memory_space<vmem>>, vector<1x128xf32>
    %30 = vector.shape_cast %29 : vector<1x128xf32> to vector<128xf32>
    %31 = vector.shape_cast %28 : vector<128xf32> to vector<1x128xf32>
    tpu.vector_store %arg8[%c0_17, %c0_18], %31 {strides = array<i32>} : memref<1x128xf32, #tpu.memory_space<vmem>>, vector<1x128xf32>,
    return
  }
  func.func @transform_0(%arg0: i32) -> (i32, i32) {
    %c0_i32 = arith.constant 0 : i32
    %c0_i32_0 = arith.constant 0 : i32
    return %arg0, %c0_i32 : i32, i32
  }
  func.func @transform_1(%arg0: i32) -> (i32, i32) {
    %c0_i32 = arith.constant 0 : i32
    %c0_i32_0 = arith.constant 0 : i32
    %c0_i32_1 = arith.constant 0 : i32
    return %c0_i32, %c0_i32_0 : i32, i32
  }
  func.func @transform_2(%arg0: i32) -> (i32, i32) {
    %c0_i32 = arith.constant 0 : i32
    %c0_i32_0 = arith.constant 0 : i32
    %c0_i32_1 = arith.constant 0 : i32
    return %c0_i32, %c0_i32_0 : i32, i32
  }
  func.func @transform_3(%arg0: i32) -> (i32, i32) {
    %c0_i32 = arith.constant 0 : i32
    %c0_i32_0 = arith.constant 0 : i32
    %c0_i32_1 = arith.constant 0 : i32
    return %c0_i32, %c0_i32_0 : i32, i32
  }
  func.func @transform_4(%arg0: i32) -> (i32, i32) {
    %c0_i32 = arith.constant 0 : i32
    %c0_i32_0 = arith.constant 0 : i32
    %c0_i32_1 = arith.constant 0 : i32
    return %c0_i32, %c0_i32_0 : i32, i32
  }
  func.func @transform_5(%arg0: i32) -> (i32, i32) {
    %c0_i32 = arith.constant 0 : i32
    %c0_i32_0 = arith.constant 0 : i32
    %c0_i32_1 = arith.constant 0 : i32
    return %c0_i32, %c0_i32_0 : i32, i32
  }
  func.func @transform_6(%arg0: i32) -> i32 {
    %c0_i32 = arith.constant 0 : i32
    %c0_i32_0 = arith.constant 0 : i32
    return %c0_i32 : i32
  }
  func.func @transform_7(%arg0: i32) -> (i32, i32) {
    %c0_i32 = arith.constant 0 : i32
    %c0_i32_0 = arith.constant 0 : i32
    return %c0_i32, %arg0 : i32, i32
  }
}

</mosaic_0001>

<bundles_post_ra>
// kernel: tpu_custom_call.1
= control target key start
LH: loop header
LB: loop body
LE: loop exit
PB: predicated region body
PF: predicated region fallthrough
CT: control target
= control target key end

     0   :  { %s10941_s0 = inlined_call_operand.hbm [shape: f32[256,128], index: 0, kind: input, shape index: {}]   ;;  %s10942_s1 = inlined_call_operand.hbm [shape: bf16[128,1024], index: 1, kind: input, shape index: {}]   ;;  %s10943_s2 = inlined_call_operand.hbm [shape: f32[1,1024], index: 2, kind: input, shape index: {}]   ;;  %s10944_s3 = inlined_call_operand.hbm [shape: bf16[1024,1024], index: 3, kind: input, shape index: {}]   ;;  %s10945_s4 = inlined_call_operand.hbm [shape: f32[1,1024], index: 4, kind: input, shape index: {}]   ;;  %s10946_s5 = inlined_call_operand.hbm [shape: f32[1,1024], index: 5, kind: input, shape index: {}]   ;;  %s10947_s6 = inlined_call_operand.<no memory space> [shape: f32[1], index: 6, kind: input, shape index: {}]   ;;  %s10948_s7 = inlined_call_operand.hbm [shape: f32[1,256], index: 7, kind: output, shape index: {}]  }
   0x1   :  { %12 = sst [smem:[#allocation2]] %s10947_s6 }
   0x2   :  { %13 = vsyncpa [#allocation4], 0 }
   0x3   :  { %15 = vsyncpa [#allocation4 + $0x1], 0 }
   0x4   :  { %16 = vsyncpa [#allocation7], 0 }
   0x5   :  { %17 = vsyncpa [#allocation10], 0 }
   0x6   :  { %18 = vsyncpa [#allocation13], 0 }
   0x7   :  { %19 = vsyncpa [#allocation5], 0 }
   0x8   :  { %21 = vsyncpa [#allocation5 + $0x1], 0  ;;  %s8793_s26 = smov 0   ;;  %s8795_s27 = smov 0  }
   0x9   :  { %s8797_s28 = smov 0   ;;  %s8799_s29 = smov 0  }
   0xa LB: > { %s8738_s6 = smov [#allocation6]   ;;  %s8814_s8 = sadd.s32 4294967295, %s8736_s29   ;;  %s8736_s29 = sphi %s8799_s29, %s11226_s29   ;;  %s8732_s28 = sphi %s8797_s28, %s11225_s28   ;;  %s8728_s27 = sphi %s8795_s27, %s11224_s27   ;;  %s8724_s26 = sphi %s8793_s26, %s11223_s26  }
   0xb   : > { %s222_s30 = sshll.u32 %s8738_s6, 4  ;;  %p7195_p0 = scmp.ge.s32.totalorder %s8736_s29, 1  ;;  %s8819_s30 = int_to_ptr.vmem [resolvable:$true] %s222_s30 }
   0xc   : > { %p10949_p1 = scmp.eq.s32.totalorder %s8814_s8, 0  ;;  %p210_p2 = scmp.lt.s32.totalorder %s8736_s29, 3 }
   0xd   : > { %s8739_s10 = smov [#allocation9]   ;;  %s8740_s13 = smov [#allocation8]  }
   0xe   : > { %p8821_p3 = pnand %p7195_p0, %p210_p2  ;;  %s246_s11 = sshll.u32 %s8739_s10, 4  ;;  %s8834_s11 = int_to_ptr.vmem [resolvable:$true] %s246_s11 }
   0xf   : > { %s236_s14 = sshll.u32 %s8740_s13, 4  ;;  %s8488_s17 = scalar_lea.hbm %s10942_s1, 8192  ;;  %s8836_s14 = int_to_ptr.vmem [resolvable:$true] %s236_s14 }
  0x10   : > { %s11059_s9 = scalar_select %p8821_p3, 1, 0 }
  0x11   : > { %p8344_p5 = pneg %p8821_p3  ;;  %p8489_p7 = scmp.ne.s32.totalorder %s10942_s1, %s8488_s17 }
  0x12   : > { %p8495_p11 = scmp.lt.u32.totalorder %s8488_s17, %s10942_s1 }
  0x13   : > { %p8830_p6 = pnand %p8344_p5, %p10949_p1 }
  0x15   : > { %p8846_p8 = pneg %p8830_p6 }
  0x17   : > { %p8491_p9 = pnand %p8846_p8, %p8489_p7 }
  0x19   : > { %p8492_p10 = pneg %p8491_p9 }
  0x1b   : > { %p8497_p12 = pnand %p8495_p11, %p8492_p10 }
  0x1d   : > { %8500 = shalt.err (!%p8497_p12)
}
  0x1e   : > { %s8501_s23 = scalar_lea.vmem %s8819_s30, 8192  ;;  %p8509_p5 = scmp.lt.s32.totalorder %s8819_s30, %s8819_s30 }
  0x1f   : > { %p8502_p13 = scmp.ne.s32.totalorder %s8819_s30, %s8501_s23  ;;  %p8510_p4 = scmp.lt.s32.totalorder %s8501_s23, %s8501_s23 }
  0x21   : > { %p8504_p0 = pnand %p8502_p13, %p8846_p8  ;;  %p8511_p7 = por %p8510_p4, %p8509_p5 }
  0x23   : > { %p8505_p2 = pneg %p8504_p0 }
  0x25   : > { %p8512_p9 = pnand %p8511_p7, %p8505_p2 }
  0x27   : > { %8515 = shalt.err (!%p8512_p9)
}
  0x28   : > { %s8741_s24 = smov 512   ;;  %s8742_s25 = smov 32  }
  0x29   : > { %8347 = dma.hbm_to_vmem [thread:$0]  (!%p8830_p6), %s10942_s1, 8192, %s8819_s30, [#allocation7], %s8741_s24, %s8741_s24, %s8742_s25  }
  0x2a   : > { %s8516_s16 = scalar_lea.hbm %s10944_s3, 65536 }
  0x2b   : > { %p8517_p4 = scmp.ne.s32.totalorder %s10944_s3, %s8516_s16  ;;  %p8523_p12 = scmp.lt.u32.totalorder %s8516_s16, %s10944_s3 }
  0x2d   : > { %p8519_p10 = pnand %p8517_p4, %p8846_p8 }
  0x2f   : > { %p8520_p11 = pneg %p8519_p10 }
  0x31   : > { %p8525_p13 = pnand %p8523_p12, %p8520_p11 }
  0x33   : > { %8528 = shalt.err (!%p8525_p13)
}
  0x34   : > { %s8529_s30 = scalar_lea.vmem %s8834_s11, 65536  ;;  %p8537_p7 = scmp.lt.s32.totalorder %s8834_s11, %s8834_s11 }
  0x35   : > { %p8530_p0 = scmp.ne.s32.totalorder %s8834_s11, %s8529_s30  ;;  %p8538_p9 = scmp.lt.s32.totalorder %s8529_s30, %s8529_s30 }
  0x37   : > { %p8532_p2 = pnand %p8530_p0, %p8846_p8  ;;  %p8539_p4 = por %p8538_p9, %p8537_p7 }
  0x39   : > { %p8533_p5 = pneg %p8532_p2 }
  0x3b   : > { %p8540_p10 = pnand %p8539_p4, %p8533_p5 }
  0x3d   : > { %8543 = shalt.err (!%p8540_p10)
}
  0x3e   : > { %8353 = dma.hbm_to_vmem [thread:$0]  (!%p8830_p6), %s10944_s3, 65536, %s8834_s11, [#allocation10], %s8741_s24, %s8741_s24, %s8742_s25  }
  0x3f   : > { %s8544_s13 = scalar_lea.hbm %s10943_s2, 128 }
  0x40   : > { %p8545_p11 = scmp.ne.s32.totalorder %s10943_s2, %s8544_s13  ;;  %p8551_p0 = scmp.lt.u32.totalorder %s8544_s13, %s10943_s2 }
  0x42   : > { %p8547_p12 = pnand %p8545_p11, %p8846_p8 }
  0x44   : > { %p8548_p13 = pneg %p8547_p12 }
  0x46   : > { %p8553_p2 = pnand %p8551_p0, %p8548_p13 }
  0x48   : > { %8556 = shalt.err (!%p8553_p2)
}
  0x49   : > { %s8557_s11 = scalar_lea.vmem %s8836_s14, 128  ;;  %p8565_p4 = scmp.lt.s32.totalorder %s8836_s14, %s8836_s14 }
  0x4a   : > { %p8558_p5 = scmp.ne.s32.totalorder %s8836_s14, %s8557_s11  ;;  %p8566_p10 = scmp.lt.s32.totalorder %s8557_s11, %s8557_s11 }
  0x4c   : > { %p8560_p7 = pnand %p8558_p5, %p8846_p8  ;;  %p8567_p11 = por %p8566_p10, %p8565_p4 }
  0x4e   : > { %p8561_p9 = pneg %p8560_p7 }
  0x50   : > { %p8568_p12 = pnand %p8567_p11, %p8561_p9 }
  0x52   : > { %8571 = shalt.err (!%p8568_p12)
}
  0x53   : > { %8350 = dma.hbm_to_vmem [thread:$0]  (!%p8830_p6), %s10943_s2, 128, %s8836_s14, [#allocation7]  }
  0x54   : > { %s8743_s19 = smov [#allocation11]   ;;  %s8744_s30 = smov [#allocation12]  }
  0x55   : > { %s260_s21 = sshll.u32 %s8743_s19, 4  ;;  %s271_s22 = sshll.u32 %s8744_s30, 4  ;;  %s261_s21 = int_to_ptr.vmem [resolvable:$true] %s260_s21  ;;  %s272_s22 = int_to_ptr.vmem [resolvable:$true] %s271_s22 }
  0x56   : > { %s8572_s10 = scalar_lea.hbm %s10945_s4, 128 }
  0x57   : > { %p8573_p13 = scmp.ne.s32.totalorder %s10945_s4, %s8572_s10  ;;  %p8579_p5 = scmp.lt.u32.totalorder %s8572_s10, %s10945_s4 }
  0x59   : > { %p8575_p0 = pnand %p8573_p13, %p8846_p8 }
  0x5b   : > { %p8576_p2 = pneg %p8575_p0 }
  0x5d   : > { %p8581_p7 = pnand %p8579_p5, %p8576_p2 }
  0x5f   : > { %8584 = shalt.err (!%p8581_p7)
}
  0x60   : > { %s8585_s14 = scalar_lea.vmem %s261_s21, 128  ;;  %p8593_p11 = scmp.lt.s32.totalorder %s261_s21, %s261_s21 }
  0x61   : > { %p8586_p9 = scmp.ne.s32.totalorder %s261_s21, %s8585_s14  ;;  %p8594_p12 = scmp.lt.s32.totalorder %s8585_s14, %s8585_s14 }
  0x63   : > { %p8588_p4 = pnand %p8586_p9, %p8846_p8  ;;  %p8595_p1 = por %p8594_p12, %p8593_p11 }
  0x65   : > { %p8589_p10 = pneg %p8588_p4 }
  0x67   : > { %p8596_p3 = pnand %p8595_p1, %p8589_p10 }
  0x69   : > { %8599 = shalt.err (!%p8596_p3)
}
  0x6a   : > { %8356 = dma.hbm_to_vmem [thread:$0]  (!%p8830_p6), %s10945_s4, 128, %s261_s21, [#allocation10]  }
  0x6b   : > { %s8600_s19 = scalar_lea.hbm %s10946_s5, 128 }
  0x6c   : > { %p8601_p13 = scmp.ne.s32.totalorder %s10946_s5, %s8600_s19  ;;  %p8607_p3 = scmp.lt.u32.totalorder %s8600_s19, %s10946_s5 }
  0x6e   : > { %p8603_p0 = pnand %p8601_p13, %p8846_p8 }
  0x70   : > { %p8604_p1 = pneg %p8603_p0 }
  0x72   : > { %p8609_p2 = pnand %p8607_p3, %p8604_p1 }
  0x74   : > { %8612 = shalt.err (!%p8609_p2)
}
  0x75   : > { %s8613_s13 = scalar_lea.vmem %s272_s22, 128  ;;  %p8621_p4 = scmp.lt.s32.totalorder %s272_s22, %s272_s22 }
  0x76   : > { %p8614_p5 = scmp.ne.s32.totalorder %s272_s22, %s8613_s13  ;;  %p8622_p10 = scmp.lt.s32.totalorder %s8613_s13, %s8613_s13 }
  0x78   : > { %p8616_p7 = pnand %p8614_p5, %p8846_p8  ;;  %p8623_p11 = por %p8622_p10, %p8621_p4 }
  0x7a   : > { %p8617_p9 = pneg %p8616_p7 }
  0x7c   : > { %p8624_p12 = pnand %p8623_p11, %p8617_p9 }
  0x7e   : > { %8627 = shalt.err (!%p8624_p12)
}
  0x7f   : > { %8359 = dma.hbm_to_vmem [thread:$0]  (!%p8830_p6), %s10946_s5, 128, %s272_s22, [#allocation13]  }
  0x80   : > { %s7194_s20 = sadd.s32 4294967294, %s8736_s29   ;;  %s8951_s12 = sadd.s32 1, %s8736_s29  }
  0x81   : > { %s34_s16 = sadd.s32 1, %s8732_s28  ;;  %s31_s17 = ssub.s32 %s8736_s29, %s8951_s12 }
  0x82   : > { %p41_p8 = scmp.ne.s32.totalorder %s8732_s28, %s8728_s27  ;;  %p32_p13 = scmp.eq.s32.totalorder %s31_s17, 0 }
  0x83   : > { %p42_p0 = scmp.eq.s32.totalorder %s8736_s29, 0  ;;  %p47_p1 = scmp.ne.s32.totalorder %s8728_s27, %s8724_s26 }
  0x84   : > { %p197_p3 = scmp.eq.s32.totalorder %s8814_s8, 1  ;;  %p11062_p5 = scmp.eq.s32.totalorder %s8814_s8, 0 }
  0x85   : > { %s8963_s14 = scalar_select %p32_p13, %s8732_s28, %s34_s16  }
  0x86   : > { %p43_p2 = por %p42_p0, %p41_p8  ;;  %p8967_p7 = por %p11062_p5, %p47_p1 }
  0x87   : > { %p8971_p6 = por %p197_p3, %p41_p8  ;;  %p203_p9 = scmp.eq.s32.totalorder %s7194_s20, 1 }
  0x88   : > { %p8373_p4 = scmp.lt.s32.totalorder %s8736_s29, 2  ;;  %s285_s11 = sand.u32 1, %s8732_s28  }
  0x89   : > { %s11064_s22 = scalar_select %p8971_p6, 1, 0 }
  0x8a   : > { %p8977_p10 = por %p203_p9, %p47_p1  ;;  %s7202_s25 = sshll.u32 %s285_s11, 7 }
  0x8b   : > { %s7807_s19 = sshll.u32 %s8736_s29, 11  ;;  %s289_s10 = scalar_lea.vmem [#allocation3], %s7202_s25 }
  0x8c   : > { %s11065_s24 = scalar_select %p8977_p10, 1, 0 }
  0x8d   : > { %s8985_s6 = scalar_lea.hbm %s10941_s0, %s7807_s19  ;;  %s296_s13 = sshll.u32 %s289_s10, 4  ;;  %s8991_s13 = int_to_ptr.vmem [resolvable:$true] %s296_s13 }
  0x8e   : > { %p8987_p11 = pnand %p8373_p4, %p43_p2  ;;  %s8993_s15 = scalar_lea.sflag [#allocation4], %s285_s11 }
  0x8f   : > { %s8628_s20 = scalar_lea.hbm %s8985_s6, 2048  ;;  %s8633_s25 = scalar_lea.hbm %s10941_s0, 4096 }
  0x90   : > { %p8629_p12 = scmp.ne.s32.totalorder %s8985_s6, %s8628_s20  ;;  %p8630_p8 = pneg %p8987_p11 }
  0x91   : > { %p8634_p1 = scmp.lt.u32.totalorder %s8985_s6, %s10941_s0  ;;  %p8635_p3 = scmp.lt.u32.totalorder %s8633_s25, %s8628_s20 }
  0x92   : > { %p8631_p13 = pnand %p8630_p8, %p8629_p12  ;;  %p8637_p5 = scmp.lt.u32.totalorder %s8628_s20, %s8985_s6 }
  0x93   : > { %p8636_p2 = por %p8635_p3, %p8634_p1 }
  0x94   : > { %p8632_p0 = pneg %p8631_p13 }
  0x95   : > { %p8638_p9 = por %p8637_p5, %p8636_p2 }
  0x97   : > { %p8639_p4 = pnand %p8638_p9, %p8632_p0 }
  0x99   : > { %8642 = shalt.err (!%p8639_p4)
}
  0x9a   : > { %s8643_s11 = scalar_lea.vmem %s8991_s13, 2048  ;;  %s8745_s23 = smov [#allocation3]  }
  0x9b   : > { %p8644_p12 = scmp.ne.s32.totalorder %s8991_s13, %s8643_s11  ;;  %s8648_s10 = sshll.u32 %s8745_s23, 4  ;;  %s8649_s10 = int_to_ptr.vmem [resolvable:$false] %s8648_s10 }
  0x9c   : > { %s8650_s16 = scalar_lea.vmem %s8649_s10, 4096  ;;  %p8651_p6 = scmp.lt.s32.totalorder %s8991_s13, %s8649_s10 }
  0x9d   : > { %p8646_p13 = pnand %p8644_p12, %p8630_p8  ;;  %p8652_p1 = scmp.lt.s32.totalorder %s8650_s16, %s8643_s11 }
  0x9f   : > { %p8647_p10 = pneg %p8646_p13  ;;  %p8653_p3 = por %p8652_p1, %p8651_p6 }
  0xa1   : > { %p8654_p2 = pnand %p8653_p3, %p8647_p10 }
  0xa3   : > { %8657 = shalt.err (!%p8654_p2)
}
  0xa4   : > { %s8746_s20 = smov 128   ;;  %s8747_s17 = smov 8  }
  0xa5   : > { %8363 = dma.hbm_to_vmem [thread:$0]  (!%p8987_p11), %s8985_s6, 2048, %s8991_s13, %s8993_s15, %s8746_s20, %s8746_s20, %s8747_s17  }
  0xa6   : > { %p11067_p8 = scmp.ne.s32.totalorder %s11059_s9, 0 }
  0xa8   : > { %308 = sbr.rel (%p11067_p8) target bundleno = 1378 (0x562), region = 48 }
  0xaf   : > { %s9024_s25 = sand.u32 1, %s8728_s27  }
  0xb0   : > { %s7206_s19 = sshll.u32 %s9024_s25, 7  ;;  %s311_s30 = scalar_lea.sflag [#allocation4], %s9024_s25 }
  0xb1   : > { %s9028_s11 = scalar_lea.vmem [#allocation3], %s7206_s19 }
  0xb2   : > { %8703 = dma.done.wait (%p8967_p7), %s311_s30, 2048  }
  0xb3   : > { %8705 = vsyncadd (%p8967_p7), %s311_s30, 4294965248  ;;  %p11068_p6 = scmp.eq.s32.totalorder %s8814_s8, 0 }
  0xb5   : > { %8707 = dma.done.wait (%p11068_p6), [#allocation7], 8320   ;;  %p11069_p10 = pmov %p11068_p6 }
  0xb6   : > { %p11070_p11 = pmov %p11068_p6 }
  0xb7   : > { %8709 = vsyncadd (%p11069_p10), [#allocation7], 4294958976 }
  0xb8   : > { %8711 = dma.done.wait (%p11070_p11), [#allocation10], 65664   ;;  %p11071_p0 = pmov %p11068_p6 }
  0xba   : > { %8713 = vsyncadd (%p11071_p0), [#allocation10], 4294901632  ;;  %p11072_p5 = pmov %p11071_p0 }
  0xbb   : > { %p11073_p9 = pmov %p11071_p0 }
  0xbc   : > { %8715 = dma.done.wait (%p11072_p5), [#allocation13], 128  }
  0xbd   : > { %8717 = vsyncadd (%p11073_p9), [#allocation13], 4294967168  ;;  %v8748_v0 = vmov 0   ;;  %v390_v1 = vld [vmem:[#allocation6] sm:$0xff]  ;;  %v391_v15 = vld [vmem:[#allocation6 + $0x8] sm:$0xff]  ;;  %s6824_s9 = sld [smem:[#allocation2]] }
  0xbe   : > { %848 = vmatprep.mubr.bf16.mxu0 %v8748_v0  ;;  %961 = vmatprep.mubr.bf16.mxu1 %v8748_v0  ;;  %v394_v2 = vld [vmem:[#allocation6 + $0x20] sm:$0xff]  ;;  %v395_v16 = vld [vmem:[#allocation6 + $0x28] sm:$0xff]  ;;  %v392_v57 = vld [vmem:[#allocation6 + $0x10] sm:$0xff]  ;;  %vm6965_vm0 = vcmask 130112   ;;  %vm6972_vm1 = vcmask 195712   ;;  %vm6979_vm2 = vcmask 261312  }
  0xbf   : > { %v398_v3 = vld [vmem:[#allocation6 + $0x40] sm:$0xff]  ;;  %v7213_v4 = vcombine.high %v390_v1, %v394_v2  ;;  %v7212_v5 = vcombine.low %v390_v1, %v394_v2  ;;  %v7215_v19 = vcombine.high %v391_v15, %v395_v16  ;;  %v7214_v20 = vcombine.low %v391_v15, %v395_v16  ;;  %v399_v21 = vld [vmem:[#allocation6 + $0x48] sm:$0xff]  ;;  %v396_v58 = vld [vmem:[#allocation6 + $0x30] sm:$0xff]  ;;  %s7804_s18 = sshll.u32 %s8814_s8, 4  ;;  %s363_s6 = scalar_lea.vmem [#allocation14], %s9024_s25 }
  0xc0   : > { %v402_v6 = vld [vmem:[#allocation6 + $0x60] sm:$0xff]  ;;  %v403_v22 = vld [vmem:[#allocation6 + $0x68] sm:$0xff]  ;;  %v7217_v1 = vcombine.high %v392_v57, %v396_v58  ;;  %v368_v15 = vld [vmem:[%s9028_s11 + $0x10] sm:$0xff]  ;;  %vm6986_vm3 = vcmask 326912   ;;  %vm6993_vm4 = vcmask 392512   ;;  %vm7000_vm5 = vcmask 458112   ;;  %s10897_s23 = scalar_lea.hbm %s10948_s7, %s7804_s18 }
  0xc1   : > { %v7221_v7 = vcombine.high %v398_v3, %v402_v6  ;;  %v406_v8 = vld [vmem:[#allocation6 + $0x80] sm:$0xff]  ;;  %816 = vmatprep.subr.bf16.mxu0 %v7213_v4  ;;  %v7220_v10 = vcombine.low %v398_v3, %v402_v6  ;;  %v7223_v24 = vcombine.high %v399_v21, %v403_v22  ;;  %v407_v25 = vld [vmem:[#allocation6 + $0x88] sm:$0xff]  ;;  %929 = vmatprep.subr.bf16.mxu1 %v7215_v19  ;;  %v404_v6 = vld [vmem:[#allocation6 + $0x70] sm:$0xff]  ;;  %vm7007_vm6 = vcmask 523712   ;;  %s7080_s13 = sshll.u32 %s363_s6, 4  ;;  %s7068_s8 = scalar_lea.sflag [#allocation5], %s9024_s25  ;;  %s10899_s13 = int_to_ptr.vmem [resolvable:$true] %s7080_s13 }
  0xc2   : > { %v410_v9 = vld [vmem:[#allocation6 + $0xa0] sm:$0xff]  ;;  %817 = vmatpush1.bf16.msra.mxu0 %v7212_v5  ;;  %v411_v26 = vld [vmem:[#allocation6 + $0xa8] sm:$0xff]  ;;  %930 = vmatpush1.bf16.msra.mxu1 %v7214_v20  ;;  %v7222_v28 = vcombine.low %v399_v21, %v403_v22  ;;  %v400_v5 = vld [vmem:[#allocation6 + $0x50] sm:$0xff]  ;;  %vm7014_vm7 = vcmask 589312   ;;  %vm7021_vm8 = vcmask 654912   ;;  %vm7028_vm9 = vcmask 720512  }
  0xc3   : > { %818 = vmatprep.subr.bf16.mxu0 %v7221_v7  ;;  %v7229_v11 = vcombine.high %v406_v8, %v410_v9  ;;  %v414_v12 = vld [vmem:[#allocation6 + $0xc0] sm:$0xff]  ;;  %v7228_v14 = vcombine.low %v406_v8, %v410_v9  ;;  %931 = vmatprep.subr.bf16.mxu1 %v7223_v24  ;;  %v7231_v31 = vcombine.high %v407_v25, %v411_v26  ;;  %v415_v33 = vld [vmem:[#allocation6 + $0xc8] sm:$0xff]  ;;  %v369_v16 = vld [vmem:[%s9028_s11 + $0x18] sm:$0xff]  ;;  %vm7035_vm10 = vcmask 786112   ;;  %s8658_s10 = scalar_lea.vmem %s10899_s13, 16  ;;  %p11220_p4 = scmp.ne.s32.totalorder %s11064_s22, 0 }
  0xc4   : > { %v418_v13 = vld [vmem:[#allocation6 + $0xe0] sm:$0xff]  ;;  %v419_v34 = vld [vmem:[#allocation6 + $0xe8] sm:$0xff]  ;;  %v7230_v36 = vcombine.low %v407_v25, %v411_v26  ;;  %v7216_v9 = vcombine.low %v392_v57, %v396_v58  ;;  %v416_v21 = vld [vmem:[#allocation6 + $0xd0] sm:$0xff]  ;;  %v9056_v22 = vpack.c.bf16 %v369_v16, %v368_v15  ;;  %vm7042_vm11 = vcmask 851712   ;;  %p8659_p7 = scmp.ne.s32.totalorder %s10899_s13, %s8658_s10  ;;  %s8749_s16 = smov [#allocation14]  }
  0xc5   : > { %v7237_v17 = vcombine.high %v414_v12, %v418_v13  ;;  %v422_v18 = vld [vmem:[#allocation6 + $0x100] sm:$0xff]  ;;  %v7236_v27 = vcombine.low %v414_v12, %v418_v13  ;;  %v7239_v39 = vcombine.high %v415_v33, %v419_v34  ;;  %v423_v41 = vld [vmem:[#allocation6 + $0x108] sm:$0xff]  ;;  %v7238_v44 = vcombine.low %v415_v33, %v419_v34  ;;  %v397_v12 = vld [vmem:[#allocation6 + $0x38] sm:$0xff]  ;;  %s8662_s20 = sshll.u32 %s8749_s16, 4  ;;  %s8663_s20 = int_to_ptr.vmem [resolvable:$false] %s8662_s20 }
  0xc6   : > { %819 = vmatpush1.bf16.msra.mxu0 %v7220_v10  ;;  %v426_v23 = vld [vmem:[#allocation6 + $0x120] sm:$0xff]  ;;  %932 = vmatpush1.bf16.msra.mxu1 %v7222_v28  ;;  %v427_v42 = vld [vmem:[#allocation6 + $0x128] sm:$0xff]  ;;  %v7225_v10 = vcombine.high %v400_v5, %v404_v6  ;;  %v408_v13 = vld [vmem:[#allocation6 + $0x90] sm:$0xff]  ;;  %vm7049_vm12 = vcmask 917312   ;;  %vm7056_vm13 = vcmask 982912   ;;  %vm7063_vm14 = vcmask 1048512   ;;  %p8660_p12 = pnand %p8659_p7, %p11220_p4  ;;  %p8665_p1 = scmp.lt.s32.totalorder %s10899_s13, %s8663_s20 }
  0xc7   : > { %820 = vmatprep.subr.bf16.mxu0 %v7229_v11  ;;  %v7245_v29 = vcombine.high %v422_v18, %v426_v23  ;;  %v430_v30 = vld [vmem:[#allocation6 + $0x140] sm:$0xff]  ;;  %v7244_v35 = vcombine.low %v422_v18, %v426_v23  ;;  %933 = vmatprep.subr.bf16.mxu1 %v7231_v31  ;;  %v7247_v47 = vcombine.high %v423_v41, %v427_v42  ;;  %v431_v49 = vld [vmem:[#allocation6 + $0x148] sm:$0xff]  ;;  %v393_v11 = vld [vmem:[#allocation6 + $0x18] sm:$0xff]  ;;  %s8664_s17 = scalar_lea.vmem %s8663_s20, 32 }
  0xc8   : > { %v434_v32 = vld [vmem:[#allocation6 + $0x160] sm:$0xff]  ;;  %v435_v50 = vld [vmem:[#allocation6 + $0x168] sm:$0xff]  ;;  %v7246_v52 = vcombine.low %v423_v41, %v427_v42  ;;  %v7224_v18 = vcombine.low %v400_v5, %v404_v6  ;;  %v7219_v19 = vcombine.high %v393_v11, %v397_v12  ;;  %v420_v23 = vld [vmem:[#allocation6 + $0xf0] sm:$0xff]  ;;  %p8661_p13 = pneg %p8660_p12  ;;  %p8666_p3 = scmp.lt.s32.totalorder %s8664_s17, %s8658_s10 }
  0xc9   : > { %v7253_v37 = vcombine.high %v430_v30, %v434_v32  ;;  %v438_v38 = vld [vmem:[#allocation6 + $0x180] sm:$0xff]  ;;  %v7252_v43 = vcombine.low %v430_v30, %v434_v32  ;;  %v7255_v54 = vcombine.high %v431_v49, %v435_v50  ;;  %v439_v55 = vld [vmem:[#allocation6 + $0x188] sm:$0xff]  ;;  %v7254_v62 = vcombine.low %v431_v49, %v435_v50  ;;  %v401_v24 = vld [vmem:[#allocation6 + $0x58] sm:$0xff] }
  0xca   : > { %821 = vmatpush1.bf16.msra.mxu0 %v7228_v14  ;;  %v442_v40 = vld [vmem:[#allocation6 + $0x1a0] sm:$0xff]  ;;  %934 = vmatpush1.bf16.msra.mxu1 %v7230_v36  ;;  %v443_v56 = vld [vmem:[#allocation6 + $0x1a8] sm:$0xff]  ;;  %v412_v14 = vld [vmem:[#allocation6 + $0xb0] sm:$0xff]  ;;  %v7241_v28 = vcombine.high %v416_v21, %v420_v23  ;;  %v7240_v36 = vcombine.low %v416_v21, %v420_v23  ;;  %p8667_p2 = por %p8666_p3, %p8665_p1 }
  0xcb   : > { %822 = vmatprep.subr.bf16.mxu0 %v7237_v17  ;;  %v7261_v45 = vcombine.high %v438_v38, %v442_v40  ;;  %v446_v46 = vld [vmem:[#allocation6 + $0x1c0] sm:$0xff]  ;;  %935 = vmatprep.subr.bf16.mxu1 %v7239_v39  ;;  %v7260_v51 = vcombine.low %v438_v38, %v442_v40  ;;  %v367_v61 = vld [vmem:[%s9028_s11 + $0x8] sm:$0xff]  ;;  %v7263_v63 = vcombine.high %v439_v55, %v443_v56  ;;  %v405_v25 = vld [vmem:[#allocation6 + $0x78] sm:$0xff] }
  0xcc   : > { %v450_v48 = vld [vmem:[#allocation6 + $0x1e0] sm:$0xff]  ;;  %v447_v2 = vld [vmem:[#allocation6 + $0x1c8] sm:$0xff]  ;;  %v7262_v7 = vcombine.low %v439_v55, %v443_v56  ;;  %v7233_v20 = vcombine.high %v408_v13, %v412_v14  ;;  %v7232_v26 = vcombine.low %v408_v13, %v412_v14  ;;  %v7227_v30 = vcombine.high %v401_v24, %v405_v25  ;;  %v428_v31 = vld [vmem:[#allocation6 + $0x130] sm:$0xff]  ;;  %p8668_p8 = pnand %p8667_p2, %p8661_p13 }
  0xcd   : > { %v7269_v53 = vcombine.high %v446_v46, %v450_v48  ;;  %v7268_v59 = vcombine.low %v446_v46, %v450_v48  ;;  %v366_v60 = vld [vmem:[%s9028_s11] sm:$0xff]  ;;  %v451_v3 = vld [vmem:[#allocation6 + $0x1e8] sm:$0xff]  ;;  %v409_v32 = vld [vmem:[#allocation6 + $0x98] sm:$0xff] }
  0xce   : > { %823 = vmatpush1.bf16.msra.mxu0 %v7236_v27  ;;  %936 = vmatpush1.bf16.msra.mxu1 %v7238_v44  ;;  %v9050_v4 = vpack.c.bf16 %v367_v61, %v366_v60  ;;  %v7271_v8 = vcombine.high %v447_v2, %v451_v3  ;;  %v7270_v17 = vcombine.low %v447_v2, %v451_v3  ;;  %v413_v33 = vld [vmem:[#allocation6 + $0xb8] sm:$0xff]  ;;  %v370_v34 = vld [vmem:[%s9028_s11 + $0x20] sm:$0xff]  ;;  %v432_v39 = vld [vmem:[#allocation6 + $0x150] sm:$0xff] }
  0xcf   : > { %824 = vmatprep.subr.bf16.mxu0 %v7245_v29  ;;  %937 = vmatprep.subr.bf16.mxu1 %v7247_v47  ;;  %v7218_v27 = vcombine.low %v393_v11, %v397_v12  ;;  %v424_v29 = vld [vmem:[#allocation6 + $0x110] sm:$0xff]  ;;  %v7235_v40 = vcombine.high %v409_v32, %v413_v33  ;;  %v421_v44 = vld [vmem:[#allocation6 + $0xf8] sm:$0xff]  ;;  %v7234_v46 = vcombine.low %v409_v32, %v413_v33  ;;  %v375_v11 = vld [vmem:[%s9028_s11 + $0x48] sm:$0xff] }
  0xd0   : > { %v7249_v38 = vcombine.high %v424_v29, %v428_v31  ;;  %v436_v42 = vld [vmem:[#allocation6 + $0x170] sm:$0xff]  ;;  %v441_v6 = vld [vmem:[#allocation6 + $0x198] sm:$0xff] }
  0xd1   : > { %v7257_v47 = vcombine.high %v432_v39, %v436_v42  ;;  %v440_v48 = vld [vmem:[#allocation6 + $0x190] sm:$0xff]  ;;  %v7256_v55 = vcombine.low %v432_v39, %v436_v42  ;;  %v381_v33 = vld [vmem:[%s9028_s11 + $0x78] sm:$0xff]  ;;  %v1476_v39 = vld [vmem:[#allocation9 + $0x80] sm:$0xff] }
  0xd2   : > { %825 = vmatpush1.bf16.msra.mxu0 %v7244_v35  ;;  %938 = vmatpush1.bf16.msra.mxu1 %v7246_v52  ;;  %v371_v35 = vld [vmem:[%s9028_s11 + $0x28] sm:$0xff]  ;;  %v444_v50 = vld [vmem:[#allocation6 + $0x1b0] sm:$0xff]  ;;  %v429_v52 = vld [vmem:[#allocation6 + $0x138] sm:$0xff] }
  0xd3   : > { %826 = vmatprep.subr.bf16.mxu0 %v7253_v37  ;;  %939 = vmatprep.subr.bf16.mxu1 %v7255_v54  ;;  %v7226_v37 = vcombine.low %v401_v24, %v405_v25  ;;  %v9064_v41 = vpack.c.bf16 %v371_v35, %v370_v34  ;;  %v373_v54 = vld [vmem:[%s9028_s11 + $0x38] sm:$0xff]  ;;  %v7265_v57 = vcombine.high %v440_v48, %v444_v50  ;;  %v448_v58 = vld [vmem:[#allocation6 + $0x1d0] sm:$0xff]  ;;  %v1468_v35 = vld [vmem:[#allocation9 + $0x40] sm:$0xff] }
  0xd4   : > { %v452_v61 = vld [vmem:[#allocation6 + $0x1f0] sm:$0xff]  ;;  %v377_v25 = vld [vmem:[%s9028_s11 + $0x58] sm:$0xff] }
  0xd5   : > { %v7273_v3 = vcombine.high %v448_v58, %v452_v61  ;;  %v7272_v12 = vcombine.low %v448_v58, %v452_v61  ;;  %v1461_v21 = vld [vmem:[#allocation9 + $0x8] sm:$0xff]  ;;  %v1496_v61 = vld [vmem:[#allocation9 + $0x120] sm:$0xff] }
  0xd6   : > { %827 = vmatpush1.bf16.msra.mxu0 %v7252_v43  ;;  %940 = vmatpush1.bf16.msra.mxu1 %v7254_v62  ;;  %v417_v43 = vld [vmem:[#allocation6 + $0xd8] sm:$0xff]  ;;  %v1465_v23 = vld [vmem:[#allocation9 + $0x28] sm:$0xff] }
  0xd7   : > { %828 = vmatprep.subr.bf16.mxu0 %v7261_v45  ;;  %941 = vmatprep.subr.bf16.mxu1 %v7263_v63  ;;  %v7248_v45 = vcombine.low %v424_v29, %v428_v31  ;;  %v7243_v49 = vcombine.high %v417_v43, %v421_v44  ;;  %v7242_v56 = vcombine.low %v417_v43, %v421_v44  ;;  %v433_v62 = vld [vmem:[#allocation6 + $0x158] sm:$0xff]  ;;  %v376_v24 = vld [vmem:[%s9028_s11 + $0x50] sm:$0xff]  ;;  %v378_v29 = vld [vmem:[%s9028_s11 + $0x60] sm:$0xff] }
  0xd8   : > { %v437_v63 = vld [vmem:[#allocation6 + $0x178] sm:$0xff]  ;;  %v380_v32 = vld [vmem:[%s9028_s11 + $0x70] sm:$0xff] }
  0xd9   : > { %v7259_v5 = vcombine.high %v433_v62, %v437_v63  ;;  %v7258_v13 = vcombine.low %v433_v62, %v437_v63  ;;  %v9110_v34 = vpack.c.bf16 %v381_v33, %v380_v32  ;;  %v1469_v43 = vld [vmem:[#allocation9 + $0x48] sm:$0xff]  ;;  %v1500_v63 = vld [vmem:[#allocation9 + $0x140] sm:$0xff] }
  0xda   : > { %829 = vmatpush1.bf16.msra.mxu0 %v7260_v51  ;;  %942 = vmatpush1.bf16.msra.mxu1 %v7262_v7  ;;  %v425_v51 = vld [vmem:[#allocation6 + $0x118] sm:$0xff]  ;;  %v1473_v44 = vld [vmem:[#allocation9 + $0x68] sm:$0xff]  ;;  %v9136_v32 = vld [vmem:[#allocation9 + $0x420] sm:$0xff] }
  0xdb   : > { %830 = vmatprep.subr.bf16.mxu0 %v7269_v53  ;;  %943 = vmatprep.subr.bf16.mxu1 %v7271_v8  ;;  %v372_v53 = vld [vmem:[%s9028_s11 + $0x30] sm:$0xff]  ;;  %v7250_v2 = vcombine.low %v425_v51, %v429_v52  ;;  %v445_v7 = vld [vmem:[#allocation6 + $0x1b8] sm:$0xff]  ;;  %v9076_v8 = vld [vmem:[#allocation9] sm:$0xff] }
  0xdc   : > { %v9072_v60 = vpack.c.bf16 %v373_v54, %v372_v53  ;;  %v7267_v14 = vcombine.high %v441_v6, %v445_v7  ;;  %v7286_v54 = vcombine.low %v1469_v43, %v1473_v44  ;;  %v1489_v58 = vld [vmem:[#allocation9 + $0xe8] sm:$0xff]  ;;  %v1524_v33 = vld [vmem:[#allocation9 + $0x200] sm:$0xff] }
  0xde   : > { %831 = vmatpush1.bf16.msra.mxu0 %v7268_v59  ;;  %944 = vmatpush1.bf16.msra.mxu1 %v7270_v17  ;;  %v7251_v59 = vcombine.high %v425_v51, %v429_v52  ;;  %v449_v17 = vld [vmem:[#allocation6 + $0x1d8] sm:$0xff]  ;;  %v1477_v51 = vld [vmem:[#allocation9 + $0x88] sm:$0xff] }
  0xdf   : > { %1042 = vmatprep.subr.bf16.mxu0 %v7217_v1  ;;  %1155 = vmatprep.subr.bf16.mxu1 %v7219_v19  ;;  %v7264_v1 = vcombine.low %v440_v48, %v444_v50  ;;  %v7266_v19 = vcombine.low %v441_v6, %v445_v7  ;;  %v1488_v48 = vld [vmem:[#allocation9 + $0xe0] sm:$0xff]  ;;  %v1481_v52 = vld [vmem:[#allocation9 + $0xa8] sm:$0xff] }
  0xe0   : > { %v7294_v62 = vcombine.low %v1477_v51, %v1481_v52 }
  0xe1   : > { %849 = vmatmul.mubr.bf16.vlgmr.msra.gmra.mrb[0].mxu0 %v9050_v4  ;;  %962 = vmatmul.mubr.bf16.vlgmr.msra.gmra.mrb[0].mxu1 %v9050_v4 }
  0xe2   : > { %858 = vmatprep.mubr.bf16.mxu0 %v8748_v0  ;;  %1043 = vmatpush1.bf16.msra.mxu0 %v7216_v9  ;;  %v9078_v9 = vld [vmem:[#allocation9 + $0x20] sm:$0xff] }
  0xe3   : > { %1044 = vmatprep.subr.bf16.mxu0 %v7225_v10  ;;  %971 = vmatprep.mubr.bf16.mxu1 %v8748_v0  ;;  %v374_v10 = vld [vmem:[%s9028_s11 + $0x40] sm:$0xff]  ;;  %v7277_v15 = vcombine.high %v9076_v8, %v9078_v9 }
  0xe4   : > { %1156 = vmatpush1.bf16.msra.mxu1 %v7218_v27  ;;  %v9086_v16 = vpack.c.bf16 %v375_v11, %v374_v10  ;;  %v7279_v27 = vcombine.high %v1461_v21, %v1465_v23  ;;  %v1501_v10 = vld [vmem:[#allocation9 + $0x148] sm:$0xff] }
  0xe5   : > { %1157 = vmatprep.subr.bf16.mxu1 %v7227_v30  ;;  %v379_v30 = vld [vmem:[%s9028_s11 + $0x68] sm:$0xff]  ;;  %v1505_v11 = vld [vmem:[#allocation9 + $0x168] sm:$0xff] }
  0xe6   : > { %1045 = vmatpush1.bf16.msra.mxu0 %v7224_v18  ;;  %v453_v18 = vld [vmem:[#allocation6 + $0x1f8] sm:$0xff]  ;;  %v9102_v31 = vpack.c.bf16 %v379_v30, %v378_v29  ;;  %v9134_v30 = vld [vmem:[#allocation9 + $0x400] sm:$0xff] }
  0xe7   : > { %1046 = vmatprep.subr.bf16.mxu0 %v7233_v20  ;;  %v7275_v20 = vcombine.high %v449_v17, %v453_v18 }
  0xe8   : > { %1158 = vmatpush1.bf16.msra.mxu1 %v7226_v37  ;;  %v7276_v37 = vcombine.low %v9076_v8, %v9078_v9 }
  0xe9   : > { %859 = vmatmul.mubr.bf16.gmra.mrb[4].mxu0 %v9056_v22  ;;  %1159 = vmatprep.subr.bf16.mxu1 %v7235_v40  ;;  %v1480_v40 = vld [vmem:[#allocation9 + $0xa0] sm:$0xff] }
  0xea   : > { %868 = vmatprep.mubr.bf16.mxu0 %v8748_v0  ;;  %1047 = vmatpush1.bf16.msra.mxu0 %v7232_v26  ;;  %v7274_v26 = vcombine.low %v449_v17, %v453_v18  ;;  %v7292_v50 = vcombine.low %v1476_v39, %v1480_v40  ;;  %v1509_v18 = vld [vmem:[#allocation9 + $0x188] sm:$0xff] }
  0xeb   : > { %1048 = vmatprep.subr.bf16.mxu0 %v7241_v28  ;;  %972 = vmatmul.mubr.bf16.gmra.mrb[4].mxu1 %v9056_v22  ;;  %v9094_v28 = vpack.c.bf16 %v377_v25, %v376_v24 }
  0xec   : > { %981 = vmatprep.mubr.bf16.mxu1 %v8748_v0  ;;  %1160 = vmatpush1.bf16.msra.mxu1 %v7234_v46  ;;  %v7278_v46 = vcombine.low %v1461_v21, %v1465_v23  ;;  %v1520_v21 = vld [vmem:[#allocation9 + $0x1e0] sm:$0xff]  ;;  %v7318_v23 = vcombine.low %v1501_v10, %v1505_v11 }
  0xed   : > { %1161 = vmatprep.subr.bf16.mxu1 %v7243_v49  ;;  %v7287_v49 = vcombine.high %v1469_v43, %v1473_v44  ;;  %v1525_v44 = vld [vmem:[#allocation9 + $0x208] sm:$0xff] }
  0xee   : > { %1049 = vmatpush1.bf16.msra.mxu0 %v7240_v36  ;;  %v1472_v36 = vld [vmem:[#allocation9 + $0x60] sm:$0xff] }
  0xef   : > { %1050 = vmatprep.subr.bf16.mxu0 %v7249_v38  ;;  %v7285_v38 = vcombine.high %v1468_v35, %v1472_v36  ;;  %v7284_v42 = vcombine.low %v1468_v35, %v1472_v36  ;;  %v1528_v35 = vld [vmem:[#allocation9 + $0x220] sm:$0xff]  ;;  %v9140_v36 = vld [vmem:[#allocation9 + $0x428] sm:$0xff] }
  0xf0   : > { %1162 = vmatpush1.bf16.msra.mxu1 %v7242_v56  ;;  %v7341_v43 = vcombine.high %v1524_v33, %v1528_v35 }
  0xf1   : > { %869 = vmatmul.mubr.bf16.gmra.mrb[8].mxu0 %v9064_v41  ;;  %1163 = vmatprep.subr.bf16.mxu1 %v7251_v59  ;;  %v1492_v59 = vld [vmem:[#allocation9 + $0x100] sm:$0xff] }
  0xf2   : > { %878 = vmatprep.mubr.bf16.mxu0 %v8748_v0  ;;  %1051 = vmatpush1.bf16.msra.mxu0 %v7248_v45  ;;  %v7293_v45 = vcombine.high %v1476_v39, %v1480_v40  ;;  %v7308_v6 = vcombine.low %v1492_v59, %v1496_v61 }
  0xf3   : > { %1052 = vmatprep.subr.bf16.mxu0 %v7257_v47  ;;  %982 = vmatmul.mubr.bf16.gmra.mrb[8].mxu1 %v9064_v41  ;;  %v1484_v47 = vld [vmem:[#allocation9 + $0xc0] sm:$0xff] }
  0xf4   : > { %991 = vmatprep.mubr.bf16.mxu1 %v8748_v0  ;;  %1164 = vmatpush1.bf16.msra.mxu1 %v7250_v2  ;;  %v7301_v53 = vcombine.high %v1484_v47, %v1488_v48  ;;  %v7300_v56 = vcombine.low %v1484_v47, %v1488_v48  ;;  %v7309_v2 = vcombine.high %v1492_v59, %v1496_v61  ;;  %v1536_v47 = vld [vmem:[#allocation9 + $0x260] sm:$0xff]  ;;  %v1541_v59 = vld [vmem:[#allocation9 + $0x288] sm:$0xff] }
  0xf5   : > { %1165 = vmatprep.subr.bf16.mxu1 %v7259_v5  ;;  %v1497_v5 = vld [vmem:[#allocation9 + $0x128] sm:$0xff] }
  0xf6   : > { %1053 = vmatpush1.bf16.msra.mxu0 %v7256_v55  ;;  %v7295_v55 = vcombine.high %v1477_v51, %v1481_v52  ;;  %v1533_v52 = vld [vmem:[#allocation9 + $0x248] sm:$0xff] }
  0xf7   : > { %1054 = vmatprep.subr.bf16.mxu0 %v7265_v57  ;;  %v1485_v57 = vld [vmem:[#allocation9 + $0xc8] sm:$0xff] }
  0xf8   : > { %1166 = vmatpush1.bf16.msra.mxu1 %v7258_v13  ;;  %v7302_v7 = vcombine.low %v1485_v57, %v1489_v58  ;;  %v1512_v13 = vld [vmem:[#allocation9 + $0x1a0] sm:$0xff]  ;;  %v1545_v61 = vld [vmem:[#allocation9 + $0x2a8] sm:$0xff] }
  0xf9   : > { %879 = vmatmul.mubr.bf16.gmra.mrb[12].mxu0 %v9072_v60  ;;  %1167 = vmatprep.subr.bf16.mxu1 %v7267_v14 }
  0xfa   : > { %888 = vmatprep.mubr.bf16.mxu0 %v8748_v0  ;;  %1055 = vmatpush1.bf16.msra.mxu0 %v7264_v1  ;;  %v1504_v1 = vld [vmem:[#allocation9 + $0x160] sm:$0xff] }
  0xfb   : > { %1056 = vmatprep.subr.bf16.mxu0 %v7273_v3  ;;  %992 = vmatmul.mubr.bf16.gmra.mrb[12].mxu1 %v9072_v60  ;;  %v1493_v3 = vld [vmem:[#allocation9 + $0x108] sm:$0xff]  ;;  %v7317_v8 = vcombine.high %v1500_v63, %v1504_v1 }
  0xfc   : > { %1001 = vmatprep.mubr.bf16.mxu1 %v8748_v0  ;;  %1168 = vmatpush1.bf16.msra.mxu1 %v7266_v19  ;;  %v7311_v9 = vcombine.high %v1493_v3, %v1497_v5  ;;  %v7310_v14 = vcombine.low %v1493_v3, %v1497_v5  ;;  %v1513_v19 = vld [vmem:[#allocation9 + $0x1a8] sm:$0xff] }
  0xfd   : > { %1169 = vmatprep.subr.bf16.mxu1 %v7275_v20  ;;  %v1516_v20 = vld [vmem:[#allocation9 + $0x1c0] sm:$0xff]  ;;  %v7327_v25 = vcombine.high %v1509_v18, %v1513_v19  ;;  %v1549_v5 = vld [vmem:[#allocation9 + $0x2c8] sm:$0xff] }
  0xfe   : > { %1057 = vmatpush1.bf16.msra.mxu0 %v7272_v12  ;;  %v1508_v12 = vld [vmem:[#allocation9 + $0x180] sm:$0xff]  ;;  %v7333_v29 = vcombine.high %v1516_v20, %v1520_v21  ;;  %v7332_v40 = vcombine.low %v1516_v20, %v1520_v21  ;;  %v1565_v20 = vld [vmem:[#allocation9 + $0x348] sm:$0xff] }
  0xff   : > { %4574 = vmatprep.subr.bf16.mxu0 %v7277_v15  ;;  %v7319_v15 = vcombine.high %v1501_v10, %v1505_v11  ;;  %v7325_v17 = vcombine.high %v1508_v12, %v1512_v13  ;;  %v7324_v24 = vcombine.low %v1508_v12, %v1512_v13  ;;  %v1557_v12 = vld [vmem:[#allocation9 + $0x308] sm:$0xff] }
 0x100   : > { %1170 = vmatpush1.bf16.msra.mxu1 %v7274_v26  ;;  %v1517_v26 = vld [vmem:[#allocation9 + $0x1c8] sm:$0xff] }
 0x101   : > { %889 = vmatmul.mubr.bf16.gmra.mrb[16].mxu0 %v9086_v16  ;;  %5026 = vmatprep.subr.bf16.mxu1 %v7279_v27  ;;  %v1521_v27 = vld [vmem:[#allocation9 + $0x1e8] sm:$0xff] }
 0x102   : > { %898 = vmatprep.mubr.bf16.mxu0 %v8748_v0  ;;  %v7334_v48 = vcombine.low %v1517_v26, %v1521_v27  ;;  %v1561_v13 = vld [vmem:[#allocation9 + $0x328] sm:$0xff] }
 0x103   : > { %1002 = vmatmul.mubr.bf16.gmra.mrb[16].mxu1 %v9086_v16  ;;  %v1569_v21 = vld [vmem:[#allocation9 + $0x368] sm:$0xff] }
 0x104   : > { %1011 = vmatprep.mubr.bf16.mxu1 %v8748_v0 }
 0x109   : > { %899 = vmatmul.mubr.bf16.gmra.mrb[20].mxu0 %v9094_v28 }
 0x10a   : > { %908 = vmatprep.mubr.bf16.mxu0 %v8748_v0 }
 0x10b   : > { %1012 = vmatmul.mubr.bf16.gmra.mrb[20].mxu1 %v9094_v28 }
 0x10c   : > { %1021 = vmatprep.mubr.bf16.mxu1 %v8748_v0 }
 0x111   : > { %909 = vmatmul.mubr.bf16.gmra.mrb[24].mxu0 %v9102_v31 }
 0x112   : > { %918 = vmatprep.mubr.bf16.mxu0 %v8748_v0 }
 0x113   : > { %1022 = vmatmul.mubr.bf16.gmra.mrb[24].mxu1 %v9102_v31 }
 0x114   : > { %1031 = vmatprep.mubr.bf16.mxu1 %v8748_v0 }
 0x119   : > { %919 = vmatmul.mubr.bf16.gmra.mrb[28].mxu0 %v9110_v34 }
 0x11a   : > { %1074 = vmatprep.mubr.bf16.mxu0 %v8748_v0 }
 0x11b   : > { %1032 = vmatmul.mubr.bf16.gmra.mrb[28].mxu1 %v9110_v34 }
 0x11c   : > { %1187 = vmatprep.mubr.bf16.mxu1 %v8748_v0 }
 0x121   : > { %1075 = vmatmul.mubr.bf16.vlgmr.msra.gmra.mrb[32].mxu0 %v9050_v4 }
 0x122   : > { %1084 = vmatprep.mubr.bf16.mxu0 %v8748_v0  ;;  %4575 = vmatpush1.bf16.msra.mxu0 %v7276_v37  ;;  %v7326_v37 = vcombine.low %v1509_v18, %v1513_v19  ;;  %v7375_v18 = vcombine.high %v1557_v12, %v1561_v13 }
 0x123   : > { %4576 = vmatprep.subr.bf16.mxu0 %v7285_v38  ;;  %1188 = vmatmul.mubr.bf16.vlgmr.msra.gmra.mrb[32].mxu1 %v9050_v4  ;;  %v7303_v4 = vcombine.high %v1485_v57, %v1489_v58  ;;  %v7404_v38 = vcombine.low %v9134_v30, %v9136_v32 }
 0x124   : > { %5027 = vmatpush1.bf16.msra.mxu1 %v7278_v46  ;;  %1197 = vmatprep.mubr.bf16.mxu1 %v8748_v0  ;;  %v1532_v46 = vld [vmem:[#allocation9 + $0x240] sm:$0xff] }
 0x125   : > { %5028 = vmatprep.subr.bf16.mxu1 %v7287_v49  ;;  %v7340_v49 = vcombine.low %v1524_v33, %v1528_v35  ;;  %v7349_v51 = vcombine.high %v1532_v46, %v1536_v47  ;;  %v1577_v33 = vld [vmem:[#allocation9 + $0x3a8] sm:$0xff]  ;;  %v1580_v35 = vld [vmem:[#allocation9 + $0x3c0] sm:$0xff] }
 0x126   : > { %4577 = vmatpush1.bf16.msra.mxu0 %v7284_v42  ;;  %v7335_v42 = vcombine.high %v1517_v26, %v1521_v27  ;;  %v7383_v26 = vcombine.high %v1565_v20, %v1569_v21 }
 0x127   : > { %4578 = vmatprep.subr.bf16.mxu0 %v7293_v45  ;;  %v1529_v45 = vld [vmem:[#allocation9 + $0x228] sm:$0xff] }
 0x128   : > { %5029 = vmatpush1.bf16.msra.mxu1 %v7286_v54  ;;  %v1540_v54 = vld [vmem:[#allocation9 + $0x280] sm:$0xff] }
 0x129   : > { %1085 = vmatmul.mubr.bf16.gmra.mrb[36].mxu0 %v9056_v22  ;;  %5030 = vmatprep.subr.bf16.mxu1 %v7295_v55  ;;  %v1544_v55 = vld [vmem:[#allocation9 + $0x2a0] sm:$0xff] }
 0x12a   : > { %1094 = vmatprep.mubr.bf16.mxu0 %v8748_v0  ;;  %4579 = vmatpush1.bf16.msra.mxu0 %v7292_v50  ;;  %v7343_v50 = vcombine.high %v1525_v44, %v1529_v45  ;;  %v7357_v58 = vcombine.high %v1540_v54, %v1544_v55 }
 0x12b   : > { %4580 = vmatprep.subr.bf16.mxu0 %v7301_v53  ;;  %1198 = vmatmul.mubr.bf16.gmra.mrb[36].mxu1 %v9056_v22  ;;  %v7316_v22 = vcombine.low %v1500_v63, %v1504_v1  ;;  %v1537_v53 = vld [vmem:[#allocation9 + $0x268] sm:$0xff]  ;;  %v7356_v1 = vcombine.low %v1540_v54, %v1544_v55  ;;  %v9172_v54 = vld [vmem:[#allocation8] sm:$0xff] }
 0x12c   : > { %5031 = vmatpush1.bf16.msra.mxu1 %v7294_v62  ;;  %1207 = vmatprep.mubr.bf16.mxu1 %v8748_v0  ;;  %v7351_v57 = vcombine.high %v1533_v52, %v1537_v53  ;;  %v1548_v62 = vld [vmem:[#allocation9 + $0x2c0] sm:$0xff]  ;;  %v7350_v63 = vcombine.low %v1533_v52, %v1537_v53 }
 0x12d   : > { %5032 = vmatprep.subr.bf16.mxu1 %v7303_v4  ;;  %v1552_v4 = vld [vmem:[#allocation9 + $0x2e0] sm:$0xff] }
 0x12e   : > { %4581 = vmatpush1.bf16.msra.mxu0 %v7300_v56  ;;  %v7348_v56 = vcombine.low %v1532_v46, %v1536_v47  ;;  %v7365_v3 = vcombine.high %v1548_v62, %v1552_v4  ;;  %v1585_v46 = vld [vmem:[#allocation9 + $0x3e8] sm:$0xff] }
 0x12f   : > { %4582 = vmatprep.subr.bf16.mxu0 %v7309_v2  ;;  %v7359_v2 = vcombine.high %v1541_v59, %v1545_v61 }
 0x130   : > { %5033 = vmatpush1.bf16.msra.mxu1 %v7302_v7  ;;  %v1556_v7 = vld [vmem:[#allocation9 + $0x300] sm:$0xff] }
 0x131   : > { %1095 = vmatmul.mubr.bf16.gmra.mrb[40].mxu0 %v9064_v41  ;;  %5034 = vmatprep.subr.bf16.mxu1 %v7311_v9  ;;  %v7364_v9 = vcombine.low %v1548_v62, %v1552_v4 }
 0x132   : > { %1104 = vmatprep.mubr.bf16.mxu0 %v8748_v0  ;;  %4583 = vmatpush1.bf16.msra.mxu0 %v7308_v6  ;;  %v1553_v6 = vld [vmem:[#allocation9 + $0x2e8] sm:$0xff] }
 0x133   : > { %4584 = vmatprep.subr.bf16.mxu0 %v7317_v8  ;;  %1208 = vmatmul.mubr.bf16.gmra.mrb[40].mxu1 %v9064_v41  ;;  %v9138_v41 = vld [vmem:[#allocation9 + $0x408] sm:$0xff]  ;;  %v1560_v8 = vld [vmem:[#allocation9 + $0x320] sm:$0xff]  ;;  %v7367_v10 = vcombine.high %v1549_v5, %v1553_v6 }
 0x134   : > { %5035 = vmatpush1.bf16.msra.mxu1 %v7310_v14  ;;  %1217 = vmatprep.mubr.bf16.mxu1 %v8748_v0  ;;  %v7406_v39 = vcombine.low %v9138_v41, %v9140_v36  ;;  %v7373_v11 = vcombine.high %v1556_v7, %v1560_v8  ;;  %v1564_v14 = vld [vmem:[#allocation9 + $0x340] sm:$0xff] }
 0x135   : > { %5036 = vmatprep.subr.bf16.mxu1 %v7319_v15  ;;  %v7366_v15 = vcombine.low %v1549_v5, %v1553_v6  ;;  %v1596_v6 = vld [vmem:[#allocation9 + $0x440] sm:$0xff] }
 0x136   : > { %4585 = vmatpush1.bf16.msra.mxu0 %v7316_v22  ;;  %v1568_v22 = vld [vmem:[#allocation9 + $0x360] sm:$0xff] }
 0x137   : > { %4586 = vmatprep.subr.bf16.mxu0 %v7325_v17  ;;  %v7372_v17 = vcombine.low %v1556_v7, %v1560_v8  ;;  %v7381_v19 = vcombine.high %v1564_v14, %v1568_v22 }
 0x138   : > { %5037 = vmatpush1.bf16.msra.mxu1 %v7318_v23  ;;  %v1572_v23 = vld [vmem:[#allocation9 + $0x380] sm:$0xff] }
 0x139   : > { %1105 = vmatmul.mubr.bf16.gmra.mrb[44].mxu0 %v9072_v60  ;;  %5038 = vmatprep.subr.bf16.mxu1 %v7327_v25  ;;  %v7380_v25 = vcombine.low %v1564_v14, %v1568_v22 }
 0x13a   : > { %1114 = vmatprep.mubr.bf16.mxu0 %v8748_v0  ;;  %4587 = vmatpush1.bf16.msra.mxu0 %v7324_v24  ;;  %v1576_v24 = vld [vmem:[#allocation9 + $0x3a0] sm:$0xff] }
 0x13b   : > { %4588 = vmatprep.subr.bf16.mxu0 %v7333_v29  ;;  %1218 = vmatmul.mubr.bf16.gmra.mrb[44].mxu1 %v9072_v60  ;;  %v7342_v60 = vcombine.low %v1525_v44, %v1529_v45  ;;  %v7389_v27 = vcombine.high %v1572_v23, %v1576_v24  ;;  %v1573_v29 = vld [vmem:[#allocation9 + $0x388] sm:$0xff] }
 0x13c   : > { %5039 = vmatpush1.bf16.msra.mxu1 %v7326_v37  ;;  %1227 = vmatprep.mubr.bf16.mxu1 %v8748_v0  ;;  %v1584_v37 = vld [vmem:[#allocation9 + $0x3e0] sm:$0xff]  ;;  %v1581_v45 = vld [vmem:[#allocation9 + $0x3c8] sm:$0xff]  ;;  %v7390_v47 = vcombine.low %v1573_v29, %v1577_v33 }
 0x13d   : > { %5040 = vmatprep.subr.bf16.mxu1 %v7335_v42  ;;  %v7388_v42 = vcombine.low %v1572_v23, %v1576_v24  ;;  %v7397_v44 = vcombine.high %v1580_v35, %v1584_v37  ;;  %v9210_v23 = vld [vmem:[#allocation9 + $0x4a0] sm:$0xff] }
 0x13e   : > { %4589 = vmatpush1.bf16.msra.mxu0 %v7332_v40  ;;  %v7382_v40 = vcombine.low %v1565_v20, %v1569_v21  ;;  %v9208_v21 = vld [vmem:[#allocation9 + $0x480] sm:$0xff] }
 0x13f   : > { %4590 = vmatprep.subr.bf16.mxu0 %v7341_v43  ;;  %v7391_v43 = vcombine.high %v1573_v29, %v1577_v33  ;;  %v9216_v29 = vld [vmem:[#allocation9 + $0x488] sm:$0xff] }
 0x140   : > { %5041 = vmatpush1.bf16.msra.mxu1 %v7334_v48  ;;  %v7396_v48 = vcombine.low %v1580_v35, %v1584_v37  ;;  %v9218_v33 = vld [vmem:[#allocation9 + $0x4a8] sm:$0xff] }
 0x141   : > { %1115 = vmatmul.mubr.bf16.gmra.mrb[48].mxu0 %v9086_v16  ;;  %5042 = vmatprep.subr.bf16.mxu1 %v7343_v50  ;;  %v7407_v50 = vcombine.high %v9138_v41, %v9140_v36 }
 0x142   : > { %1124 = vmatprep.mubr.bf16.mxu0 %v8748_v0  ;;  %4591 = vmatpush1.bf16.msra.mxu0 %v7340_v49  ;;  %v7405_v49 = vcombine.high %v9134_v30, %v9136_v32  ;;  %v9239_v30 = vld [vmem:[#allocation9 + $0x4e0] sm:$0xff] }
 0x143   : > { %4592 = vmatprep.subr.bf16.mxu0 %v7349_v51  ;;  %1228 = vmatmul.mubr.bf16.gmra.mrb[48].mxu1 %v9086_v16  ;;  %v7358_v16 = vcombine.low %v1541_v59, %v1545_v61  ;;  %v10952_v51 = vlaneseq }
 0x144   : > { %5043 = vmatpush1.bf16.msra.mxu1 %v7342_v60  ;;  %1237 = vmatprep.mubr.bf16.mxu1 %v8748_v0 }
 0x145   : > { %5044 = vmatprep.subr.bf16.mxu1 %v7351_v57  ;;  %v9167_v52 = vshrl.u32 %v10952_v51, 7 }
 0x146   : > { %4593 = vmatpush1.bf16.msra.mxu0 %v7348_v56 }
 0x147   : > { %4594 = vmatprep.subr.bf16.mxu0 %v7357_v58  ;;  %11074 = vst [vmem:[#allocation20_spill] sm:$0xff] %v9167_v52  ;;  %v9170_v53 = vsub.s32 0, %v9167_v52  ;;  %v9187_v59 = vsub.s32 2, %v9167_v52  ;;  %v9191_v4 = vsub.s32 3, %v9167_v52 }
 0x148   : > { %5045 = vmatpush1.bf16.msra.mxu1 %v7350_v63 }
 0x149   : > { %1125 = vmatmul.mubr.bf16.gmra.mrb[52].mxu0 %v9094_v28  ;;  %5046 = vmatprep.subr.bf16.mxu1 %v7359_v2  ;;  %11075 = vst [vmem:[#allocation21_spill] sm:$0xff] %v9170_v53  ;;  %v9179_v55 = vrot.slane %v9172_v54, %v9170_v53  ;;  %11077 = vst [vmem:[#allocation23_spill] sm:$0xff] %v9187_v59  ;;  %v9197_v7 = vrot.slane %v9172_v54, %v9187_v59 }
 0x14a   : > { %1134 = vmatprep.mubr.bf16.mxu0 %v8748_v0  ;;  %4595 = vmatpush1.bf16.msra.mxu0 %v7356_v1  ;;  %11078 = vst [vmem:[#allocation24_spill] sm:$0xff] %v9191_v4 }
 0x14b   : > { %4596 = vmatprep.subr.bf16.mxu0 %v7365_v3  ;;  %1238 = vmatmul.mubr.bf16.gmra.mrb[52].mxu1 %v9094_v28  ;;  %v7374_v28 = vcombine.low %v1557_v12, %v1561_v13  ;;  %v9201_v12 = vrot.slane %v9172_v54, %v9191_v4  ;;  %v9511_v4 = vld [vmem:[#allocation9 + $0x780] sm:$0xff] }
 0x14c   : > { %5047 = vmatpush1.bf16.msra.mxu1 %v7358_v16  ;;  %1247 = vmatprep.mubr.bf16.mxu1 %v8748_v0 }
 0x14d   : > { %5048 = vmatprep.subr.bf16.mxu1 %v7367_v10  ;;  %v1597_v10 = vld [vmem:[#allocation9 + $0x448] sm:$0xff] }
 0x14e   : > { %4597 = vmatpush1.bf16.msra.mxu0 %v7364_v9  ;;  %v1600_v9 = vld [vmem:[#allocation9 + $0x460] sm:$0xff] }
 0x14f   : > { %4598 = vmatprep.subr.bf16.mxu0 %v7373_v11  ;;  %v1601_v11 = vld [vmem:[#allocation9 + $0x468] sm:$0xff] }
 0x150   : > { %5049 = vmatpush1.bf16.msra.mxu1 %v7366_v15  ;;  %v7415_v20 = vcombine.high %v1597_v10, %v1601_v11 }
 0x151   : > { %1135 = vmatmul.mubr.bf16.gmra.mrb[56].mxu0 %v9102_v31  ;;  %5050 = vmatprep.subr.bf16.mxu1 %v7375_v18 }
 0x152   : > { %1144 = vmatprep.mubr.bf16.mxu0 %v8748_v0  ;;  %4599 = vmatpush1.bf16.msra.mxu0 %v7372_v17 }
 0x153   : > { %4600 = vmatprep.subr.bf16.mxu0 %v7381_v19  ;;  %1248 = vmatmul.mubr.bf16.gmra.mrb[56].mxu1 %v9102_v31  ;;  %v7399_v31 = vcombine.high %v1581_v45, %v1585_v46  ;;  %v7413_v19 = vcombine.high %v1596_v6, %v1600_v9 }
 0x154   : > { %5051 = vmatpush1.bf16.msra.mxu1 %v7374_v28  ;;  %1257 = vmatprep.mubr.bf16.mxu1 %v8748_v0  ;;  %v7398_v0 = vcombine.low %v1581_v45, %v1585_v46 }
 0x155   : > { %5052 = vmatprep.subr.bf16.mxu1 %v7383_v26 }
 0x156   : > { %4601 = vmatpush1.bf16.msra.mxu0 %v7380_v25 }
 0x157   : > { %4602 = vmatprep.subr.bf16.mxu0 %v7389_v27  ;;  %v7412_v27 = vcombine.low %v1596_v6, %v1600_v9 }
 0x158   : > { %5053 = vmatpush1.bf16.msra.mxu1 %v7382_v40 }
 0x159   : > { %1145 = vmatmul.mubr.bf16.gmra.mrb[60].mxu0 %v9110_v34  ;;  %5054 = vmatprep.subr.bf16.mxu1 %v7391_v43  ;;  %v7414_v43 = vcombine.low %v1597_v10, %v1601_v11  ;;  %v9262_v11 = vld [vmem:[#allocation9 + $0x500] sm:$0xff] }
 0x15a   : > { %4603 = vmatpush1.bf16.msra.mxu0 %v7388_v42 }
 0x15b   : > { %4604 = vmatprep.subr.bf16.mxu0 %v7397_v44  ;;  %1258 = vmatmul.mubr.bf16.gmra.mrb[60].mxu1 %v9110_v34  ;;  %v9175_v34 = vsub.s32 1, %v9167_v52 }
 0x15c   : > { %5055 = vmatpush1.bf16.msra.mxu1 %v7390_v47 }
 0x15d   : > { %5056 = vmatprep.subr.bf16.mxu1 %v7399_v31  ;;  %11076 = vst [vmem:[#allocation22_spill] sm:$0xff] %v9175_v34  ;;  %v9183_v60 = vrot.slane %v9172_v54, %v9175_v34  ;;  %v9513_v34 = vld [vmem:[#allocation9 + $0x7a0] sm:$0xff] }
 0x15e   : > { %4605 = vmatpush1.bf16.msra.mxu0 %v7396_v48  ;;  %v7421_v48 = vcombine.high %v9208_v21, %v9210_v23 }
 0x15f   : > { %4687 = vmatprep.subr.bf16.mxu0 %v7405_v49 }
 0x160   : > { %5057 = vmatpush1.bf16.msra.mxu1 %v7398_v0 }
 0x161   : > { %5139 = vmatprep.subr.bf16.mxu1 %v7407_v50 }
 0x1b4   : > { %v850_v56 = vpop.f32.mrb[0].mxu0  ;;  %v963_v15 = vpop.f32.mrb[0].mxu1 }
 0x1b5   : > { %v851_v57 = vadd.f32 %v850_v56, %v9179_v55  ;;  %v852_v58 = vpop.f32.mrb[1].mxu0  ;;  %v964_v24 = vadd.f32 %v963_v15, %v9197_v7  ;;  %v965_v28 = vpop.f32.mrb[1].mxu1  ;;  %v7423_v56 = vcombine.high %v9216_v29, %v9218_v33 }
 0x1b6   : > { %v853_v61 = vadd.f32 %v852_v58, %v9183_v60  ;;  %v854_v62 = vpop.f32.mrb[2].mxu0  ;;  %v966_v35 = vadd.f32 %v965_v28, %v9201_v12  ;;  %v967_v37 = vpop.f32.mrb[2].mxu1 }
 0x1b7   : > { %v855_v63 = vadd.f32 %v854_v62, %v9179_v55  ;;  %v856_v1 = vpop.f32.mrb[3].mxu0  ;;  %v1268_v3 = vmax.f32 %v851_v57, 0.0  ;;  %v1270_v44 = vmax.f32 %v964_v24, 0.0  ;;  %v968_v45 = vadd.f32 %v967_v37, %v9197_v7  ;;  %v969_v46 = vpop.f32.mrb[3].mxu1  ;;  %v9237_v57 = vld [vmem:[#allocation9 + $0x4c0] sm:$0xff] }
 0x1b8   : > { %v857_v2 = vadd.f32 %v856_v1, %v9183_v60  ;;  %v1269_v8 = vmax.f32 %v853_v61, 0.0  ;;  %v1271_v31 = vmax.f32 %v966_v35, 0.0  ;;  %v970_v49 = vadd.f32 %v969_v46, %v9201_v12 }
 0x1b9   : > { %v1276_v5 = vmax.f32 %v855_v63, 0.0  ;;  %v1278_v32 = vmax.f32 %v968_v45, 0.0  ;;  %v7420_v62 = vcombine.low %v9208_v21, %v9210_v23  ;;  %v7422_v63 = vcombine.low %v9216_v29, %v9218_v33  ;;  %v9272_v21 = vld [vmem:[#allocation9 + $0x508] sm:$0xff] }
 0x1ba   : > { %v1277_v16 = vmax.f32 %v857_v2, 0.0  ;;  %v1279_v58 = vmax.f32 %v970_v49, 0.0  ;;  %v9274_v23 = vld [vmem:[#allocation9 + $0x528] sm:$0xff] }
 0x1bb   : > { %v9203_v13 = vpack.c.bf16 %v1276_v5, %v1268_v3  ;;  %v9251_v1 = vpack.c.bf16 %v1278_v32, %v1270_v44  ;;  %v7429_v5 = vcombine.high %v9237_v57, %v9239_v30  ;;  %v7439_v46 = vcombine.high %v9272_v21, %v9274_v23 }
 0x1bc   : > { %v9205_v14 = vpack.c.bf16 %v1277_v16, %v1269_v8  ;;  %v860_v22 = vpop.f32.mrb[4].mxu0  ;;  %v9257_v6 = vpack.c.bf16 %v1279_v58, %v1271_v31 }
 0x1bd   : > { %v861_v17 = vadd.f32 %v860_v22, %v9179_v55  ;;  %v862_v18 = vpop.f32.mrb[5].mxu0  ;;  %11079 = vst [vmem:[#allocation25_spill] sm:$0xff] %v9251_v1  ;;  %v9264_v22 = vld [vmem:[#allocation9 + $0x520] sm:$0xff] }
 0x1be   : > { %v863_v25 = vadd.f32 %v862_v18, %v9183_v60  ;;  %v864_v26 = vpop.f32.mrb[6].mxu0  ;;  %4606 = vmatprep.mubr.bf16.mxu0 %v9205_v14  ;;  %5058 = vmatprep.mubr.bf16.mxu1 %v9205_v14  ;;  %11080 = vst [vmem:[#allocation26_spill] sm:$0xff] %v9257_v6  ;;  %v973_v8 = vpop.f32.mrb[4].mxu1  ;;  %v7436_v32 = vcombine.low %v9262_v11, %v9264_v22 }
 0x1bf   : > { %v865_v40 = vadd.f32 %v864_v26, %v9179_v55  ;;  %v866_v42 = vpop.f32.mrb[7].mxu0  ;;  %4607 = vmatmul.mubr.bf16.vlgmr.msra.gmra.mrb[64].mxu0 %v9203_v13  ;;  %5059 = vmatmul.mubr.bf16.vlgmr.msra.gmra.mrb[64].mxu1 %v9203_v13  ;;  %v1284_v0 = vmax.f32 %v861_v17, 0.0  ;;  %v974_v15 = vadd.f32 %v973_v8, %v9197_v7  ;;  %v975_v17 = vpop.f32.mrb[5].mxu1 }
 0x1c0   : > { %v867_v47 = vadd.f32 %v866_v42, %v9183_v60  ;;  %4688 = vmatpush1.bf16.msra.mxu0 %v7404_v38  ;;  %5140 = vmatpush1.bf16.msra.mxu1 %v7406_v39  ;;  %v1285_v41 = vmax.f32 %v863_v25, 0.0  ;;  %v9241_v38 = vld [vmem:[#allocation9 + $0x4c8] sm:$0xff]  ;;  %v976_v24 = vadd.f32 %v975_v17, %v9201_v12  ;;  %v977_v28 = vpop.f32.mrb[6].mxu1 }
 0x1c1   : > { %v1292_v50 = vmax.f32 %v865_v40, 0.0  ;;  %4689 = vmatprep.subr.bf16.mxu0 %v7413_v19  ;;  %5141 = vmatprep.subr.bf16.mxu1 %v7415_v20  ;;  %v9243_v39 = vld [vmem:[#allocation9 + $0x4e8] sm:$0xff]  ;;  %v7428_v20 = vcombine.low %v9237_v57, %v9239_v30  ;;  %v1286_v29 = vmax.f32 %v974_v15, 0.0  ;;  %v978_v33 = vadd.f32 %v977_v28, %v9197_v7  ;;  %v979_v35 = vpop.f32.mrb[7].mxu1 }
 0x1c2   : > { %v1293_v36 = vmax.f32 %v867_v47, 0.0  ;;  %v7431_v10 = vcombine.high %v9241_v38, %v9243_v39  ;;  %v7437_v40 = vcombine.high %v9262_v11, %v9264_v22  ;;  %v1287_v42 = vmax.f32 %v976_v24, 0.0  ;;  %v9289_v47 = vld [vmem:[#allocation9 + $0x540] sm:$0xff] }
 0x1c3   : > { %v9245_v61 = vpack.c.bf16 %v1292_v50, %v1284_v0  ;;  %v1294_v31 = vmax.f32 %v978_v33, 0.0  ;;  %v9293_v50 = vld [vmem:[#allocation9 + $0x548] sm:$0xff] }
 0x1c4   : > { %v9253_v2 = vpack.c.bf16 %v1293_v36, %v1285_v41  ;;  %4690 = vmatpush1.bf16.msra.mxu0 %v7412_v27  ;;  %v870_v3 = vpop.f32.mrb[8].mxu0  ;;  %5142 = vmatpush1.bf16.msra.mxu1 %v7414_v43  ;;  %v7430_v27 = vcombine.low %v9241_v38, %v9243_v39  ;;  %v980_v43 = vadd.f32 %v979_v35, %v9201_v12 }
 0x1c5   : > { %v871_v16 = vadd.f32 %v870_v3, %v9179_v55  ;;  %v872_v9 = vpop.f32.mrb[9].mxu0  ;;  %4691 = vmatprep.subr.bf16.mxu0 %v7421_v48  ;;  %5143 = vmatprep.subr.bf16.mxu1 %v7423_v56  ;;  %v9291_v48 = vld [vmem:[#allocation9 + $0x560] sm:$0xff]  ;;  %v9295_v56 = vld [vmem:[#allocation9 + $0x568] sm:$0xff]  ;;  %v7438_v41 = vcombine.low %v9272_v21, %v9274_v23  ;;  %v9303_v36 = vpack.c.bf16 %v1294_v31, %v1286_v29 }
 0x1c6   : > { %v873_v18 = vadd.f32 %v872_v9, %v9183_v60  ;;  %v874_v19 = vpop.f32.mrb[10].mxu0  ;;  %4616 = vmatprep.mubr.bf16.mxu0 %v9253_v2  ;;  %5068 = vmatprep.mubr.bf16.mxu1 %v9253_v2  ;;  %v1295_v57 = vmax.f32 %v980_v43, 0.0  ;;  %v7445_v58 = vcombine.high %v9289_v47, %v9291_v48  ;;  %v7447_v8 = vcombine.high %v9293_v50, %v9295_v56  ;;  %v9316_v9 = vld [vmem:[#allocation9 + $0x5a0] sm:$0xff]  ;;  %v9345_v31 = vld [vmem:[#allocation9 + $0x5c8] sm:$0xff] }
 0x1c7   : > { %v875_v25 = vadd.f32 %v874_v19, %v9179_v55  ;;  %v876_v26 = vpop.f32.mrb[11].mxu0  ;;  %4617 = vmatmul.mubr.bf16.gmra.mrb[68].mxu0 %v9245_v61  ;;  %5069 = vmatmul.mubr.bf16.gmra.mrb[68].mxu1 %v9245_v61  ;;  %v1300_v44 = vmax.f32 %v871_v16, 0.0  ;;  %11082 = vst [vmem:[#allocation28_spill] sm:$0xff] %v9303_v36  ;;  %v9314_v16 = vld [vmem:[#allocation9 + $0x580] sm:$0xff]  ;;  %v7444_v17 = vcombine.low %v9289_v47, %v9291_v48  ;;  %v9326_v19 = vld [vmem:[#allocation9 + $0x5a8] sm:$0xff] }
 0x1c8   : > { %v877_v37 = vadd.f32 %v876_v26, %v9183_v60  ;;  %4692 = vmatpush1.bf16.msra.mxu0 %v7420_v62  ;;  %5144 = vmatpush1.bf16.msra.mxu1 %v7422_v63  ;;  %v1301_v49 = vmax.f32 %v873_v18, 0.0  ;;  %v9309_v62 = vpack.c.bf16 %v1295_v57, %v1287_v42  ;;  %v983_v63 = vpop.f32.mrb[8].mxu1  ;;  %v9324_v18 = vld [vmem:[#allocation9 + $0x588] sm:$0xff]  ;;  %v7446_v28 = vcombine.low %v9293_v50, %v9295_v56 }
 0x1c9   : > { %v1308_v45 = vmax.f32 %v875_v25, 0.0  ;;  %4693 = vmatprep.subr.bf16.mxu0 %v7429_v5  ;;  %5145 = vmatprep.subr.bf16.mxu1 %v7431_v10  ;;  %v984_v10 = vadd.f32 %v983_v63, %v9197_v7  ;;  %v985_v11 = vpop.f32.mrb[9].mxu1  ;;  %v7453_v33 = vcombine.high %v9314_v16, %v9316_v9  ;;  %v7455_v43 = vcombine.high %v9324_v18, %v9326_v19 }
 0x1ca   : > { %v1309_v0 = vmax.f32 %v877_v37, 0.0  ;;  %11083 = vst [vmem:[#allocation29_spill] sm:$0xff] %v9309_v62  ;;  %v987_v21 = vpop.f32.mrb[10].mxu1  ;;  %v7452_v56 = vcombine.low %v9314_v16, %v9316_v9  ;;  %v7454_v57 = vcombine.low %v9324_v18, %v9326_v19  ;;  %v9366_v9 = vld [vmem:[#allocation9 + $0x600] sm:$0xff]  ;;  %v9376_v19 = vld [vmem:[#allocation9 + $0x608] sm:$0xff] }
 0x1cb   : > { %v9297_v30 = vpack.c.bf16 %v1308_v45, %v1300_v44  ;;  %v1302_v25 = vmax.f32 %v984_v10, 0.0  ;;  %v988_v26 = vadd.f32 %v987_v21, %v9197_v7  ;;  %v9341_v44 = vld [vmem:[#allocation9 + $0x5c0] sm:$0xff] }
 0x1cc   : > { %v9305_v38 = vpack.c.bf16 %v1309_v0, %v1301_v49  ;;  %4694 = vmatpush1.bf16.msra.mxu0 %v7428_v20  ;;  %v880_v39 = vpop.f32.mrb[12].mxu0  ;;  %5146 = vmatpush1.bf16.msra.mxu1 %v7430_v27  ;;  %v986_v20 = vadd.f32 %v985_v11, %v9201_v12  ;;  %v989_v27 = vpop.f32.mrb[11].mxu1  ;;  %v9343_v45 = vld [vmem:[#allocation9 + $0x5e0] sm:$0xff]  ;;  %v9347_v49 = vld [vmem:[#allocation9 + $0x5e8] sm:$0xff] }
 0x1cd   : > { %11081 = vst [vmem:[#allocation27_spill] sm:$0xff] %v9297_v30  ;;  %v881_v3 = vadd.f32 %v880_v39, %v9179_v55  ;;  %v882_v5 = vpop.f32.mrb[13].mxu0  ;;  %4695 = vmatprep.subr.bf16.mxu0 %v7437_v40  ;;  %5147 = vmatprep.subr.bf16.mxu1 %v7439_v46  ;;  %v990_v37 = vadd.f32 %v989_v27, %v9201_v12  ;;  %v1310_v46 = vmax.f32 %v988_v26, 0.0  ;;  %v9368_v10 = vld [vmem:[#allocation9 + $0x620] sm:$0xff] }
 0x1ce   : > { %v883_v22 = vadd.f32 %v882_v5, %v9183_v60  ;;  %v884_v15 = vpop.f32.mrb[14].mxu0  ;;  %4626 = vmatprep.mubr.bf16.mxu0 %v9305_v38  ;;  %5078 = vmatprep.mubr.bf16.mxu1 %v9305_v38  ;;  %v1303_v35 = vmax.f32 %v986_v20, 0.0  ;;  %v7463_v16 = vcombine.high %v9345_v31, %v9347_v49  ;;  %v7460_v18 = vcombine.low %v9341_v44, %v9343_v45  ;;  %v9378_v20 = vld [vmem:[#allocation9 + $0x628] sm:$0xff] }
 0x1cf   : > { %v885_v23 = vadd.f32 %v884_v15, %v9179_v55  ;;  %v886_v24 = vpop.f32.mrb[15].mxu0  ;;  %4627 = vmatmul.mubr.bf16.gmra.mrb[72].mxu0 %v9297_v30  ;;  %5079 = vmatmul.mubr.bf16.gmra.mrb[72].mxu1 %v9297_v30  ;;  %v1316_v40 = vmax.f32 %v881_v3, 0.0  ;;  %v1311_v0 = vmax.f32 %v990_v37, 0.0  ;;  %v993_v3 = vpop.f32.mrb[12].mxu1  ;;  %v9390_v37 = vld [vmem:[#allocation9 + $0x640] sm:$0xff] }
 0x1d0   : > { %v887_v29 = vadd.f32 %v886_v24, %v9183_v60  ;;  %4696 = vmatpush1.bf16.msra.mxu0 %v7436_v32  ;;  %5148 = vmatpush1.bf16.msra.mxu1 %v7438_v41  ;;  %v1317_v47 = vmax.f32 %v883_v22, 0.0  ;;  %v9355_v32 = vpack.c.bf16 %v1310_v46, %v1302_v25  ;;  %v994_v11 = vadd.f32 %v993_v3, %v9197_v7  ;;  %v995_v22 = vpop.f32.mrb[13].mxu1 }
 0x1d1   : > { %v1324_v42 = vmax.f32 %v885_v23, 0.0  ;;  %4697 = vmatprep.subr.bf16.mxu0 %v7445_v58  ;;  %5149 = vmatprep.subr.bf16.mxu1 %v7447_v8  ;;  %v7461_v58 = vcombine.high %v9341_v44, %v9343_v45  ;;  %v9361_v63 = vpack.c.bf16 %v1311_v0, %v1303_v35  ;;  %v996_v21 = vadd.f32 %v995_v22, %v9201_v12  ;;  %v997_v23 = vpop.f32.mrb[14].mxu1  ;;  %v9399_v0 = vld [vmem:[#allocation9 + $0x648] sm:$0xff] }
 0x1d2   : > { %v1325_v48 = vmax.f32 %v887_v29, 0.0  ;;  %11085 = vst [vmem:[#allocation31_spill] sm:$0xff] %v9355_v32  ;;  %v7462_v25 = vcombine.low %v9345_v31, %v9347_v49  ;;  %v1318_v26 = vmax.f32 %v994_v11, 0.0  ;;  %v998_v27 = vadd.f32 %v997_v23, %v9197_v7  ;;  %v999_v29 = vpop.f32.mrb[15].mxu1  ;;  %v9417_v11 = vld [vmem:[#allocation9 + $0x6a0] sm:$0xff] }
 0x1d3   : > { %v9349_v50 = vpack.c.bf16 %v1324_v42, %v1316_v40  ;;  %11087 = vst [vmem:[#allocation33_spill] sm:$0xff] %v9361_v63  ;;  %v7469_v35 = vcombine.high %v9366_v9, %v9368_v10  ;;  %v9392_v40 = vld [vmem:[#allocation9 + $0x660] sm:$0xff]  ;;  %v1319_v42 = vmax.f32 %v996_v21, 0.0  ;;  %v7471_v46 = vcombine.high %v9376_v19, %v9378_v20 }
 0x1d4   : > { %v9357_v41 = vpack.c.bf16 %v1325_v48, %v1317_v47  ;;  %4698 = vmatpush1.bf16.msra.mxu0 %v7444_v17  ;;  %v890_v39 = vpop.f32.mrb[16].mxu0  ;;  %5150 = vmatpush1.bf16.msra.mxu1 %v7446_v28  ;;  %v1326_v47 = vmax.f32 %v998_v27, 0.0  ;;  %v7468_v49 = vcombine.low %v9366_v9, %v9368_v10  ;;  %v7477_v3 = vcombine.high %v9390_v37, %v9392_v40  ;;  %v9415_v10 = vld [vmem:[#allocation9 + $0x680] sm:$0xff] }
 0x1d5   : > { %11084 = vst [vmem:[#allocation30_spill] sm:$0xff] %v9349_v50  ;;  %v891_v5 = vadd.f32 %v890_v39, %v9179_v55  ;;  %v892_v8 = vpop.f32.mrb[17].mxu0  ;;  %4699 = vmatprep.subr.bf16.mxu0 %v7453_v33  ;;  %5151 = vmatprep.subr.bf16.mxu1 %v7455_v43  ;;  %v1000_v43 = vadd.f32 %v999_v29, %v9201_v12 }
 0x1d6   : > { %11086 = vst [vmem:[#allocation32_spill] sm:$0xff] %v9357_v41  ;;  %v893_v15 = vadd.f32 %v892_v8, %v9183_v60  ;;  %v894_v17 = vpop.f32.mrb[18].mxu0  ;;  %4636 = vmatprep.mubr.bf16.mxu0 %v9357_v41  ;;  %5088 = vmatprep.mubr.bf16.mxu1 %v9357_v41  ;;  %v7476_v9 = vcombine.low %v9390_v37, %v9392_v40 }
 0x1d7   : > { %v895_v24 = vadd.f32 %v894_v17, %v9179_v55  ;;  %v896_v28 = vpop.f32.mrb[19].mxu0  ;;  %4637 = vmatmul.mubr.bf16.gmra.mrb[76].mxu0 %v9349_v50  ;;  %5089 = vmatmul.mubr.bf16.gmra.mrb[76].mxu1 %v9349_v50  ;;  %v1332_v44 = vmax.f32 %v891_v5, 0.0  ;;  %v9409_v5 = vpack.c.bf16 %v1326_v47, %v1318_v26  ;;  %v9432_v26 = vld [vmem:[#allocation9 + $0x6a8] sm:$0xff]  ;;  %v7485_v37 = vcombine.high %v9415_v10, %v9417_v11  ;;  %v9446_v47 = vld [vmem:[#allocation9 + $0x6e0] sm:$0xff] }
 0x1d8   : > { %v897_v33 = vadd.f32 %v896_v28, %v9183_v60  ;;  %4700 = vmatpush1.bf16.msra.mxu0 %v7452_v56  ;;  %5152 = vmatpush1.bf16.msra.mxu1 %v7454_v57  ;;  %v1333_v48 = vmax.f32 %v893_v15, 0.0  ;;  %v9401_v56 = vld [vmem:[#allocation9 + $0x668] sm:$0xff]  ;;  %v1327_v57 = vmax.f32 %v1000_v43, 0.0  ;;  %v1003_v15 = vpop.f32.mrb[16].mxu1 }
 0x1d9   : > { %v1340_v45 = vmax.f32 %v895_v24, 0.0  ;;  %4701 = vmatprep.subr.bf16.mxu0 %v7461_v58  ;;  %5153 = vmatprep.subr.bf16.mxu1 %v7463_v16  ;;  %v7470_v58 = vcombine.low %v9376_v19, %v9378_v20  ;;  %11089 = vst [vmem:[#allocation35_spill] sm:$0xff] %v9409_v5  ;;  %v1004_v20 = vadd.f32 %v1003_v15, %v9197_v7  ;;  %v1005_v21 = vpop.f32.mrb[17].mxu1 }
 0x1da   : > { %v1341_v31 = vmax.f32 %v897_v33, 0.0  ;;  %v9419_v22 = vpack.c.bf16 %v1327_v57, %v1319_v42  ;;  %v7478_v28 = vcombine.low %v9399_v0, %v9401_v56  ;;  %v1006_v27 = vadd.f32 %v1005_v21, %v9201_v12  ;;  %v1007_v29 = vpop.f32.mrb[18].mxu1  ;;  %v9465_v21 = vld [vmem:[#allocation9 + $0x720] sm:$0xff] }
 0x1db   : > { %v9403_v39 = vpack.c.bf16 %v1340_v45, %v1332_v44  ;;  %v1334_v40 = vmax.f32 %v1004_v20, 0.0  ;;  %v1008_v42 = vadd.f32 %v1007_v29, %v9197_v7  ;;  %v1009_v43 = vpop.f32.mrb[19].mxu1  ;;  %v7484_v45 = vcombine.low %v9415_v10, %v9417_v11 }
 0x1dc   : > { %v9411_v8 = vpack.c.bf16 %v1341_v31, %v1333_v48  ;;  %4702 = vmatpush1.bf16.msra.mxu0 %v7460_v18  ;;  %v900_v16 = vpop.f32.mrb[20].mxu0  ;;  %5154 = vmatpush1.bf16.msra.mxu1 %v7462_v25  ;;  %11091 = vst [vmem:[#allocation37_spill] sm:$0xff] %v9419_v22  ;;  %v7479_v18 = vcombine.high %v9399_v0, %v9401_v56  ;;  %v9430_v25 = vld [vmem:[#allocation9 + $0x688] sm:$0xff]  ;;  %v1335_v48 = vmax.f32 %v1006_v27, 0.0 }
 0x1dd   : > { %11088 = vst [vmem:[#allocation34_spill] sm:$0xff] %v9403_v39  ;;  %v901_v17 = vadd.f32 %v900_v16, %v9179_v55  ;;  %v902_v19 = vpop.f32.mrb[21].mxu0  ;;  %4703 = vmatprep.subr.bf16.mxu0 %v7469_v35  ;;  %5155 = vmatprep.subr.bf16.mxu1 %v7471_v46  ;;  %v9444_v46 = vld [vmem:[#allocation9 + $0x6c0] sm:$0xff]  ;;  %v1010_v31 = vadd.f32 %v1009_v43, %v9201_v12  ;;  %v9451_v16 = vld [vmem:[#allocation9 + $0x6c8] sm:$0xff] }
 0x1de   : > { %11090 = vst [vmem:[#allocation36_spill] sm:$0xff] %v9411_v8  ;;  %v903_v23 = vadd.f32 %v902_v19, %v9183_v60  ;;  %v904_v24 = vpop.f32.mrb[22].mxu0  ;;  %4646 = vmatprep.mubr.bf16.mxu0 %v9411_v8  ;;  %5098 = vmatprep.mubr.bf16.mxu1 %v9411_v8  ;;  %v7487_v57 = vcombine.high %v9430_v25, %v9432_v26  ;;  %v1013_v29 = vpop.f32.mrb[20].mxu1  ;;  %v9480_v43 = vld [vmem:[#allocation9 + $0x728] sm:$0xff] }
 0x1df   : > { %v905_v33 = vadd.f32 %v904_v24, %v9179_v55  ;;  %v906_v35 = vpop.f32.mrb[23].mxu0  ;;  %4647 = vmatmul.mubr.bf16.gmra.mrb[80].mxu0 %v9403_v39  ;;  %5099 = vmatmul.mubr.bf16.gmra.mrb[80].mxu1 %v9403_v39  ;;  %v1348_v0 = vmax.f32 %v901_v17, 0.0  ;;  %v7486_v15 = vcombine.low %v9430_v25, %v9432_v26  ;;  %v1343_v19 = vmax.f32 %v1010_v31, 0.0 }
 0x1e0   : > { %v907_v44 = vadd.f32 %v906_v35, %v9183_v60  ;;  %4704 = vmatpush1.bf16.msra.mxu0 %v7468_v49  ;;  %5156 = vmatpush1.bf16.msra.mxu1 %v7470_v58  ;;  %v9453_v49 = vld [vmem:[#allocation9 + $0x6e8] sm:$0xff]  ;;  %v1342_v58 = vmax.f32 %v1008_v42, 0.0  ;;  %v1349_v10 = vmax.f32 %v903_v23, 0.0  ;;  %v7493_v17 = vcombine.high %v9444_v46, %v9446_v47 }
 0x1e1   : > { %v1356_v56 = vmax.f32 %v905_v33, 0.0  ;;  %4705 = vmatprep.subr.bf16.mxu0 %v7477_v3  ;;  %5157 = vmatprep.subr.bf16.mxu1 %v7479_v18  ;;  %v9463_v18 = vld [vmem:[#allocation9 + $0x700] sm:$0xff]  ;;  %v7494_v25 = vcombine.low %v9451_v16, %v9453_v49  ;;  %v9473_v26 = vpack.c.bf16 %v1343_v19, %v1335_v48  ;;  %v9478_v42 = vld [vmem:[#allocation9 + $0x708] sm:$0xff] }
 0x1e2   : > { %v1357_v11 = vmax.f32 %v907_v44, 0.0  ;;  %v9467_v24 = vpack.c.bf16 %v1342_v58, %v1334_v40  ;;  %v7495_v40 = vcombine.high %v9451_v16, %v9453_v49  ;;  %v9494_v49 = vld [vmem:[#allocation9 + $0x740] sm:$0xff] }
 0x1e3   : > { %v9457_v20 = vpack.c.bf16 %v1356_v56, %v1348_v0  ;;  %11095 = vst [vmem:[#allocation41_spill] sm:$0xff] %v9473_v26  ;;  %v9496_v58 = vld [vmem:[#allocation9 + $0x760] sm:$0xff] }
 0x1e4   : > { %11093 = vst [vmem:[#allocation39_spill] sm:$0xff] %v9467_v24  ;;  %v9469_v23 = vpack.c.bf16 %v1357_v11, %v1349_v10  ;;  %4706 = vmatpush1.bf16.msra.mxu0 %v7476_v9  ;;  %v910_v27 = vpop.f32.mrb[24].mxu0  ;;  %5158 = vmatpush1.bf16.msra.mxu1 %v7478_v28  ;;  %v1014_v9 = vadd.f32 %v1013_v29, %v9197_v7  ;;  %v1015_v28 = vpop.f32.mrb[21].mxu1 }
 0x1e5   : > { %11092 = vst [vmem:[#allocation38_spill] sm:$0xff] %v9457_v20  ;;  %v911_v33 = vadd.f32 %v910_v27, %v9179_v55  ;;  %v912_v35 = vpop.f32.mrb[25].mxu0  ;;  %4707 = vmatprep.subr.bf16.mxu0 %v7485_v37  ;;  %5159 = vmatprep.subr.bf16.mxu1 %v7487_v57  ;;  %v7501_v37 = vcombine.high %v9463_v18, %v9465_v21  ;;  %v1017_v0 = vpop.f32.mrb[22].mxu1 }
 0x1e6   : > { %11094 = vst [vmem:[#allocation40_spill] sm:$0xff] %v9469_v23  ;;  %v913_v44 = vadd.f32 %v912_v35, %v9183_v60  ;;  %v914_v48 = vpop.f32.mrb[26].mxu0  ;;  %4656 = vmatprep.mubr.bf16.mxu0 %v9469_v23  ;;  %5108 = vmatprep.mubr.bf16.mxu1 %v9469_v23  ;;  %v1016_v31 = vadd.f32 %v1015_v28, %v9201_v12  ;;  %v1350_v10 = vmax.f32 %v1014_v9, 0.0  ;;  %v1019_v19 = vpop.f32.mrb[23].mxu1  ;;  %v9502_v35 = vld [vmem:[#allocation9 + $0x748] sm:$0xff] }
 0x1e7   : > { %v915_v56 = vadd.f32 %v914_v48, %v9179_v55  ;;  %v916_v57 = vpop.f32.mrb[27].mxu0  ;;  %4657 = vmatmul.mubr.bf16.gmra.mrb[84].mxu0 %v9457_v20  ;;  %5109 = vmatmul.mubr.bf16.gmra.mrb[84].mxu1 %v9457_v20  ;;  %v1018_v11 = vadd.f32 %v1017_v0, %v9197_v7  ;;  %v7502_v29 = vcombine.low %v9478_v42, %v9480_v43  ;;  %v9504_v28 = vld [vmem:[#allocation9 + $0x768] sm:$0xff]  ;;  %v1364_v16 = vmax.f32 %v911_v33, 0.0 }
 0x1e8   : > { %v917_v27 = vadd.f32 %v916_v57, %v9183_v60  ;;  %4708 = vmatpush1.bf16.msra.mxu0 %v7484_v45  ;;  %5160 = vmatpush1.bf16.msra.mxu1 %v7486_v15  ;;  %v1351_v48 = vmax.f32 %v1016_v31, 0.0  ;;  %v1020_v51 = vadd.f32 %v1019_v19, %v9201_v12  ;;  %v7503_v9 = vcombine.high %v9478_v42, %v9480_v43 }
 0x1e9   : > { %v1372_v3 = vmax.f32 %v915_v56, 0.0  ;;  %4709 = vmatprep.subr.bf16.mxu0 %v7493_v17  ;;  %5161 = vmatprep.subr.bf16.mxu1 %v7495_v40  ;;  %v1358_v0 = vmax.f32 %v1018_v11, 0.0  ;;  %v1365_v45 = vmax.f32 %v913_v44, 0.0  ;;  %v7509_v57 = vcombine.high %v9494_v49, %v9496_v58  ;;  %v9532_v56 = vld [vmem:[#allocation9 + $0x7a8] sm:$0xff]  ;;  %v1023_v11 = vpop.f32.mrb[24].mxu1 }
 0x1ea   : > { %v1373_v15 = vmax.f32 %v917_v27, 0.0  ;;  %v1359_v31 = vmax.f32 %v1020_v51, 0.0  ;;  %v7510_v33 = vcombine.low %v9502_v35, %v9504_v28  ;;  %v11099_v43 = vcombine.low %v9444_v46, %v9446_v47 }
 0x1eb   : > { %v9515_v59 = vpack.c.bf16 %v1372_v3, %v1364_v16  ;;  %v9521_v40 = vpack.c.bf16 %v1358_v0, %v1350_v10  ;;  %v7511_v51 = vcombine.high %v9502_v35, %v9504_v28  ;;  %v9530_v3 = vld [vmem:[#allocation9 + $0x788] sm:$0xff]  ;;  %v7517_v46 = vcombine.high %v9511_v4, %v9513_v34 }
 0x1ec   : > { %v9523_v42 = vpack.c.bf16 %v1373_v15, %v1365_v45  ;;  %4710 = vmatpush1.bf16.msra.mxu0 %v11099_v43  ;;  %v920_v44 = vpop.f32.mrb[28].mxu0  ;;  %5162 = vmatpush1.bf16.msra.mxu1 %v7494_v25  ;;  %v9534_v16 = vpack.c.bf16 %v1359_v31, %v1351_v48  ;;  %v1024_v47 = vadd.f32 %v1023_v11, %v9197_v7  ;;  %v1025_v25 = vpop.f32.mrb[25].mxu1  ;;  %v9541_v27 = vsub.s32 4, %v9167_v52 }
 0x1ed   : > { %11096 = vst [vmem:[#allocation42_spill] sm:$0xff] %v9515_v59  ;;  %11097 = vst [vmem:[#allocation43_spill] sm:$0xff] %v9521_v40  ;;  %v921_v10 = vadd.f32 %v920_v44, %v9179_v55  ;;  %v922_v19 = vpop.f32.mrb[29].mxu0  ;;  %4711 = vmatprep.subr.bf16.mxu0 %v7501_v37  ;;  %5163 = vmatprep.subr.bf16.mxu1 %v7503_v9  ;;  %v1026_v48 = vadd.f32 %v1025_v25, %v9201_v12  ;;  %v1027_v9 = vpop.f32.mrb[26].mxu1  ;;  %v9550_v0 = vsub.s32 5, %v9167_v52  ;;  %v9566_v37 = vld [vmem:[#allocation9 + $0x7e0] sm:$0xff] }
 0x1ee   : > { %11098 = vst [vmem:[#allocation44_spill] sm:$0xff] %v9523_v42  ;;  %11100 = vst [vmem:[#allocation45_spill] sm:$0xff] %v9534_v16  ;;  %v923_v35 = vadd.f32 %v922_v19, %v9183_v60  ;;  %v924_v28 = vpop.f32.mrb[30].mxu0  ;;  %4666 = vmatprep.mubr.bf16.mxu0 %v9523_v42  ;;  %5118 = vmatprep.mubr.bf16.mxu1 %v9523_v42  ;;  %v1366_v43 = vmax.f32 %v1024_v47, 0.0  ;;  %v1028_v44 = vadd.f32 %v1027_v9, %v9197_v7  ;;  %v1029_v11 = vpop.f32.mrb[27].mxu1 }
 0x1ef   : > { %11101 = vst [vmem:[#allocation46_spill] sm:$0xff] %v9541_v27  ;;  %11102 = vst [vmem:[#allocation47_spill] sm:$0xff] %v9550_v0  ;;  %v925_v45 = vadd.f32 %v924_v28, %v9179_v55  ;;  %v926_v15 = vpop.f32.mrb[31].mxu0  ;;  %4667 = vmatmul.mubr.bf16.gmra.mrb[88].mxu0 %v9515_v59  ;;  %5119 = vmatmul.mubr.bf16.gmra.mrb[88].mxu1 %v9515_v59  ;;  %v11103_v25 = vcombine.low %v9463_v18, %v9465_v21  ;;  %v9564_v28 = vld [vmem:[#allocation9 + $0x7c0] sm:$0xff]  ;;  %v1367_v17 = vmax.f32 %v1026_v48, 0.0 }
 0x1f0   : > { %v927_v19 = vadd.f32 %v926_v15, %v9183_v60  ;;  %5164 = vmatpush1.bf16.msra.mxu1 %v7502_v29  ;;  %v7519_v55 = vcombine.high %v9530_v3, %v9532_v56  ;;  %v1030_v47 = vadd.f32 %v1029_v11, %v9201_v12  ;;  %v1380_v31 = vmax.f32 %v921_v10, 0.0  ;;  %v9569_v60 = vld [vmem:[#allocation9 + $0x7c8] sm:$0xff] }
 0x1f1   : > { %4712 = vmatpush1.bf16.msra.mxu0 %v11103_v25  ;;  %v1388_v9 = vmax.f32 %v925_v45, 0.0  ;;  %5165 = vmatprep.subr.bf16.mxu1 %v7511_v51  ;;  %v9571_v15 = vld [vmem:[#allocation9 + $0x7e8] sm:$0xff]  ;;  %v1374_v18 = vmax.f32 %v1028_v44, 0.0  ;;  %v9575_v21 = vrot.slane %v9172_v54, %v9541_v27  ;;  %v1381_v29 = vmax.f32 %v923_v35, 0.0  ;;  %v9587_v45 = vld [vmem:[#allocation9 + $0x800] sm:$0xff] }
 0x1f2   : > { %4713 = vmatprep.subr.bf16.mxu0 %v7509_v57  ;;  %v1389_v25 = vmax.f32 %v927_v19, 0.0  ;;  %v1375_v53 = vmax.f32 %v1030_v47, 0.0  ;;  %v9579_v48 = vrot.slane %v9172_v54, %v9550_v0  ;;  %v7525_v51 = vcombine.high %v9564_v28, %v9566_v37  ;;  %v9589_v44 = vld [vmem:[#allocation9 + $0x820] sm:$0xff] }
 0x1f3   : > { %v9581_v10 = vpack.c.bf16 %v1388_v9, %v1380_v31  ;;  %v9591_v11 = vpack.c.bf16 %v1374_v18, %v1366_v43  ;;  %v11107_v19 = vcombine.low %v9494_v49, %v9496_v58  ;;  %v7526_v31 = vcombine.low %v9569_v60, %v9571_v15  ;;  %v1033_v9 = vpop.f32.mrb[28].mxu1 }
 0x1f4   : > { %v9593_v35 = vpack.c.bf16 %v1389_v25, %v1381_v29  ;;  %5166 = vmatpush1.bf16.msra.mxu1 %v7510_v33  ;;  %v9600_v47 = vpack.c.bf16 %v1375_v53, %v1367_v17  ;;  %v1076_v57 = vpop.f32.mrb[32].mxu0  ;;  %v7527_v43 = vcombine.high %v9569_v60, %v9571_v15  ;;  %v1034_v18 = vadd.f32 %v1033_v9, %v9197_v7  ;;  %v1035_v29 = vpop.f32.mrb[29].mxu1  ;;  %v9613_v17 = vld [vmem:[#allocation9 + $0x808] sm:$0xff] }
 0x1f5   : > { %11104 = vst [vmem:[#allocation48_spill] sm:$0xff] %v9581_v10  ;;  %11105 = vst [vmem:[#allocation49_spill] sm:$0xff] %v9591_v11  ;;  %4714 = vmatpush1.bf16.msra.mxu0 %v11107_v19  ;;  %5167 = vmatprep.subr.bf16.mxu1 %v7519_v55  ;;  %v1077_v25 = vadd.f32 %v1076_v57, %v9575_v21  ;;  %v1078_v49 = vpop.f32.mrb[33].mxu0  ;;  %v9607_v58 = vsub.s32 6, %v9167_v52  ;;  %v7533_v53 = vcombine.high %v9587_v45, %v9589_v44  ;;  %v9615_v33 = vld [vmem:[#allocation9 + $0x828] sm:$0xff]  ;;  %v1037_v55 = vpop.f32.mrb[30].mxu1 }
 0x1f6   : > { %11106 = vst [vmem:[#allocation50_spill] sm:$0xff] %v9593_v35  ;;  %11108 = vst [vmem:[#allocation51_spill] sm:$0xff] %v9600_v47  ;;  %4715 = vmatprep.subr.bf16.mxu0 %v7517_v46  ;;  %4676 = vmatprep.mubr.bf16.mxu0 %v9593_v35  ;;  %v1036_v46 = vadd.f32 %v1035_v29, %v9201_v12  ;;  %v1079_v60 = vadd.f32 %v1078_v49, %v9579_v48  ;;  %v1080_v15 = vpop.f32.mrb[34].mxu0  ;;  %v9620_v57 = vsub.s32 7, %v9167_v52  ;;  %v1039_v0 = vpop.f32.mrb[31].mxu1 }
 0x1f7   : > { %11109 = vst [vmem:[#allocation52_spill] sm:$0xff] %v9607_v58  ;;  %5128 = vmatprep.mubr.bf16.mxu1 %v9593_v35  ;;  %4677 = vmatmul.mubr.bf16.gmra.mrb[92].mxu0 %v9581_v10  ;;  %v1382_v19 = vmax.f32 %v1034_v18, 0.0  ;;  %v1038_v9 = vadd.f32 %v1037_v55, %v9197_v7  ;;  %v1272_v27 = vmax.f32 %v1077_v25, 0.0  ;;  %v1081_v35 = vadd.f32 %v1080_v15, %v9575_v21  ;;  %v1082_v59 = vpop.f32.mrb[35].mxu0  ;;  %v9637_v25 = vld [vmem:[#allocation9 + $0x840] sm:$0xff] }
 0x1f8   : > { %11110 = vst [vmem:[#allocation53_spill] sm:$0xff] %v9620_v57  ;;  %5129 = vmatmul.mubr.bf16.gmra.mrb[92].mxu1 %v9581_v10  ;;  %v11111_v29 = vcombine.low %v9511_v4, %v9513_v34  ;;  %v11112_v49 = vcombine.low %v9530_v3, %v9532_v56  ;;  %v1383_v52 = vmax.f32 %v1036_v46, 0.0  ;;  %v1040_v42 = vadd.f32 %v1039_v0, %v9201_v12  ;;  %v9639_v34 = vld [vmem:[#allocation9 + $0x860] sm:$0xff]  ;;  %v1729_v46 = vld [vmem:[#allocation9 + $0x868] sm:$0xff] }
 0x1f9   : > { %v1273_v10 = vmax.f32 %v1079_v60, 0.0  ;;  %v1083_v18 = vadd.f32 %v1082_v59, %v9579_v48  ;;  %4719 = vmatprep.mubr.bf16.mxu0 %v9257_v6  ;;  %v7535_v7 = vcombine.high %v9613_v17, %v9615_v33  ;;  %v1390_v4 = vmax.f32 %v1038_v9, 0.0  ;;  %5171 = vmatprep.mubr.bf16.mxu1 %v9257_v6 }
 0x1fa   : > { %4716 = vmatpush1.bf16.msra.mxu0 %v11111_v29  ;;  %5168 = vmatpush1.bf16.msra.mxu1 %v11112_v49  ;;  %v1280_v55 = vmax.f32 %v1081_v35, 0.0  ;;  %v9643_v3 = vrot.slane %v9172_v54, %v9607_v58  ;;  %v1391_v59 = vmax.f32 %v1040_v42, 0.0  ;;  %v9648_v56 = vrot.slane %v9172_v54, %v9620_v57  ;;  %v1725_v35 = vld [vmem:[#allocation9 + $0x848] sm:$0xff]  ;;  %v9673_v29 = vld [vmem:[#allocation9 + $0x8a0] sm:$0xff] }
 0x1fb   : > { %4717 = vmatprep.subr.bf16.mxu0 %v7525_v51  ;;  %5169 = vmatprep.subr.bf16.mxu1 %v7527_v43  ;;  %v1281_v12 = vmax.f32 %v1083_v18, 0.0  ;;  %v7532_v0 = vcombine.low %v9587_v45, %v9589_v44  ;;  %v7534_v51 = vcombine.low %v9613_v17, %v9615_v33  ;;  %v9654_v60 = vpack.c.bf16 %v1390_v4, %v1382_v19  ;;  %v1189_v17 = vpop.f32.mrb[32].mxu1  ;;  %v9669_v33 = vld [vmem:[#allocation9 + $0x880] sm:$0xff]  ;;  %v9677_v49 = vld [vmem:[#allocation9 + $0x8a8] sm:$0xff] }
 0x1fc   : > { %v9656_v15 = vpack.c.bf16 %v1280_v55, %v1272_v27  ;;  %v11113_v42 = vcombine.low %v9564_v28, %v9566_v37  ;;  %v7540_v54 = vcombine.low %v9637_v25, %v9639_v34  ;;  %v9663_v43 = vpack.c.bf16 %v1391_v59, %v1383_v52  ;;  %v1086_v44 = vpop.f32.mrb[36].mxu0  ;;  %v1191_v19 = vpop.f32.mrb[33].mxu1 }
 0x1fd   : > { %v9665_v45 = vpack.c.bf16 %v1281_v12, %v1273_v10  ;;  %v7541_v27 = vcombine.high %v9637_v25, %v9639_v34  ;;  %v1087_v37 = vadd.f32 %v1086_v44, %v9575_v21  ;;  %v1088_v28 = vpop.f32.mrb[37].mxu0  ;;  %v7542_v9 = vcombine.low %v1725_v35, %v1729_v46  ;;  %v9675_v10 = vld [vmem:[#allocation9 + $0x888] sm:$0xff]  ;;  %v1193_v25 = vpop.f32.mrb[34].mxu1 }
 0x1fe   : > { %4718 = vmatpush1.bf16.msra.mxu0 %v11113_v42  ;;  %5170 = vmatpush1.bf16.msra.mxu1 %v7526_v31  ;;  %11114 = vst [vmem:[#allocation54_spill] sm:$0xff] %v9663_v43  ;;  %v1190_v31 = vadd.f32 %v1189_v17, %v9643_v3  ;;  %v7543_v52 = vcombine.high %v1725_v35, %v1729_v46  ;;  %v1090_v18 = vpop.f32.mrb[38].mxu0  ;;  %v1195_v35 = vpop.f32.mrb[35].mxu1 }
 0x1ff   : > { %4800 = vmatprep.subr.bf16.mxu0 %v7533_v53  ;;  %5252 = vmatprep.subr.bf16.mxu1 %v7535_v7  ;;  %v1089_v53 = vadd.f32 %v1088_v28, %v9579_v48  ;;  %v1192_v7 = vadd.f32 %v1191_v19, %v9648_v56  ;;  %v1288_v34 = vmax.f32 %v1087_v37, 0.0  ;;  %v1091_v4 = vadd.f32 %v1090_v18, %v9575_v21  ;;  %v1092_v55 = vpop.f32.mrb[39].mxu0  ;;  %v9694_v19 = vld [vmem:[#allocation9 + $0x8e0] sm:$0xff] }
 0x200   : > { %v1274_v59 = vmax.f32 %v1190_v31, 0.0  ;;  %v1194_v12 = vadd.f32 %v1193_v25, %v9643_v3  ;;  %v1093_v42 = vadd.f32 %v1092_v55, %v9579_v48  ;;  %v1196_v17 = vadd.f32 %v1195_v35, %v9648_v56  ;;  %v9692_v31 = vld [vmem:[#allocation9 + $0x8c0] sm:$0xff]  ;;  %v1741_v25 = vld [vmem:[#allocation9 + $0x8c8] sm:$0xff] }
 0x201   : > { %4720 = vmatmul.mubr.bf16.vlgmr.msra.gmra.mrb[64].mxu0 %v9251_v1  ;;  %5172 = vmatmul.mubr.bf16.vlgmr.msra.gmra.mrb[64].mxu1 %v9251_v1  ;;  %v1289_v46 = vmax.f32 %v1089_v53, 0.0  ;;  %v1275_v44 = vmax.f32 %v1192_v7, 0.0  ;;  %v7549_v37 = vcombine.high %v9669_v33, %v9673_v29  ;;  %v7551_v28 = vcombine.high %v9675_v10, %v9677_v49  ;;  %v1745_v55 = vld [vmem:[#allocation9 + $0x8e8] sm:$0xff] }
 0x202   : > { %4801 = vmatpush1.bf16.msra.mxu0 %v7532_v0  ;;  %5253 = vmatpush1.bf16.msra.mxu1 %v7534_v51  ;;  %v1296_v0 = vmax.f32 %v1091_v4, 0.0  ;;  %v1282_v51 = vmax.f32 %v1194_v12, 0.0  ;;  %v1297_v53 = vmax.f32 %v1093_v42, 0.0  ;;  %v1283_v18 = vmax.f32 %v1196_v17, 0.0  ;;  %v9717_v17 = vld [vmem:[#allocation9 + $0x920] sm:$0xff] }
 0x203   : > { %4802 = vmatprep.subr.bf16.mxu0 %v7541_v27  ;;  %4729 = vmatprep.mubr.bf16.mxu0 %v9309_v62  ;;  %v7548_v27 = vcombine.low %v9669_v33, %v9673_v29  ;;  %v7550_v7 = vcombine.low %v9675_v10, %v9677_v49  ;;  %v7556_v4 = vcombine.low %v9692_v31, %v9694_v19  ;;  %v1199_v33 = vpop.f32.mrb[36].mxu1  ;;  %v9713_v10 = vld [vmem:[#allocation9 + $0x900] sm:$0xff] }
 0x204   : > { %5181 = vmatprep.mubr.bf16.mxu1 %v9309_v62  ;;  %5254 = vmatprep.subr.bf16.mxu1 %v7543_v52  ;;  %v9701_v35 = vpack.c.bf16 %v1296_v0, %v1288_v34  ;;  %v9703_v57 = vpack.c.bf16 %v1282_v51, %v1274_v59  ;;  %v9707_v52 = vpack.c.bf16 %v1297_v53, %v1289_v46  ;;  %v1096_v12 = vpop.f32.mrb[40].mxu0  ;;  %v1201_v34 = vpop.f32.mrb[37].mxu1  ;;  %v9721_v0 = vld [vmem:[#allocation9 + $0x928] sm:$0xff] }
 0x205   : > { %v9709_v42 = vpack.c.bf16 %v1283_v18, %v1275_v44  ;;  %v7557_v29 = vcombine.high %v9692_v31, %v9694_v19  ;;  %v1097_v49 = vadd.f32 %v1096_v12, %v9575_v21  ;;  %v7558_v59 = vcombine.low %v1741_v25, %v1745_v55  ;;  %v9719_v44 = vld [vmem:[#allocation9 + $0x908] sm:$0xff]  ;;  %v1203_v19 = vpop.f32.mrb[38].mxu1 }
 0x206   : > { %11115 = vst [vmem:[#allocation55_spill] sm:$0xff] %v9703_v57  ;;  %4803 = vmatpush1.bf16.msra.mxu0 %v7540_v54  ;;  %5255 = vmatpush1.bf16.msra.mxu1 %v7542_v9  ;;  %v1098_v54 = vpop.f32.mrb[41].mxu0  ;;  %v1200_v9 = vadd.f32 %v1199_v33, %v9643_v3  ;;  %v7559_v46 = vcombine.high %v1741_v25, %v1745_v55  ;;  %v1205_v12 = vpop.f32.mrb[39].mxu1 }
 0x207   : > { %11116 = vst [vmem:[#allocation56_spill] sm:$0xff] %v9709_v42  ;;  %4804 = vmatprep.subr.bf16.mxu0 %v7549_v37  ;;  %5256 = vmatprep.subr.bf16.mxu1 %v7551_v28  ;;  %v1099_v37 = vadd.f32 %v1098_v54, %v9579_v48  ;;  %v1100_v28 = vpop.f32.mrb[42].mxu0  ;;  %v1202_v31 = vadd.f32 %v1201_v34, %v9648_v56  ;;  %v1304_v51 = vmax.f32 %v1097_v49, 0.0 }
 0x208   : > { %v1101_v53 = vadd.f32 %v1100_v28, %v9575_v21  ;;  %v1102_v18 = vpop.f32.mrb[43].mxu0  ;;  %v1290_v25 = vmax.f32 %v1200_v9, 0.0  ;;  %v1204_v55 = vadd.f32 %v1203_v19, %v9643_v3  ;;  %v1206_v34 = vadd.f32 %v1205_v12, %v9648_v56  ;;  %v9736_v28 = vld [vmem:[#allocation9 + $0x940] sm:$0xff]  ;;  %v1757_v12 = vld [vmem:[#allocation9 + $0x948] sm:$0xff] }
 0x209   : > { %4730 = vmatmul.mubr.bf16.gmra.mrb[68].mxu0 %v9303_v36  ;;  %5182 = vmatmul.mubr.bf16.gmra.mrb[68].mxu1 %v9303_v36  ;;  %v1305_v33 = vmax.f32 %v1099_v37, 0.0  ;;  %v1103_v54 = vadd.f32 %v1102_v18, %v9579_v48  ;;  %v1291_v58 = vmax.f32 %v1202_v31, 0.0  ;;  %v7565_v49 = vcombine.high %v9713_v10, %v9717_v17  ;;  %v9738_v19 = vld [vmem:[#allocation9 + $0x960] sm:$0xff]  ;;  %v1761_v36 = vld [vmem:[#allocation9 + $0x968] sm:$0xff] }
 0x20a   : > { %4805 = vmatpush1.bf16.msra.mxu0 %v7548_v27  ;;  %5257 = vmatpush1.bf16.msra.mxu1 %v7550_v7  ;;  %v7567_v9 = vcombine.high %v9719_v44, %v9721_v0  ;;  %v1312_v27 = vmax.f32 %v1101_v53, 0.0  ;;  %v1298_v7 = vmax.f32 %v1204_v55, 0.0  ;;  %v1299_v31 = vmax.f32 %v1206_v34, 0.0  ;;  %v9761_v34 = vld [vmem:[#allocation9 + $0x9a0] sm:$0xff] }
 0x20b   : > { %4806 = vmatprep.subr.bf16.mxu0 %v7557_v29  ;;  %4739 = vmatprep.mubr.bf16.mxu0 %v9361_v63  ;;  %v1313_v37 = vmax.f32 %v1103_v54, 0.0  ;;  %v7564_v29 = vcombine.low %v9713_v10, %v9717_v17  ;;  %v7566_v18 = vcombine.low %v9719_v44, %v9721_v0  ;;  %v7572_v53 = vcombine.low %v9736_v28, %v9738_v19  ;;  %v1209_v10 = vpop.f32.mrb[40].mxu1  ;;  %v9757_v44 = vld [vmem:[#allocation9 + $0x980] sm:$0xff] }
 0x20c   : > { %5191 = vmatprep.mubr.bf16.mxu1 %v9361_v63  ;;  %5258 = vmatprep.subr.bf16.mxu1 %v7559_v46  ;;  %v9745_v62 = vpack.c.bf16 %v1312_v27, %v1304_v51  ;;  %v9747_v1 = vpack.c.bf16 %v1298_v7, %v1290_v25  ;;  %v1106_v55 = vpop.f32.mrb[44].mxu0  ;;  %v9753_v54 = vpack.c.bf16 %v1299_v31, %v1291_v58  ;;  %v1211_v51 = vpop.f32.mrb[41].mxu1  ;;  %v9763_v58 = vld [vmem:[#allocation9 + $0x988] sm:$0xff] }
 0x20d   : > { %v9751_v46 = vpack.c.bf16 %v1313_v37, %v1305_v33  ;;  %v7573_v17 = vcombine.high %v9736_v28, %v9738_v19  ;;  %v1107_v0 = vadd.f32 %v1106_v55, %v9575_v21  ;;  %v7574_v25 = vcombine.low %v1757_v12, %v1761_v36  ;;  %v9765_v27 = vld [vmem:[#allocation9 + $0x9a8] sm:$0xff]  ;;  %v1213_v19 = vpop.f32.mrb[42].mxu1 }
 0x20e   : > { %11117 = vst [vmem:[#allocation57_spill] sm:$0xff] %v9747_v1  ;;  %4807 = vmatpush1.bf16.msra.mxu0 %v7556_v4  ;;  %5259 = vmatpush1.bf16.msra.mxu1 %v7558_v59  ;;  %11118 = vst [vmem:[#allocation58_spill] sm:$0xff] %v9753_v54  ;;  %v1108_v4 = vpop.f32.mrb[45].mxu0  ;;  %v1210_v59 = vadd.f32 %v1209_v10, %v9643_v3  ;;  %v7575_v33 = vcombine.high %v1757_v12, %v1761_v36  ;;  %v1215_v55 = vpop.f32.mrb[43].mxu1 }
 0x20f   : > { %4808 = vmatprep.subr.bf16.mxu0 %v7565_v49  ;;  %5260 = vmatprep.subr.bf16.mxu1 %v7567_v9  ;;  %v1109_v49 = vadd.f32 %v1108_v4, %v9579_v48  ;;  %v1110_v9 = vpop.f32.mrb[46].mxu0  ;;  %v1212_v28 = vadd.f32 %v1211_v51, %v9648_v56  ;;  %v1320_v7 = vmax.f32 %v1107_v0, 0.0  ;;  %v1214_v12 = vadd.f32 %v1213_v19, %v9643_v3  ;;  %v9782_v19 = vld [vmem:[#allocation9 + $0x9e0] sm:$0xff] }
 0x210   : > { %v1111_v37 = vadd.f32 %v1110_v9, %v9575_v21  ;;  %v1112_v36 = vpop.f32.mrb[47].mxu0  ;;  %v1306_v31 = vmax.f32 %v1210_v59, 0.0  ;;  %v1216_v51 = vadd.f32 %v1215_v55, %v9648_v56  ;;  %v7581_v0 = vcombine.high %v9757_v44, %v9761_v34  ;;  %v9780_v9 = vld [vmem:[#allocation9 + $0x9c0] sm:$0xff]  ;;  %v1773_v55 = vld [vmem:[#allocation9 + $0x9c8] sm:$0xff] }
 0x211   : > { %4740 = vmatmul.mubr.bf16.gmra.mrb[72].mxu0 %v9355_v32  ;;  %5192 = vmatmul.mubr.bf16.gmra.mrb[72].mxu1 %v9355_v32  ;;  %v1321_v10 = vmax.f32 %v1109_v49, 0.0  ;;  %v1113_v4 = vadd.f32 %v1112_v36, %v9579_v48  ;;  %v1307_v63 = vmax.f32 %v1212_v28, 0.0  ;;  %v7583_v59 = vcombine.high %v9763_v58, %v9765_v27  ;;  %v1777_v32 = vld [vmem:[#allocation9 + $0x9e8] sm:$0xff] }
 0x212   : > { %4809 = vmatpush1.bf16.msra.mxu0 %v7564_v29  ;;  %5261 = vmatpush1.bf16.msra.mxu1 %v7566_v18  ;;  %v1328_v29 = vmax.f32 %v1111_v37, 0.0  ;;  %v1314_v18 = vmax.f32 %v1214_v12, 0.0  ;;  %v1315_v28 = vmax.f32 %v1216_v51, 0.0  ;;  %v7582_v36 = vcombine.low %v9763_v58, %v9765_v27  ;;  %v9801_v58 = vld [vmem:[#allocation9 + $0xa00] sm:$0xff] }
 0x213   : > { %4810 = vmatprep.subr.bf16.mxu0 %v7573_v17  ;;  %4749 = vmatprep.mubr.bf16.mxu0 %v9419_v22  ;;  %v1329_v49 = vmax.f32 %v1113_v4, 0.0  ;;  %v7580_v17 = vcombine.low %v9757_v44, %v9761_v34  ;;  %v7588_v37 = vcombine.low %v9780_v9, %v9782_v19  ;;  %v1219_v44 = vpop.f32.mrb[44].mxu1  ;;  %v7589_v34 = vcombine.high %v9780_v9, %v9782_v19  ;;  %v9805_v51 = vld [vmem:[#allocation9 + $0xa20] sm:$0xff] }
 0x214   : > { %5201 = vmatprep.mubr.bf16.mxu1 %v9419_v22  ;;  %5262 = vmatprep.subr.bf16.mxu1 %v7575_v33  ;;  %v9789_v6 = vpack.c.bf16 %v1328_v29, %v1320_v7  ;;  %v9791_v20 = vpack.c.bf16 %v1314_v18, %v1306_v31  ;;  %v1116_v12 = vpop.f32.mrb[48].mxu0  ;;  %v9797_v4 = vpack.c.bf16 %v1315_v28, %v1307_v63  ;;  %v1221_v7 = vpop.f32.mrb[45].mxu1  ;;  %v9807_v63 = vld [vmem:[#allocation9 + $0xa08] sm:$0xff] }
 0x215   : > { %v9795_v33 = vpack.c.bf16 %v1329_v49, %v1321_v10  ;;  %v1117_v27 = vadd.f32 %v1116_v12, %v9575_v21  ;;  %v7590_v31 = vcombine.low %v1773_v55, %v1777_v32  ;;  %v7591_v10 = vcombine.high %v1773_v55, %v1777_v32  ;;  %v9809_v29 = vld [vmem:[#allocation9 + $0xa28] sm:$0xff]  ;;  %v1223_v19 = vpop.f32.mrb[46].mxu1 }
 0x216   : > { %11119 = vst [vmem:[#allocation59_spill] sm:$0xff] %v9791_v20  ;;  %4811 = vmatpush1.bf16.msra.mxu0 %v7572_v53  ;;  %5263 = vmatpush1.bf16.msra.mxu1 %v7574_v25  ;;  %11120 = vst [vmem:[#allocation60_spill] sm:$0xff] %v9797_v4  ;;  %v1118_v53 = vpop.f32.mrb[49].mxu0  ;;  %v1220_v25 = vadd.f32 %v1219_v44, %v9643_v3  ;;  %v1222_v9 = vadd.f32 %v1221_v7, %v9648_v56  ;;  %v1225_v12 = vpop.f32.mrb[47].mxu1 }
 0x217   : > { %4812 = vmatprep.subr.bf16.mxu0 %v7581_v0  ;;  %5264 = vmatprep.subr.bf16.mxu1 %v7583_v59  ;;  %v1119_v0 = vadd.f32 %v1118_v53, %v9579_v48  ;;  %v1120_v59 = vpop.f32.mrb[50].mxu0  ;;  %v1336_v18 = vmax.f32 %v1117_v27, 0.0  ;;  %v1224_v55 = vadd.f32 %v1223_v19, %v9643_v3  ;;  %v1226_v7 = vadd.f32 %v1225_v12, %v9648_v56  ;;  %v9826_v19 = vld [vmem:[#allocation9 + $0xa60] sm:$0xff]  ;;  %v1789_v12 = vld [vmem:[#allocation9 + $0xa48] sm:$0xff] }
 0x218   : > { %v1121_v49 = vadd.f32 %v1120_v59, %v9575_v21  ;;  %v1122_v32 = vpop.f32.mrb[51].mxu0  ;;  %v1322_v28 = vmax.f32 %v1220_v25, 0.0  ;;  %v1323_v22 = vmax.f32 %v1222_v9, 0.0  ;;  %v7597_v27 = vcombine.high %v9801_v58, %v9805_v51  ;;  %v9824_v59 = vld [vmem:[#allocation9 + $0xa40] sm:$0xff] }
 0x219   : > { %4750 = vmatmul.mubr.bf16.gmra.mrb[76].mxu0 %v9409_v5  ;;  %5202 = vmatmul.mubr.bf16.gmra.mrb[76].mxu1 %v9409_v5  ;;  %v1337_v44 = vmax.f32 %v1119_v0, 0.0  ;;  %v1123_v53 = vadd.f32 %v1122_v32, %v9579_v48  ;;  %v7599_v25 = vcombine.high %v9807_v63, %v9809_v29  ;;  %v1331_v9 = vmax.f32 %v1226_v7, 0.0  ;;  %v1793_v5 = vld [vmem:[#allocation9 + $0xa68] sm:$0xff]  ;;  %v9849_v7 = vld [vmem:[#allocation9 + $0xaa0] sm:$0xff] }
 0x21a   : > { %4813 = vmatpush1.bf16.msra.mxu0 %v7580_v17  ;;  %5265 = vmatpush1.bf16.msra.mxu1 %v7582_v36  ;;  %v1344_v17 = vmax.f32 %v1121_v49, 0.0  ;;  %v1330_v36 = vmax.f32 %v1224_v55, 0.0  ;;  %v7598_v32 = vcombine.low %v9807_v63, %v9809_v29  ;;  %v7604_v49 = vcombine.low %v9824_v59, %v9826_v19  ;;  %v9845_v63 = vld [vmem:[#allocation9 + $0xa80] sm:$0xff] }
 0x21b   : > { %4814 = vmatprep.subr.bf16.mxu0 %v7589_v34  ;;  %4759 = vmatprep.mubr.bf16.mxu0 %v9473_v26  ;;  %v1345_v0 = vmax.f32 %v1123_v53, 0.0  ;;  %v7596_v34 = vcombine.low %v9801_v58, %v9805_v51  ;;  %v9841_v53 = vpack.c.bf16 %v1331_v9, %v1323_v22  ;;  %v1229_v58 = vpop.f32.mrb[48].mxu1  ;;  %v7605_v51 = vcombine.high %v9824_v59, %v9826_v19  ;;  %v9851_v22 = vld [vmem:[#allocation9 + $0xa88] sm:$0xff] }
 0x21c   : > { %5211 = vmatprep.mubr.bf16.mxu1 %v9473_v26  ;;  %5266 = vmatprep.subr.bf16.mxu1 %v7591_v10  ;;  %v9833_v23 = vpack.c.bf16 %v1344_v17, %v1336_v18  ;;  %v9835_v39 = vpack.c.bf16 %v1330_v36, %v1322_v28  ;;  %v1126_v55 = vpop.f32.mrb[52].mxu0  ;;  %v1231_v18 = vpop.f32.mrb[49].mxu1  ;;  %v7606_v28 = vcombine.low %v1789_v12, %v1793_v5  ;;  %v9853_v17 = vld [vmem:[#allocation9 + $0xaa8] sm:$0xff] }
 0x21d   : > { %v9839_v10 = vpack.c.bf16 %v1345_v0, %v1337_v44  ;;  %11122 = vst [vmem:[#allocation62_spill] sm:$0xff] %v9841_v53  ;;  %v1127_v29 = vadd.f32 %v1126_v55, %v9575_v21  ;;  %v7607_v44 = vcombine.high %v1789_v12, %v1793_v5  ;;  %v1232_v59 = vadd.f32 %v1231_v18, %v9648_v56  ;;  %v1233_v19 = vpop.f32.mrb[50].mxu1 }
 0x21e   : > { %11121 = vst [vmem:[#allocation61_spill] sm:$0xff] %v9835_v39  ;;  %4815 = vmatpush1.bf16.msra.mxu0 %v7588_v37  ;;  %5267 = vmatpush1.bf16.msra.mxu1 %v7590_v31  ;;  %v1128_v37 = vpop.f32.mrb[53].mxu0  ;;  %v1230_v31 = vadd.f32 %v1229_v58, %v9643_v3  ;;  %v1234_v12 = vadd.f32 %v1233_v19, %v9643_v3  ;;  %v1235_v55 = vpop.f32.mrb[51].mxu1  ;;  %v9870_v19 = vld [vmem:[#allocation9 + $0xae0] sm:$0xff] }
 0x21f   : > { %4816 = vmatprep.subr.bf16.mxu0 %v7597_v27  ;;  %5268 = vmatprep.subr.bf16.mxu1 %v7599_v25  ;;  %v1129_v27 = vadd.f32 %v1128_v37, %v9579_v48  ;;  %v1130_v25 = vpop.f32.mrb[54].mxu0  ;;  %v1352_v36 = vmax.f32 %v1127_v29, 0.0  ;;  %v1339_v26 = vmax.f32 %v1232_v59, 0.0  ;;  %v1236_v18 = vadd.f32 %v1235_v55, %v9648_v56  ;;  %v1805_v55 = vld [vmem:[#allocation9 + $0xac8] sm:$0xff] }
 0x220   : > { %v1131_v0 = vadd.f32 %v1130_v25, %v9575_v21  ;;  %v1132_v5 = vpop.f32.mrb[55].mxu0  ;;  %v1338_v9 = vmax.f32 %v1230_v31, 0.0  ;;  %v7613_v29 = vcombine.high %v9845_v63, %v9849_v7  ;;  %v7615_v31 = vcombine.high %v9851_v22, %v9853_v17  ;;  %v9868_v25 = vld [vmem:[#allocation9 + $0xac0] sm:$0xff] }
 0x221   : > { %4760 = vmatmul.mubr.bf16.gmra.mrb[80].mxu0 %v9467_v24  ;;  %5212 = vmatmul.mubr.bf16.gmra.mrb[80].mxu1 %v9467_v24  ;;  %v1353_v58 = vmax.f32 %v1129_v27, 0.0  ;;  %v1133_v37 = vadd.f32 %v1132_v5, %v9579_v48  ;;  %v1347_v59 = vmax.f32 %v1236_v18, 0.0  ;;  %v7614_v5 = vcombine.low %v9851_v22, %v9853_v17  ;;  %v1809_v24 = vld [vmem:[#allocation9 + $0xae8] sm:$0xff]  ;;  %v9889_v22 = vld [vmem:[#allocation9 + $0xb00] sm:$0xff] }
 0x222   : > { %4817 = vmatpush1.bf16.msra.mxu0 %v7596_v34  ;;  %5269 = vmatpush1.bf16.msra.mxu1 %v7598_v32  ;;  %v1360_v34 = vmax.f32 %v1131_v0, 0.0  ;;  %v1346_v32 = vmax.f32 %v1234_v12, 0.0  ;;  %v7620_v0 = vcombine.low %v9868_v25, %v9870_v19  ;;  %v9893_v18 = vld [vmem:[#allocation9 + $0xb20] sm:$0xff] }
 0x223   : > { %4818 = vmatprep.subr.bf16.mxu0 %v7605_v51  ;;  %4769 = vmatprep.mubr.bf16.mxu0 %v9534_v16  ;;  %v1361_v27 = vmax.f32 %v1133_v37, 0.0  ;;  %v7612_v51 = vcombine.low %v9845_v63, %v9849_v7  ;;  %v9885_v37 = vpack.c.bf16 %v1347_v59, %v1339_v26  ;;  %v1239_v63 = vpop.f32.mrb[52].mxu1  ;;  %v7621_v7 = vcombine.high %v9868_v25, %v9870_v19  ;;  %v9895_v26 = vld [vmem:[#allocation9 + $0xb08] sm:$0xff] }
 0x224   : > { %5221 = vmatprep.mubr.bf16.mxu1 %v9534_v16  ;;  %5270 = vmatprep.subr.bf16.mxu1 %v7607_v44  ;;  %v9877_v8 = vpack.c.bf16 %v1360_v34, %v1352_v36  ;;  %v9879_v50 = vpack.c.bf16 %v1346_v32, %v1338_v9  ;;  %v1136_v12 = vpop.f32.mrb[56].mxu0  ;;  %v1241_v36 = vpop.f32.mrb[53].mxu1  ;;  %v7622_v9 = vcombine.low %v1805_v55, %v1809_v24  ;;  %v9897_v34 = vld [vmem:[#allocation9 + $0xb28] sm:$0xff] }
 0x225   : > { %v9883_v44 = vpack.c.bf16 %v1361_v27, %v1353_v58  ;;  %11124 = vst [vmem:[#allocation64_spill] sm:$0xff] %v9885_v37  ;;  %v1137_v17 = vadd.f32 %v1136_v12, %v9575_v21  ;;  %v7623_v58 = vcombine.high %v1805_v55, %v1809_v24  ;;  %v1242_v25 = vadd.f32 %v1241_v36, %v9648_v56  ;;  %v1243_v19 = vpop.f32.mrb[54].mxu1 }
 0x226   : > { %11123 = vst [vmem:[#allocation63_spill] sm:$0xff] %v9879_v50  ;;  %4819 = vmatpush1.bf16.msra.mxu0 %v7604_v49  ;;  %5271 = vmatpush1.bf16.msra.mxu1 %v7606_v28  ;;  %v1138_v49 = vpop.f32.mrb[57].mxu0  ;;  %v1240_v28 = vadd.f32 %v1239_v63, %v9643_v3  ;;  %v1244_v55 = vadd.f32 %v1243_v19, %v9643_v3  ;;  %v1245_v12 = vpop.f32.mrb[55].mxu1  ;;  %v9914_v19 = vld [vmem:[#allocation9 + $0xb60] sm:$0xff] }
 0x227   : > { %4820 = vmatprep.subr.bf16.mxu0 %v7613_v29  ;;  %5272 = vmatprep.subr.bf16.mxu1 %v7615_v31  ;;  %v1139_v29 = vadd.f32 %v1138_v49, %v9579_v48  ;;  %v1140_v31 = vpop.f32.mrb[58].mxu0  ;;  %v1368_v32 = vmax.f32 %v1137_v17, 0.0  ;;  %v1355_v16 = vmax.f32 %v1242_v25, 0.0  ;;  %v1246_v36 = vadd.f32 %v1245_v12, %v9648_v56  ;;  %v1821_v12 = vld [vmem:[#allocation9 + $0xb48] sm:$0xff] }
 0x228   : > { %v1141_v27 = vadd.f32 %v1140_v31, %v9575_v21  ;;  %v1142_v24 = vpop.f32.mrb[59].mxu0  ;;  %v1354_v59 = vmax.f32 %v1240_v28, 0.0  ;;  %v7629_v17 = vcombine.high %v9889_v22, %v9893_v18  ;;  %v7631_v28 = vcombine.high %v9895_v26, %v9897_v34  ;;  %v9912_v31 = vld [vmem:[#allocation9 + $0xb40] sm:$0xff] }
 0x229   : > { %4770 = vmatmul.mubr.bf16.gmra.mrb[84].mxu0 %v9521_v40  ;;  %5222 = vmatmul.mubr.bf16.gmra.mrb[84].mxu1 %v9521_v40  ;;  %v1369_v63 = vmax.f32 %v1139_v29, 0.0  ;;  %v1143_v49 = vadd.f32 %v1142_v24, %v9579_v48  ;;  %v1363_v25 = vmax.f32 %v1246_v36, 0.0  ;;  %v7630_v24 = vcombine.low %v9895_v26, %v9897_v34  ;;  %v1825_v40 = vld [vmem:[#allocation9 + $0xb68] sm:$0xff]  ;;  %v9933_v26 = vld [vmem:[#allocation9 + $0xb80] sm:$0xff] }
 0x22a   : > { %4821 = vmatpush1.bf16.msra.mxu0 %v7612_v51  ;;  %5273 = vmatpush1.bf16.msra.mxu1 %v7614_v5  ;;  %v1376_v51 = vmax.f32 %v1141_v27, 0.0  ;;  %v1362_v5 = vmax.f32 %v1244_v55, 0.0  ;;  %v7636_v27 = vcombine.low %v9912_v31, %v9914_v19  ;;  %v1832_v36 = vld [vmem:[#allocation9 + $0xba0] sm:$0xff] }
 0x22b   : > { %4822 = vmatprep.subr.bf16.mxu0 %v7621_v7  ;;  %4779 = vmatprep.mubr.bf16.mxu0 %v9600_v47  ;;  %v1377_v29 = vmax.f32 %v1143_v49, 0.0  ;;  %v7628_v7 = vcombine.low %v9889_v22, %v9893_v18  ;;  %v9929_v49 = vpack.c.bf16 %v1363_v25, %v1355_v16  ;;  %v1249_v22 = vpop.f32.mrb[56].mxu1  ;;  %v7637_v18 = vcombine.high %v9912_v31, %v9914_v19  ;;  %v1833_v16 = vld [vmem:[#allocation9 + $0xba8] sm:$0xff] }
 0x22c   : > { %5231 = vmatprep.mubr.bf16.mxu1 %v9600_v47  ;;  %5274 = vmatprep.subr.bf16.mxu1 %v7623_v58  ;;  %v9921_v41 = vpack.c.bf16 %v1376_v51, %v1368_v32  ;;  %v9923_v30 = vpack.c.bf16 %v1362_v5, %v1354_v59  ;;  %v1146_v55 = vpop.f32.mrb[60].mxu0  ;;  %v1251_v32 = vpop.f32.mrb[57].mxu1  ;;  %v7638_v59 = vcombine.low %v1821_v12, %v1825_v40  ;;  %v1829_v51 = vld [vmem:[#allocation9 + $0xb88] sm:$0xff] }
 0x22d   : > { %v9927_v58 = vpack.c.bf16 %v1377_v29, %v1369_v63  ;;  %11126 = vst [vmem:[#allocation66_spill] sm:$0xff] %v9929_v49  ;;  %v1147_v34 = vadd.f32 %v1146_v55, %v9575_v21  ;;  %v7639_v63 = vcombine.high %v1821_v12, %v1825_v40  ;;  %v1253_v29 = vpop.f32.mrb[58].mxu1 }
 0x22e   : > { %11125 = vst [vmem:[#allocation65_spill] sm:$0xff] %v9923_v30  ;;  %4823 = vmatpush1.bf16.msra.mxu0 %v7620_v0  ;;  %5275 = vmatpush1.bf16.msra.mxu1 %v7622_v9  ;;  %v1148_v0 = vpop.f32.mrb[61].mxu0  ;;  %v1250_v9 = vadd.f32 %v1249_v22, %v9643_v3  ;;  %v1254_v40 = vadd.f32 %v1253_v29, %v9643_v3  ;;  %v1255_v12 = vpop.f32.mrb[59].mxu1  ;;  %v1841_v29 = vld [vmem:[#allocation9 + $0xbe8] sm:$0xff] }
 0x22f   : > { %4824 = vmatprep.subr.bf16.mxu0 %v7629_v17  ;;  %5276 = vmatprep.subr.bf16.mxu1 %v7631_v28  ;;  %v1149_v5 = vadd.f32 %v1148_v0, %v9579_v48  ;;  %v1150_v17 = vpop.f32.mrb[62].mxu0  ;;  %v1252_v28 = vadd.f32 %v1251_v32, %v9648_v56  ;;  %v1384_v31 = vmax.f32 %v1147_v34, 0.0  ;;  %v1256_v32 = vadd.f32 %v1255_v12, %v9648_v56 }
 0x230   : > { %v1151_v19 = vadd.f32 %v1150_v17, %v9575_v21  ;;  %v1152_v25 = vpop.f32.mrb[63].mxu0  ;;  %v1370_v55 = vmax.f32 %v1250_v9, 0.0  ;;  %v7645_v34 = vcombine.high %v9933_v26, %v1832_v36  ;;  %v1378_v17 = vmax.f32 %v1254_v40, 0.0  ;;  %v1836_v9 = vld [vmem:[#allocation9 + $0xbc0] sm:$0xff] }
 0x231   : > { %4780 = vmatmul.mubr.bf16.gmra.mrb[88].mxu0 %v9591_v11  ;;  %5232 = vmatmul.mubr.bf16.gmra.mrb[88].mxu1 %v9591_v11  ;;  %v1385_v22 = vmax.f32 %v1149_v5, 0.0  ;;  %v1153_v0 = vadd.f32 %v1152_v25, %v9579_v48  ;;  %v1371_v47 = vmax.f32 %v1252_v28, 0.0  ;;  %v7647_v11 = vcombine.high %v1829_v51, %v1833_v16  ;;  %v1837_v28 = vld [vmem:[#allocation9 + $0xbc8] sm:$0xff] }
 0x232   : > { %4825 = vmatpush1.bf16.msra.mxu0 %v7628_v7  ;;  %5277 = vmatpush1.bf16.msra.mxu1 %v7630_v24  ;;  %v1392_v21 = vmax.f32 %v1151_v19, 0.0  ;;  %v1840_v7 = vld [vmem:[#allocation9 + $0xbe0] sm:$0xff]  ;;  %v1379_v5 = vmax.f32 %v1256_v32, 0.0  ;;  %v7644_v48 = vcombine.low %v9933_v26, %v1832_v36  ;;  %v7646_v12 = vcombine.low %v1829_v51, %v1833_v16 }
 0x233   : > { %4826 = vmatprep.subr.bf16.mxu0 %v7637_v18  ;;  %4789 = vmatprep.mubr.bf16.mxu0 %v9663_v43  ;;  %v1393_v24 = vmax.f32 %v1153_v0, 0.0  ;;  %v9951_v18 = vpack.c.bf16 %v1378_v17, %v1370_v55  ;;  %v7653_v0 = vcombine.high %v1836_v9, %v1840_v7  ;;  %v1844_v32 = vld [vmem:[#allocation9 + $0xc00] sm:$0xff]  ;;  %v1849_v55 = vld [vmem:[#allocation9 + $0xc28] sm:$0xff]  ;;  %v7652_v16 = vcombine.low %v1836_v9, %v1840_v7 }
 0x234   : > { %5241 = vmatprep.mubr.bf16.mxu1 %v9663_v43  ;;  %5278 = vmatprep.subr.bf16.mxu1 %v7639_v63  ;;  %v9949_v25 = vpack.c.bf16 %v1392_v21, %v1384_v31  ;;  %v9955_v40 = vpack.c.bf16 %v1379_v5, %v1371_v47  ;;  %v1259_v63 = vpop.f32.mrb[60].mxu1  ;;  %v7655_v43 = vcombine.high %v1837_v28, %v1841_v29  ;;  %v1848_v31 = vld [vmem:[#allocation9 + $0xc20] sm:$0xff]  ;;  %v1845_v21 = vld [vmem:[#allocation9 + $0xc08] sm:$0xff] }
 0x235   : > { %11128 = vst [vmem:[#allocation68_spill] sm:$0xff] %v9951_v18  ;;  %v9953_v19 = vpack.c.bf16 %v1393_v24, %v1385_v22  ;;  %v1260_v26 = vadd.f32 %v1259_v63, %v9643_v3  ;;  %v1261_v36 = vpop.f32.mrb[61].mxu1  ;;  %v7654_v22 = vcombine.low %v1837_v28, %v1841_v29  ;;  %v7661_v24 = vcombine.high %v1844_v32, %v1848_v31  ;;  %v1860_v29 = vld [vmem:[#allocation9 + $0xc80] sm:$0xff] }
 0x236   : > { %11127 = vst [vmem:[#allocation67_spill] sm:$0xff] %v9949_v25  ;;  %4827 = vmatpush1.bf16.msra.mxu0 %v7636_v27  ;;  %5279 = vmatpush1.bf16.msra.mxu1 %v7638_v59  ;;  %11130 = vst [vmem:[#allocation70_spill] sm:$0xff] %v9955_v40  ;;  %v1262_v27 = vadd.f32 %v1261_v36, %v9648_v56  ;;  %v1263_v59 = vpop.f32.mrb[62].mxu1  ;;  %v7663_v5 = vcombine.high %v1845_v21, %v1849_v55  ;;  %v1856_v36 = vld [vmem:[#allocation9 + $0xc60] sm:$0xff] }
 0x237   : > { %11129 = vst [vmem:[#allocation69_spill] sm:$0xff] %v9953_v19  ;;  %4828 = vmatprep.subr.bf16.mxu0 %v7645_v34  ;;  %5280 = vmatprep.subr.bf16.mxu1 %v7647_v11  ;;  %v1386_v47 = vmax.f32 %v1260_v26, 0.0  ;;  %v1264_v51 = vadd.f32 %v1263_v59, %v9643_v3  ;;  %v1265_v11 = vpop.f32.mrb[63].mxu1  ;;  %v1852_v26 = vld [vmem:[#allocation9 + $0xc40] sm:$0xff]  ;;  %v1853_v59 = vld [vmem:[#allocation9 + $0xc48] sm:$0xff]  ;;  %v7660_v9 = vcombine.low %v1844_v32, %v1848_v31 }
 0x238   : > { %v1387_v34 = vmax.f32 %v1262_v27, 0.0  ;;  %v1266_v17 = vadd.f32 %v1265_v11, %v9648_v56  ;;  %v7662_v56 = vcombine.low %v1845_v21, %v1849_v55  ;;  %v7669_v28 = vcombine.high %v1852_v26, %v1856_v36  ;;  %v1861_v27 = vld [vmem:[#allocation9 + $0xc88] sm:$0xff]  ;;  %v1868_v21 = vld [vmem:[#allocation9 + $0xcc0] sm:$0xff] }
 0x239   : > { %4790 = vmatmul.mubr.bf16.gmra.mrb[92].mxu0 %v9654_v60  ;;  %5242 = vmatmul.mubr.bf16.gmra.mrb[92].mxu1 %v9654_v60  ;;  %v1394_v63 = vmax.f32 %v1264_v51, 0.0  ;;  %v1865_v51 = vld [vmem:[#allocation9 + $0xca8] sm:$0xff]  ;;  %v1872_v55 = vld [vmem:[#allocation9 + $0xce0] sm:$0xff] }
 0x23a   : > { %4829 = vmatpush1.bf16.msra.mxu0 %v7644_v48  ;;  %5281 = vmatpush1.bf16.msra.mxu1 %v7646_v12  ;;  %v1395_v3 = vmax.f32 %v1266_v17, 0.0  ;;  %v1857_v48 = vld [vmem:[#allocation9 + $0xc68] sm:$0xff]  ;;  %v7679_v31 = vcombine.high %v1861_v27, %v1865_v51  ;;  %v7678_v17 = vcombine.low %v1861_v27, %v1865_v51 }
 0x23b   : > { %4830 = vmatprep.subr.bf16.mxu0 %v7653_v0  ;;  %4832 = vmatprep.mubr.bf16.mxu0 %v9665_v45  ;;  %v9965_v12 = vpack.c.bf16 %v1394_v63, %v1386_v47  ;;  %v1864_v0 = vld [vmem:[#allocation9 + $0xca0] sm:$0xff]  ;;  %v7668_v47 = vcombine.low %v1852_v26, %v1856_v36  ;;  %v7670_v11 = vcombine.low %v1853_v59, %v1857_v48  ;;  %v1877_v36 = vld [vmem:[#allocation9 + $0xd08] sm:$0xff] }
 0x23c   : > { %5282 = vmatprep.subr.bf16.mxu1 %v7655_v43  ;;  %5284 = vmatprep.mubr.bf16.mxu1 %v9665_v45  ;;  %v9967_v7 = vpack.c.bf16 %v1395_v3, %v1387_v34  ;;  %v7671_v43 = vcombine.high %v1853_v59, %v1857_v48  ;;  %v7677_v32 = vcombine.high %v1860_v29, %v1864_v0  ;;  %v1880_v26 = vld [vmem:[#allocation9 + $0xd20] sm:$0xff]  ;;  %v1881_v3 = vld [vmem:[#allocation9 + $0xd28] sm:$0xff] }
 0x23d   : > { %11131 = vst [vmem:[#allocation71_spill] sm:$0xff] %v9965_v12  ;;  %v7676_v34 = vcombine.low %v1860_v29, %v1864_v0  ;;  %v7684_v59 = vcombine.low %v1868_v21, %v1872_v55  ;;  %v1888_v29 = vld [vmem:[#allocation9 + $0xd60] sm:$0xff]  ;;  %v1889_v0 = vld [vmem:[#allocation9 + $0xd68] sm:$0xff]  ;;  %v7694_v51 = vcombine.low %v1877_v36, %v1881_v3 }
 0x23e   : > { %4831 = vmatpush1.bf16.msra.mxu0 %v7652_v16  ;;  %5283 = vmatpush1.bf16.msra.mxu1 %v7654_v22  ;;  %11132 = vst [vmem:[#allocation72_spill] sm:$0xff] %v9967_v7  ;;  %v1869_v16 = vld [vmem:[#allocation9 + $0xcc8] sm:$0xff] }
 0x23f   : > { %4913 = vmatprep.subr.bf16.mxu0 %v7661_v24  ;;  %5365 = vmatprep.subr.bf16.mxu1 %v7663_v5  ;;  %v1873_v22 = vld [vmem:[#allocation9 + $0xce8] sm:$0xff]  ;;  %v7685_v24 = vcombine.high %v1868_v21, %v1872_v55  ;;  %v1876_v5 = vld [vmem:[#allocation9 + $0xd00] sm:$0xff] }
 0x240   : > { %v7687_v63 = vcombine.high %v1869_v16, %v1873_v22  ;;  %v7686_v48 = vcombine.low %v1869_v16, %v1873_v22  ;;  %v7692_v27 = vcombine.low %v1876_v5, %v1880_v26  ;;  %v1893_v21 = vld [vmem:[#allocation9 + $0xd88] sm:$0xff] }
 0x241   : > { %4833 = vmatmul.mubr.bf16.vlgmr.msra.gmra.mrb[64].mxu0 %v9656_v15  ;;  %5285 = vmatmul.mubr.bf16.vlgmr.msra.gmra.mrb[64].mxu1 %v9656_v15  ;;  %v1897_v55 = vld [vmem:[#allocation9 + $0xda8] sm:$0xff] }
 0x242   : > { %4914 = vmatpush1.bf16.msra.mxu0 %v7660_v9  ;;  %5366 = vmatpush1.bf16.msra.mxu1 %v7662_v56  ;;  %v7693_v9 = vcombine.high %v1876_v5, %v1880_v26  ;;  %v7695_v56 = vcombine.high %v1877_v36, %v1881_v3  ;;  %v1904_v5 = vld [vmem:[#allocation9 + $0xde0] sm:$0xff]  ;;  %v1905_v26 = vld [vmem:[#allocation9 + $0xde8] sm:$0xff]  ;;  %v7710_v3 = vcombine.low %v1893_v21, %v1897_v55 }
 0x243   : > { %4915 = vmatprep.subr.bf16.mxu0 %v7669_v28  ;;  %4842 = vmatprep.mubr.bf16.mxu0 %v9707_v52  ;;  %v1884_v28 = vld [vmem:[#allocation9 + $0xd40] sm:$0xff] }
 0x244   : > { %5294 = vmatprep.mubr.bf16.mxu1 %v9707_v52  ;;  %5367 = vmatprep.subr.bf16.mxu1 %v7671_v43  ;;  %v1885_v43 = vld [vmem:[#allocation9 + $0xd48] sm:$0xff]  ;;  %v7700_v16 = vcombine.low %v1884_v28, %v1888_v29 }
 0x245   : > { %v7702_v22 = vcombine.low %v1885_v43, %v1889_v0 }
 0x246   : > { %4916 = vmatpush1.bf16.msra.mxu0 %v7668_v47  ;;  %5368 = vmatpush1.bf16.msra.mxu1 %v7670_v11  ;;  %v7701_v47 = vcombine.high %v1884_v28, %v1888_v29  ;;  %v1892_v11 = vld [vmem:[#allocation9 + $0xd80] sm:$0xff]  ;;  %v1909_v28 = vld [vmem:[#allocation9 + $0xe08] sm:$0xff] }
 0x247   : > { %4917 = vmatprep.subr.bf16.mxu0 %v7677_v32  ;;  %5369 = vmatprep.subr.bf16.mxu1 %v7679_v31  ;;  %v7703_v32 = vcombine.high %v1885_v43, %v1889_v0  ;;  %v1896_v31 = vld [vmem:[#allocation9 + $0xda0] sm:$0xff]  ;;  %v1913_v29 = vld [vmem:[#allocation9 + $0xe28] sm:$0xff] }
 0x248   : > { %v7708_v36 = vcombine.low %v1892_v11, %v1896_v31 }
 0x249   : > { %4843 = vmatmul.mubr.bf16.gmra.mrb[68].mxu0 %v9701_v35  ;;  %5295 = vmatmul.mubr.bf16.gmra.mrb[68].mxu1 %v9701_v35 }
 0x24a   : > { %4918 = vmatpush1.bf16.msra.mxu0 %v7676_v34  ;;  %5370 = vmatpush1.bf16.msra.mxu1 %v7678_v17  ;;  %v7709_v34 = vcombine.high %v1892_v11, %v1896_v31  ;;  %v7711_v17 = vcombine.high %v1893_v21, %v1897_v55  ;;  %v1920_v11 = vld [vmem:[#allocation9 + $0xe60] sm:$0xff]  ;;  %v1921_v31 = vld [vmem:[#allocation9 + $0xe68] sm:$0xff]  ;;  %v7726_v55 = vcombine.low %v1909_v28, %v1913_v29 }
 0x24b   : > { %4919 = vmatprep.subr.bf16.mxu0 %v7685_v24  ;;  %4852 = vmatprep.mubr.bf16.mxu0 %v9751_v46  ;;  %v1900_v24 = vld [vmem:[#allocation9 + $0xdc0] sm:$0xff] }
 0x24c   : > { %5304 = vmatprep.mubr.bf16.mxu1 %v9751_v46  ;;  %5371 = vmatprep.subr.bf16.mxu1 %v7687_v63  ;;  %v1901_v63 = vld [vmem:[#allocation9 + $0xdc8] sm:$0xff]  ;;  %v7716_v43 = vcombine.low %v1900_v24, %v1904_v5 }
 0x24d   : > { %v7718_v0 = vcombine.low %v1901_v63, %v1905_v26 }
 0x24e   : > { %4920 = vmatpush1.bf16.msra.mxu0 %v7684_v59  ;;  %5372 = vmatpush1.bf16.msra.mxu1 %v7686_v48  ;;  %v7717_v59 = vcombine.high %v1900_v24, %v1904_v5  ;;  %v1908_v48 = vld [vmem:[#allocation9 + $0xe00] sm:$0xff]  ;;  %v1925_v24 = vld [vmem:[#allocation9 + $0xe88] sm:$0xff] }
 0x24f   : > { %4921 = vmatprep.subr.bf16.mxu0 %v7693_v9  ;;  %5373 = vmatprep.subr.bf16.mxu1 %v7695_v56  ;;  %v7719_v9 = vcombine.high %v1901_v63, %v1905_v26  ;;  %v1912_v56 = vld [vmem:[#allocation9 + $0xe20] sm:$0xff]  ;;  %v1929_v5 = vld [vmem:[#allocation9 + $0xea8] sm:$0xff] }
 0x250   : > { %v7724_v21 = vcombine.low %v1908_v48, %v1912_v56 }
 0x251   : > { %4853 = vmatmul.mubr.bf16.gmra.mrb[72].mxu0 %v9745_v62  ;;  %5305 = vmatmul.mubr.bf16.gmra.mrb[72].mxu1 %v9745_v62 }
 0x252   : > { %4922 = vmatpush1.bf16.msra.mxu0 %v7692_v27  ;;  %5374 = vmatpush1.bf16.msra.mxu1 %v7694_v51  ;;  %v7725_v27 = vcombine.high %v1908_v48, %v1912_v56  ;;  %v7727_v51 = vcombine.high %v1909_v28, %v1913_v29  ;;  %v1936_v48 = vld [vmem:[#allocation9 + $0xee0] sm:$0xff]  ;;  %v1937_v56 = vld [vmem:[#allocation9 + $0xee8] sm:$0xff]  ;;  %v7742_v29 = vcombine.low %v1925_v24, %v1929_v5 }
 0x253   : > { %4923 = vmatprep.subr.bf16.mxu0 %v7701_v47  ;;  %4862 = vmatprep.mubr.bf16.mxu0 %v9795_v33  ;;  %v1916_v47 = vld [vmem:[#allocation9 + $0xe40] sm:$0xff] }
 0x254   : > { %5314 = vmatprep.mubr.bf16.mxu1 %v9795_v33  ;;  %5375 = vmatprep.subr.bf16.mxu1 %v7703_v32  ;;  %v1917_v32 = vld [vmem:[#allocation9 + $0xe48] sm:$0xff]  ;;  %v7732_v63 = vcombine.low %v1916_v47, %v1920_v11 }
 0x255   : > { %v7734_v26 = vcombine.low %v1917_v32, %v1921_v31 }
 0x256   : > { %4924 = vmatpush1.bf16.msra.mxu0 %v7700_v16  ;;  %5376 = vmatpush1.bf16.msra.mxu1 %v7702_v22  ;;  %v7733_v16 = vcombine.high %v1916_v47, %v1920_v11  ;;  %v1924_v22 = vld [vmem:[#allocation9 + $0xe80] sm:$0xff]  ;;  %v1941_v47 = vld [vmem:[#allocation9 + $0xf08] sm:$0xff] }
 0x257   : > { %4925 = vmatprep.subr.bf16.mxu0 %v7709_v34  ;;  %5377 = vmatprep.subr.bf16.mxu1 %v7711_v17  ;;  %v7735_v34 = vcombine.high %v1917_v32, %v1921_v31  ;;  %v1928_v17 = vld [vmem:[#allocation9 + $0xea0] sm:$0xff]  ;;  %v1945_v11 = vld [vmem:[#allocation9 + $0xf28] sm:$0xff] }
 0x258   : > { %v7740_v28 = vcombine.low %v1924_v22, %v1928_v17 }
 0x259   : > { %4863 = vmatmul.mubr.bf16.gmra.mrb[76].mxu0 %v9789_v6  ;;  %5315 = vmatmul.mubr.bf16.gmra.mrb[76].mxu1 %v9789_v6 }
 0x25a   : > { %4926 = vmatpush1.bf16.msra.mxu0 %v7708_v36  ;;  %5378 = vmatpush1.bf16.msra.mxu1 %v7710_v3  ;;  %v7741_v36 = vcombine.high %v1924_v22, %v1928_v17  ;;  %v7743_v3 = vcombine.high %v1925_v24, %v1929_v5  ;;  %v1952_v22 = vld [vmem:[#allocation9 + $0xf60] sm:$0xff]  ;;  %v1953_v17 = vld [vmem:[#allocation9 + $0xf68] sm:$0xff]  ;;  %v7758_v5 = vcombine.low %v1941_v47, %v1945_v11 }
 0x25b   : > { %4927 = vmatprep.subr.bf16.mxu0 %v7717_v59  ;;  %4872 = vmatprep.mubr.bf16.mxu0 %v9839_v10  ;;  %v1932_v59 = vld [vmem:[#allocation9 + $0xec0] sm:$0xff] }
 0x25c   : > { %5324 = vmatprep.mubr.bf16.mxu1 %v9839_v10  ;;  %5379 = vmatprep.subr.bf16.mxu1 %v7719_v9  ;;  %v1933_v9 = vld [vmem:[#allocation9 + $0xec8] sm:$0xff]  ;;  %v7748_v32 = vcombine.low %v1932_v59, %v1936_v48 }
 0x25d   : > { %v7750_v31 = vcombine.low %v1933_v9, %v1937_v56 }
 0x25e   : > { %4928 = vmatpush1.bf16.msra.mxu0 %v7716_v43  ;;  %5380 = vmatpush1.bf16.msra.mxu1 %v7718_v0  ;;  %v7749_v43 = vcombine.high %v1932_v59, %v1936_v48  ;;  %v1940_v0 = vld [vmem:[#allocation9 + $0xf00] sm:$0xff]  ;;  %v1957_v59 = vld [vmem:[#allocation9 + $0xf88] sm:$0xff] }
 0x25f   : > { %4929 = vmatprep.subr.bf16.mxu0 %v7725_v27  ;;  %5381 = vmatprep.subr.bf16.mxu1 %v7727_v51  ;;  %v7751_v27 = vcombine.high %v1933_v9, %v1937_v56  ;;  %v1944_v51 = vld [vmem:[#allocation9 + $0xf20] sm:$0xff]  ;;  %v1961_v48 = vld [vmem:[#allocation9 + $0xfa8] sm:$0xff] }
 0x260   : > { %v7756_v24 = vcombine.low %v1940_v0, %v1944_v51 }
 0x261   : > { %4873 = vmatmul.mubr.bf16.gmra.mrb[80].mxu0 %v9833_v23  ;;  %5325 = vmatmul.mubr.bf16.gmra.mrb[80].mxu1 %v9833_v23 }
 0x262   : > { %4930 = vmatpush1.bf16.msra.mxu0 %v7724_v21  ;;  %5382 = vmatpush1.bf16.msra.mxu1 %v7726_v55  ;;  %v7757_v21 = vcombine.high %v1940_v0, %v1944_v51  ;;  %v7759_v55 = vcombine.high %v1941_v47, %v1945_v11  ;;  %v1968_v0 = vld [vmem:[#allocation9 + $0xfe0] sm:$0xff]  ;;  %v1969_v51 = vld [vmem:[#allocation9 + $0xfe8] sm:$0xff]  ;;  %v7774_v11 = vcombine.low %v1957_v59, %v1961_v48 }
 0x263   : > { %4931 = vmatprep.subr.bf16.mxu0 %v7733_v16  ;;  %4882 = vmatprep.mubr.bf16.mxu0 %v9883_v44  ;;  %v1948_v16 = vld [vmem:[#allocation9 + $0xf40] sm:$0xff] }
 0x264   : > { %5334 = vmatprep.mubr.bf16.mxu1 %v9883_v44  ;;  %5383 = vmatprep.subr.bf16.mxu1 %v7735_v34  ;;  %v1949_v34 = vld [vmem:[#allocation9 + $0xf48] sm:$0xff]  ;;  %v7764_v9 = vcombine.low %v1948_v16, %v1952_v22 }
 0x265   : > { %v7766_v56 = vcombine.low %v1949_v34, %v1953_v17 }
 0x266   : > { %4932 = vmatpush1.bf16.msra.mxu0 %v7732_v63  ;;  %5384 = vmatpush1.bf16.msra.mxu1 %v7734_v26  ;;  %v7765_v63 = vcombine.high %v1948_v16, %v1952_v22  ;;  %v1956_v26 = vld [vmem:[#allocation9 + $0xf80] sm:$0xff]  ;;  %v1463_v16 = vld [vmem:[#allocation9 + $0x18] sm:$0xff] }
 0x267   : > { %4933 = vmatprep.subr.bf16.mxu0 %v7741_v36  ;;  %5385 = vmatprep.subr.bf16.mxu1 %v7743_v3  ;;  %v7767_v36 = vcombine.high %v1949_v34, %v1953_v17  ;;  %v1960_v3 = vld [vmem:[#allocation9 + $0xfa0] sm:$0xff]  ;;  %v1467_v22 = vld [vmem:[#allocation9 + $0x38] sm:$0xff] }
 0x268   : > { %v7772_v47 = vcombine.low %v1956_v26, %v1960_v3 }
 0x269   : > { %4883 = vmatmul.mubr.bf16.gmra.mrb[84].mxu0 %v9877_v8  ;;  %5335 = vmatmul.mubr.bf16.gmra.mrb[84].mxu1 %v9877_v8 }
 0x26a   : > { %4934 = vmatpush1.bf16.msra.mxu0 %v7740_v28  ;;  %5386 = vmatpush1.bf16.msra.mxu1 %v7742_v29  ;;  %v7773_v28 = vcombine.high %v1956_v26, %v1960_v3  ;;  %v7775_v29 = vcombine.high %v1957_v59, %v1961_v48  ;;  %v1474_v26 = vld [vmem:[#allocation9 + $0x70] sm:$0xff]  ;;  %v1471_v3 = vld [vmem:[#allocation9 + $0x58] sm:$0xff]  ;;  %v7282_v48 = vcombine.low %v1463_v16, %v1467_v22 }
 0x26b   : > { %4935 = vmatprep.subr.bf16.mxu0 %v7749_v43  ;;  %4892 = vmatprep.mubr.bf16.mxu0 %v9927_v58  ;;  %v1964_v43 = vld [vmem:[#allocation9 + $0xfc0] sm:$0xff]  ;;  %v1475_v59 = vld [vmem:[#allocation9 + $0x78] sm:$0xff] }
 0x26c   : > { %5344 = vmatprep.mubr.bf16.mxu1 %v9927_v58  ;;  %5387 = vmatprep.subr.bf16.mxu1 %v7751_v27  ;;  %v1965_v27 = vld [vmem:[#allocation9 + $0xfc8] sm:$0xff]  ;;  %v7780_v34 = vcombine.low %v1964_v43, %v1968_v0 }
 0x26d   : > { %v7782_v17 = vcombine.low %v1965_v27, %v1969_v51 }
 0x26e   : > { %4936 = vmatpush1.bf16.msra.mxu0 %v7748_v32  ;;  %5388 = vmatpush1.bf16.msra.mxu1 %v7750_v31  ;;  %v7781_v32 = vcombine.high %v1964_v43, %v1968_v0  ;;  %v7783_v31 = vcombine.high %v1965_v27, %v1969_v51  ;;  %v1479_v0 = vld [vmem:[#allocation9 + $0x98] sm:$0xff] }
 0x26f   : > { %4937 = vmatprep.subr.bf16.mxu0 %v7757_v21  ;;  %5389 = vmatprep.subr.bf16.mxu1 %v7759_v55  ;;  %v1462_v21 = vld [vmem:[#allocation9 + $0x10] sm:$0xff]  ;;  %v1483_v27 = vld [vmem:[#allocation9 + $0xb8] sm:$0xff] }
 0x270   : > { %v1466_v55 = vld [vmem:[#allocation9 + $0x30] sm:$0xff] }
 0x271   : > { %4893 = vmatmul.mubr.bf16.gmra.mrb[88].mxu0 %v9921_v41  ;;  %5345 = vmatmul.mubr.bf16.gmra.mrb[88].mxu1 %v9921_v41 }
 0x272   : > { %4938 = vmatpush1.bf16.msra.mxu0 %v7756_v24  ;;  %5390 = vmatpush1.bf16.msra.mxu1 %v7758_v5  ;;  %v7281_v24 = vcombine.high %v1462_v21, %v1466_v55  ;;  %v7283_v5 = vcombine.high %v1463_v16, %v1467_v22  ;;  %v1491_v16 = vld [vmem:[#allocation9 + $0xf8] sm:$0xff]  ;;  %v7298_v22 = vcombine.low %v1479_v0, %v1483_v27 }
 0x273   : > { %4939 = vmatprep.subr.bf16.mxu0 %v7765_v63  ;;  %4902 = vmatprep.mubr.bf16.mxu0 %v9953_v19  ;;  %v1470_v63 = vld [vmem:[#allocation9 + $0x50] sm:$0xff] }
 0x274   : > { %5354 = vmatprep.mubr.bf16.mxu1 %v9953_v19  ;;  %5391 = vmatprep.subr.bf16.mxu1 %v7767_v36  ;;  %v7280_v36 = vcombine.low %v1462_v21, %v1466_v55  ;;  %v7288_v43 = vcombine.low %v1470_v63, %v1474_v26  ;;  %v1487_v55 = vld [vmem:[#allocation9 + $0xd8] sm:$0xff] }
 0x276   : > { %4940 = vmatpush1.bf16.msra.mxu0 %v7764_v9  ;;  %5392 = vmatpush1.bf16.msra.mxu1 %v7766_v56  ;;  %v7289_v9 = vcombine.high %v1470_v63, %v1474_v26  ;;  %v1478_v56 = vld [vmem:[#allocation9 + $0x90] sm:$0xff]  ;;  %v1495_v26 = vld [vmem:[#allocation9 + $0x118] sm:$0xff] }
 0x277   : > { %4941 = vmatprep.subr.bf16.mxu0 %v7773_v28  ;;  %5393 = vmatprep.subr.bf16.mxu1 %v7775_v29  ;;  %v1482_v28 = vld [vmem:[#allocation9 + $0xb0] sm:$0xff]  ;;  %v7291_v29 = vcombine.high %v1471_v3, %v1475_v59 }
 0x278   : > { %v7297_v51 = vcombine.high %v1478_v56, %v1482_v28  ;;  %v7296_v21 = vcombine.low %v1478_v56, %v1482_v28  ;;  %v1506_v56 = vld [vmem:[#allocation9 + $0x170] sm:$0xff] }
 0x279   : > { %4903 = vmatmul.mubr.bf16.gmra.mrb[92].mxu0 %v9949_v25  ;;  %5355 = vmatmul.mubr.bf16.gmra.mrb[92].mxu1 %v9949_v25 }
 0x27a   : > { %4942 = vmatpush1.bf16.msra.mxu0 %v7772_v47  ;;  %4945 = vmatprep.mubr.bf16.mxu0 %v9709_v42  ;;  %v7290_v47 = vcombine.low %v1471_v3, %v1475_v59  ;;  %v7306_v59 = vcombine.low %v1487_v55, %v1491_v16 }
 0x27b   : > { %5394 = vmatpush1.bf16.msra.mxu1 %v7774_v11  ;;  %5397 = vmatprep.mubr.bf16.mxu1 %v9709_v42  ;;  %v7299_v11 = vcombine.high %v1479_v0, %v1483_v27  ;;  %v10304_v42 = vld [vmem:[#allocation9 + $0xf70] sm:$0xff] }
 0x27c   : > { %4943 = vmatprep.subr.bf16.mxu0 %v7781_v32  ;;  %5395 = vmatprep.subr.bf16.mxu1 %v7783_v31  ;;  %v1486_v32 = vld [vmem:[#allocation9 + $0xd0] sm:$0xff] }
 0x27d   : > { %v1490_v31 = vld [vmem:[#allocation9 + $0xf0] sm:$0xff] }
 0x27e   : > { %4944 = vmatpush1.bf16.msra.mxu0 %v7780_v34  ;;  %v7305_v34 = vcombine.high %v1486_v32, %v1490_v31  ;;  %v7304_v63 = vcombine.low %v1486_v32, %v1490_v31  ;;  %v1511_v31 = vld [vmem:[#allocation9 + $0x198] sm:$0xff] }
 0x27f   : > { %5396 = vmatpush1.bf16.msra.mxu1 %v7782_v17  ;;  %5478 = vmatprep.subr.bf16.mxu0 %v7281_v24  ;;  %v1494_v17 = vld [vmem:[#allocation9 + $0x110] sm:$0xff] }
 0x280   : > { %5930 = vmatprep.subr.bf16.mxu1 %v7283_v5  ;;  %v1498_v24 = vld [vmem:[#allocation9 + $0x130] sm:$0xff]  ;;  %v7307_v5 = vcombine.high %v1487_v55, %v1491_v16 }
 0x281   : > { %4946 = vmatmul.mubr.bf16.vlgmr.msra.gmra.mrb[64].mxu0 %v9703_v57  ;;  %v7313_v3 = vcombine.high %v1494_v17, %v1498_v24  ;;  %v7312_v28 = vcombine.low %v1494_v17, %v1498_v24  ;;  %v1522_v17 = vld [vmem:[#allocation9 + $0x1f0] sm:$0xff] }
 0x282   : > { %5398 = vmatmul.mubr.bf16.vlgmr.msra.gmra.mrb[64].mxu1 %v9703_v57  ;;  %5479 = vmatpush1.bf16.msra.mxu0 %v7280_v36  ;;  %v1499_v36 = vld [vmem:[#allocation9 + $0x138] sm:$0xff] }
 0x283   : > { %4955 = vmatprep.mubr.bf16.mxu0 %v9753_v54  ;;  %5407 = vmatprep.mubr.bf16.mxu1 %v9753_v54  ;;  %v7314_v0 = vcombine.low %v1495_v26, %v1499_v36 }
 0x284   : > { %5931 = vmatpush1.bf16.msra.mxu1 %v7282_v48  ;;  %5480 = vmatprep.subr.bf16.mxu0 %v7289_v9  ;;  %v7315_v48 = vcombine.high %v1495_v26, %v1499_v36  ;;  %v1502_v9 = vld [vmem:[#allocation9 + $0x150] sm:$0xff] }
 0x285   : > { %5932 = vmatprep.subr.bf16.mxu1 %v7291_v29  ;;  %v1503_v29 = vld [vmem:[#allocation9 + $0x158] sm:$0xff]  ;;  %v7321_v27 = vcombine.high %v1502_v9, %v1506_v56  ;;  %v7320_v32 = vcombine.low %v1502_v9, %v1506_v56 }
 0x286   : > { %5481 = vmatpush1.bf16.msra.mxu0 %v7288_v43  ;;  %v1507_v43 = vld [vmem:[#allocation9 + $0x178] sm:$0xff] }
 0x287   : > { %5482 = vmatprep.subr.bf16.mxu0 %v7297_v51  ;;  %v1510_v51 = vld [vmem:[#allocation9 + $0x190] sm:$0xff]  ;;  %v7322_v16 = vcombine.low %v1503_v29, %v1507_v43  ;;  %v1527_v56 = vld [vmem:[#allocation9 + $0x218] sm:$0xff] }
 0x288   : > { %5933 = vmatpush1.bf16.msra.mxu1 %v7290_v47  ;;  %v1514_v47 = vld [vmem:[#allocation9 + $0x1b0] sm:$0xff] }
 0x289   : > { %4956 = vmatmul.mubr.bf16.gmra.mrb[68].mxu0 %v9747_v1  ;;  %5934 = vmatprep.subr.bf16.mxu1 %v7299_v11  ;;  %v7323_v11 = vcombine.high %v1503_v29, %v1507_v43  ;;  %v7329_v55 = vcombine.high %v1510_v51, %v1514_v47  ;;  %v7328_v24 = vcombine.low %v1510_v51, %v1514_v47  ;;  %v1538_v51 = vld [vmem:[#allocation9 + $0x270] sm:$0xff] }
 0x28a   : > { %5408 = vmatmul.mubr.bf16.gmra.mrb[68].mxu1 %v9747_v1  ;;  %5483 = vmatpush1.bf16.msra.mxu0 %v7296_v21  ;;  %v1515_v21 = vld [vmem:[#allocation9 + $0x1b8] sm:$0xff] }
 0x28b   : > { %4965 = vmatprep.mubr.bf16.mxu0 %v9797_v4  ;;  %5417 = vmatprep.mubr.bf16.mxu1 %v9797_v4  ;;  %v7330_v26 = vcombine.low %v1511_v31, %v1515_v21 }
 0x28c   : > { %5935 = vmatpush1.bf16.msra.mxu1 %v7298_v22  ;;  %5484 = vmatprep.subr.bf16.mxu0 %v7305_v34  ;;  %v7331_v22 = vcombine.high %v1511_v31, %v1515_v21  ;;  %v1518_v34 = vld [vmem:[#allocation9 + $0x1d0] sm:$0xff] }
 0x28d   : > { %5936 = vmatprep.subr.bf16.mxu1 %v7307_v5  ;;  %v1519_v5 = vld [vmem:[#allocation9 + $0x1d8] sm:$0xff]  ;;  %v7337_v36 = vcombine.high %v1518_v34, %v1522_v17  ;;  %v7336_v9 = vcombine.low %v1518_v34, %v1522_v17 }
 0x28e   : > { %5485 = vmatpush1.bf16.msra.mxu0 %v7304_v63  ;;  %v1523_v63 = vld [vmem:[#allocation9 + $0x1f8] sm:$0xff] }
 0x28f   : > { %5486 = vmatprep.subr.bf16.mxu0 %v7313_v3  ;;  %v1526_v3 = vld [vmem:[#allocation9 + $0x210] sm:$0xff]  ;;  %v7338_v43 = vcombine.low %v1519_v5, %v1523_v63  ;;  %v1543_v17 = vld [vmem:[#allocation9 + $0x298] sm:$0xff] }
 0x290   : > { %5937 = vmatpush1.bf16.msra.mxu1 %v7306_v59  ;;  %v1530_v59 = vld [vmem:[#allocation9 + $0x230] sm:$0xff] }
 0x291   : > { %4966 = vmatmul.mubr.bf16.gmra.mrb[72].mxu0 %v9791_v20  ;;  %5938 = vmatprep.subr.bf16.mxu1 %v7315_v48  ;;  %v7339_v48 = vcombine.high %v1519_v5, %v1523_v63  ;;  %v7345_v29 = vcombine.high %v1526_v3, %v1530_v59  ;;  %v7344_v47 = vcombine.low %v1526_v3, %v1530_v59  ;;  %v1554_v3 = vld [vmem:[#allocation9 + $0x2f0] sm:$0xff] }
 0x292   : > { %5418 = vmatmul.mubr.bf16.gmra.mrb[72].mxu1 %v9791_v20  ;;  %5487 = vmatpush1.bf16.msra.mxu0 %v7312_v28  ;;  %v1531_v28 = vld [vmem:[#allocation9 + $0x238] sm:$0xff] }
 0x293   : > { %4975 = vmatprep.mubr.bf16.mxu0 %v9841_v53  ;;  %5427 = vmatprep.mubr.bf16.mxu1 %v9841_v53  ;;  %v7346_v31 = vcombine.low %v1527_v56, %v1531_v28  ;;  %v10272_v53 = vld [vmem:[#allocation9 + $0xf38] sm:$0xff] }
 0x294   : > { %5939 = vmatpush1.bf16.msra.mxu1 %v7314_v0  ;;  %5488 = vmatprep.subr.bf16.mxu0 %v7321_v27  ;;  %v7347_v0 = vcombine.high %v1527_v56, %v1531_v28  ;;  %v1534_v27 = vld [vmem:[#allocation9 + $0x250] sm:$0xff] }
 0x295   : > { %5940 = vmatprep.subr.bf16.mxu1 %v7323_v11  ;;  %v1535_v11 = vld [vmem:[#allocation9 + $0x258] sm:$0xff]  ;;  %v7353_v21 = vcombine.high %v1534_v27, %v1538_v51  ;;  %v7352_v34 = vcombine.low %v1534_v27, %v1538_v51 }
 0x296   : > { %5489 = vmatpush1.bf16.msra.mxu0 %v7320_v32  ;;  %v1539_v32 = vld [vmem:[#allocation9 + $0x278] sm:$0xff] }
 0x297   : > { %5490 = vmatprep.subr.bf16.mxu0 %v7329_v55  ;;  %v1542_v55 = vld [vmem:[#allocation9 + $0x290] sm:$0xff]  ;;  %v7354_v63 = vcombine.low %v1535_v11, %v1539_v32  ;;  %v1559_v51 = vld [vmem:[#allocation9 + $0x318] sm:$0xff] }
 0x298   : > { %5941 = vmatpush1.bf16.msra.mxu1 %v7322_v16  ;;  %v1546_v16 = vld [vmem:[#allocation9 + $0x2b0] sm:$0xff] }
 0x299   : > { %4976 = vmatmul.mubr.bf16.gmra.mrb[76].mxu0 %v9835_v39  ;;  %5942 = vmatprep.subr.bf16.mxu1 %v7331_v22  ;;  %v7355_v22 = vcombine.high %v1535_v11, %v1539_v32  ;;  %v7361_v5 = vcombine.high %v1542_v55, %v1546_v16  ;;  %v7360_v59 = vcombine.low %v1542_v55, %v1546_v16  ;;  %v1570_v55 = vld [vmem:[#allocation9 + $0x370] sm:$0xff] }
 0x29a   : > { %5428 = vmatmul.mubr.bf16.gmra.mrb[76].mxu1 %v9835_v39  ;;  %5491 = vmatpush1.bf16.msra.mxu0 %v7328_v24  ;;  %v1547_v24 = vld [vmem:[#allocation9 + $0x2b8] sm:$0xff]  ;;  %v10258_v39 = vld [vmem:[#allocation9 + $0xf30] sm:$0xff] }
 0x29b   : > { %4985 = vmatprep.mubr.bf16.mxu0 %v9885_v37  ;;  %5437 = vmatprep.mubr.bf16.mxu1 %v9885_v37  ;;  %v7362_v56 = vcombine.low %v1543_v17, %v1547_v24 }
 0x29c   : > { %5943 = vmatpush1.bf16.msra.mxu1 %v7330_v26  ;;  %5492 = vmatprep.subr.bf16.mxu0 %v7337_v36  ;;  %v7363_v26 = vcombine.high %v1543_v17, %v1547_v24  ;;  %v1550_v36 = vld [vmem:[#allocation9 + $0x2d0] sm:$0xff] }
 0x29d   : > { %5944 = vmatprep.subr.bf16.mxu1 %v7339_v48  ;;  %v1551_v48 = vld [vmem:[#allocation9 + $0x2d8] sm:$0xff]  ;;  %v7369_v28 = vcombine.high %v1550_v36, %v1554_v3  ;;  %v7368_v27 = vcombine.low %v1550_v36, %v1554_v3 }
 0x29e   : > { %5493 = vmatpush1.bf16.msra.mxu0 %v7336_v9  ;;  %v1555_v9 = vld [vmem:[#allocation9 + $0x2f8] sm:$0xff] }
 0x29f   : > { %5494 = vmatprep.subr.bf16.mxu0 %v7345_v29  ;;  %v1558_v29 = vld [vmem:[#allocation9 + $0x310] sm:$0xff]  ;;  %v7370_v32 = vcombine.low %v1551_v48, %v1555_v9  ;;  %v1575_v3 = vld [vmem:[#allocation9 + $0x398] sm:$0xff] }
 0x2a0   : > { %5945 = vmatpush1.bf16.msra.mxu1 %v7338_v43  ;;  %v1562_v43 = vld [vmem:[#allocation9 + $0x330] sm:$0xff] }
 0x2a1   : > { %4986 = vmatmul.mubr.bf16.gmra.mrb[80].mxu0 %v9879_v50  ;;  %5946 = vmatprep.subr.bf16.mxu1 %v7347_v0  ;;  %v7371_v0 = vcombine.high %v1551_v48, %v1555_v9  ;;  %v7377_v11 = vcombine.high %v1558_v29, %v1562_v43  ;;  %v7376_v16 = vcombine.low %v1558_v29, %v1562_v43  ;;  %v1586_v29 = vld [vmem:[#allocation9 + $0x3f0] sm:$0xff] }
 0x2a2   : > { %5438 = vmatmul.mubr.bf16.gmra.mrb[80].mxu1 %v9879_v50  ;;  %5495 = vmatpush1.bf16.msra.mxu0 %v7344_v47  ;;  %v1563_v47 = vld [vmem:[#allocation9 + $0x338] sm:$0xff] }
 0x2a3   : > { %4995 = vmatprep.mubr.bf16.mxu0 %v9929_v49  ;;  %5447 = vmatprep.mubr.bf16.mxu1 %v9929_v49  ;;  %v7378_v17 = vcombine.low %v1559_v51, %v1563_v47  ;;  %v10236_v49 = vld [vmem:[#allocation9 + $0xef0] sm:$0xff]  ;;  %v10245_v50 = vld [vmem:[#allocation9 + $0xed8] sm:$0xff] }
 0x2a4   : > { %5947 = vmatpush1.bf16.msra.mxu1 %v7346_v31  ;;  %5496 = vmatprep.subr.bf16.mxu0 %v7353_v21  ;;  %v7379_v31 = vcombine.high %v1559_v51, %v1563_v47  ;;  %v1566_v21 = vld [vmem:[#allocation9 + $0x350] sm:$0xff] }
 0x2a5   : > { %5948 = vmatprep.subr.bf16.mxu1 %v7355_v22  ;;  %v1567_v22 = vld [vmem:[#allocation9 + $0x358] sm:$0xff]  ;;  %v7385_v24 = vcombine.high %v1566_v21, %v1570_v55  ;;  %v7384_v36 = vcombine.low %v1566_v21, %v1570_v55 }
 0x2a6   : > { %5497 = vmatpush1.bf16.msra.mxu0 %v7352_v34  ;;  %v1571_v34 = vld [vmem:[#allocation9 + $0x378] sm:$0xff] }
 0x2a7   : > { %5498 = vmatprep.subr.bf16.mxu0 %v7361_v5  ;;  %v1574_v5 = vld [vmem:[#allocation9 + $0x390] sm:$0xff]  ;;  %v7386_v9 = vcombine.low %v1567_v22, %v1571_v34  ;;  %v1591_v55 = vld [vmem:[#allocation9 + $0x418] sm:$0xff] }
 0x2a8   : > { %5949 = vmatpush1.bf16.msra.mxu1 %v7354_v63  ;;  %v1578_v63 = vld [vmem:[#allocation9 + $0x3b0] sm:$0xff] }
 0x2a9   : > { %4996 = vmatmul.mubr.bf16.gmra.mrb[84].mxu0 %v9923_v30  ;;  %5950 = vmatprep.subr.bf16.mxu1 %v7363_v26  ;;  %v7387_v26 = vcombine.high %v1567_v22, %v1571_v34  ;;  %v7393_v48 = vcombine.high %v1574_v5, %v1578_v63  ;;  %v7392_v43 = vcombine.low %v1574_v5, %v1578_v63 }
 0x2aa   : > { %5448 = vmatmul.mubr.bf16.gmra.mrb[84].mxu1 %v9923_v30  ;;  %5499 = vmatpush1.bf16.msra.mxu0 %v7360_v59  ;;  %v1579_v59 = vld [vmem:[#allocation9 + $0x3b8] sm:$0xff] }
 0x2ab   : > { %5005 = vmatprep.mubr.bf16.mxu0 %v9955_v40  ;;  %5457 = vmatprep.mubr.bf16.mxu1 %v9955_v40  ;;  %v7394_v51 = vcombine.low %v1575_v3, %v1579_v59  ;;  %v10221_v40 = vld [vmem:[#allocation9 + $0xeb0] sm:$0xff]  ;;  %v10223_v30 = vld [vmem:[#allocation9 + $0xe98] sm:$0xff] }
 0x2ac   : > { %5951 = vmatpush1.bf16.msra.mxu1 %v7362_v56  ;;  %5500 = vmatprep.subr.bf16.mxu0 %v7369_v28  ;;  %v7395_v56 = vcombine.high %v1575_v3, %v1579_v59  ;;  %v1582_v28 = vld [vmem:[#allocation9 + $0x3d0] sm:$0xff] }
 0x2ad   : > { %5952 = vmatprep.subr.bf16.mxu1 %v7371_v0  ;;  %v1583_v0 = vld [vmem:[#allocation9 + $0x3d8] sm:$0xff]  ;;  %v7401_v47 = vcombine.high %v1582_v28, %v1586_v29  ;;  %v7400_v21 = vcombine.low %v1582_v28, %v1586_v29 }
 0x2ae   : > { %5501 = vmatpush1.bf16.msra.mxu0 %v7368_v27  ;;  %v1587_v27 = vld [vmem:[#allocation9 + $0x3f8] sm:$0xff] }
 0x2af   : > { %5502 = vmatprep.subr.bf16.mxu0 %v7377_v11  ;;  %v1590_v11 = vld [vmem:[#allocation9 + $0x410] sm:$0xff]  ;;  %v7402_v34 = vcombine.low %v1583_v0, %v1587_v27  ;;  %v1607_v28 = vld [vmem:[#allocation9 + $0x498] sm:$0xff] }
 0x2b0   : > { %5953 = vmatpush1.bf16.msra.mxu1 %v7370_v32  ;;  %v1594_v32 = vld [vmem:[#allocation9 + $0x430] sm:$0xff]  ;;  %v1611_v29 = vld [vmem:[#allocation9 + $0x4b8] sm:$0xff] }
 0x2b1   : > { %5006 = vmatmul.mubr.bf16.gmra.mrb[88].mxu0 %v9951_v18  ;;  %5954 = vmatprep.subr.bf16.mxu1 %v7379_v31  ;;  %v7403_v31 = vcombine.high %v1583_v0, %v1587_v27  ;;  %v7409_v22 = vcombine.high %v1590_v11, %v1594_v32  ;;  %v7408_v63 = vcombine.low %v1590_v11, %v1594_v32  ;;  %v1614_v27 = vld [vmem:[#allocation9 + $0x4d0] sm:$0xff]  ;;  %v1615_v32 = vld [vmem:[#allocation9 + $0x4d8] sm:$0xff] }
 0x2b2   : > { %5458 = vmatmul.mubr.bf16.gmra.mrb[88].mxu1 %v9951_v18  ;;  %5503 = vmatpush1.bf16.msra.mxu0 %v7376_v16  ;;  %v1595_v16 = vld [vmem:[#allocation9 + $0x438] sm:$0xff] }
 0x2b3   : > { %5015 = vmatprep.mubr.bf16.mxu0 %v9967_v7  ;;  %5467 = vmatprep.mubr.bf16.mxu1 %v9967_v7  ;;  %v7411_v5 = vcombine.high %v1591_v55, %v1595_v16  ;;  %v7410_v59 = vcombine.low %v1591_v55, %v1595_v16  ;;  %v7426_v55 = vcombine.low %v1607_v28, %v1611_v29  ;;  %v1622_v16 = vld [vmem:[#allocation9 + $0x510] sm:$0xff]  ;;  %v10209_v18 = vld [vmem:[#allocation9 + $0xe78] sm:$0xff] }
 0x2b4   : > { %5955 = vmatpush1.bf16.msra.mxu1 %v7378_v17  ;;  %5504 = vmatprep.subr.bf16.mxu0 %v7385_v24  ;;  %v1598_v17 = vld [vmem:[#allocation9 + $0x450] sm:$0xff] }
 0x2b5   : > { %5956 = vmatprep.subr.bf16.mxu1 %v7387_v26  ;;  %v1602_v24 = vld [vmem:[#allocation9 + $0x470] sm:$0xff]  ;;  %v1599_v26 = vld [vmem:[#allocation9 + $0x458] sm:$0xff] }
 0x2b6   : > { %5505 = vmatpush1.bf16.msra.mxu0 %v7384_v36  ;;  %v1603_v36 = vld [vmem:[#allocation9 + $0x478] sm:$0xff]  ;;  %v7417_v3 = vcombine.high %v1598_v17, %v1602_v24  ;;  %v10195_v7 = vld [vmem:[#allocation9 + $0xe50] sm:$0xff] }
 0x2b7   : > { %5506 = vmatprep.subr.bf16.mxu0 %v7393_v48  ;;  %v1606_v48 = vld [vmem:[#allocation9 + $0x490] sm:$0xff]  ;;  %v7418_v0 = vcombine.low %v1599_v26, %v1603_v36 }
 0x2b8   : > { %5957 = vmatpush1.bf16.msra.mxu1 %v7386_v9  ;;  %v1610_v9 = vld [vmem:[#allocation9 + $0x4b0] sm:$0xff] }
 0x2b9   : > { %5016 = vmatmul.mubr.bf16.gmra.mrb[92].mxu0 %v9965_v12  ;;  %5958 = vmatprep.subr.bf16.mxu1 %v7395_v56  ;;  %v7416_v56 = vcombine.low %v1598_v17, %v1602_v24  ;;  %v7424_v11 = vcombine.low %v1606_v48, %v1610_v9  ;;  %v1627_v17 = vld [vmem:[#allocation9 + $0x538] sm:$0xff] }
 0x2ba   : > { %5468 = vmatmul.mubr.bf16.gmra.mrb[92].mxu1 %v9965_v12  ;;  %5507 = vmatpush1.bf16.msra.mxu0 %v7392_v43  ;;  %v7425_v43 = vcombine.high %v1606_v48, %v1610_v9  ;;  %v1635_v48 = vld [vmem:[#allocation9 + $0x578] sm:$0xff] }
 0x2bb   : > { %5510 = vmatprep.mubr.bf16.mxu0 %v9205_v14  ;;  %5962 = vmatprep.mubr.bf16.mxu1 %v9205_v14  ;;  %v7419_v14 = vcombine.high %v1599_v26, %v1603_v36  ;;  %v1634_v26 = vld [vmem:[#allocation9 + $0x570] sm:$0xff]  ;;  %v10193_v12 = vld [vmem:[#allocation9 + $0xe38] sm:$0xff] }
 0x2bc   : > { %5959 = vmatpush1.bf16.msra.mxu1 %v7394_v51  ;;  %5508 = vmatprep.subr.bf16.mxu0 %v7401_v47  ;;  %v1618_v51 = vld [vmem:[#allocation9 + $0x4f0] sm:$0xff]  ;;  %v7427_v47 = vcombine.high %v1607_v28, %v1611_v29 }
 0x2bd   : > { %5960 = vmatprep.subr.bf16.mxu1 %v7403_v31  ;;  %v1619_v31 = vld [vmem:[#allocation9 + $0x4f8] sm:$0xff]  ;;  %v11133_v28 = vld [vmem:[#allocation27_spill] sm:$0xff] }
 0x2be   : > { %5509 = vmatpush1.bf16.msra.mxu0 %v7400_v21  ;;  %v7433_v21 = vcombine.high %v1614_v27, %v1618_v51  ;;  %v11134_v29 = vld [vmem:[#allocation32_spill] sm:$0xff] }
 0x2bf   : > { %5591 = vmatprep.subr.bf16.mxu0 %v7409_v22  ;;  %v7432_v22 = vcombine.low %v1614_v27, %v1618_v51  ;;  %v1643_v27 = vld [vmem:[#allocation9 + $0x5b8] sm:$0xff] }
 0x2c0   : > { %5961 = vmatpush1.bf16.msra.mxu1 %v7402_v34  ;;  %v1623_v34 = vld [vmem:[#allocation9 + $0x518] sm:$0xff] }
 0x2c1   : > { %5511 = vmatmul.mubr.bf16.vlgmr.msra.gmra.mrb[96].mxu0 %v9203_v13  ;;  %6043 = vmatprep.subr.bf16.mxu1 %v7411_v5  ;;  %v7434_v5 = vcombine.low %v1615_v32, %v1619_v31  ;;  %v7443_v36 = vcombine.high %v1623_v34, %v1627_v17 }
 0x2c2   : > { %5592 = vmatpush1.bf16.msra.mxu0 %v7408_v63  ;;  %5520 = vmatprep.mubr.bf16.mxu0 %v9253_v2  ;;  %v1630_v63 = vld [vmem:[#allocation9 + $0x550] sm:$0xff] }
 0x2c3   : > { %5963 = vmatmul.mubr.bf16.vlgmr.msra.gmra.mrb[96].mxu1 %v9203_v13  ;;  %5593 = vmatprep.subr.bf16.mxu0 %v7417_v3  ;;  %v1626_v13 = vld [vmem:[#allocation9 + $0x530] sm:$0xff]  ;;  %v7449_v9 = vcombine.high %v1630_v63, %v1634_v26 }
 0x2c4   : > { %5972 = vmatprep.mubr.bf16.mxu1 %v9253_v2  ;;  %6044 = vmatpush1.bf16.msra.mxu1 %v7410_v59  ;;  %v7435_v2 = vcombine.high %v1615_v32, %v1619_v31  ;;  %v7441_v24 = vcombine.high %v1622_v16, %v1626_v13  ;;  %v7440_v3 = vcombine.low %v1622_v16, %v1626_v13  ;;  %v1631_v59 = vld [vmem:[#allocation9 + $0x558] sm:$0xff]  ;;  %v1650_v32 = vld [vmem:[#allocation9 + $0x5f0] sm:$0xff] }
 0x2c5   : > { %6045 = vmatprep.subr.bf16.mxu1 %v7419_v14  ;;  %v7442_v14 = vcombine.low %v1623_v34, %v1627_v17  ;;  %v1651_v16 = vld [vmem:[#allocation9 + $0x5f8] sm:$0xff]  ;;  %v1658_v34 = vld [vmem:[#allocation9 + $0x630] sm:$0xff]  ;;  %v11135_v17 = vld [vmem:[#allocation30_spill] sm:$0xff] }
 0x2c6   : > { %5594 = vmatpush1.bf16.msra.mxu0 %v7416_v56  ;;  %v1638_v56 = vld [vmem:[#allocation9 + $0x590] sm:$0xff] }
 0x2c7   : > { %5595 = vmatprep.subr.bf16.mxu0 %v7425_v43  ;;  %v7448_v43 = vcombine.low %v1630_v63, %v1634_v26  ;;  %v1655_v26 = vld [vmem:[#allocation9 + $0x618] sm:$0xff] }
 0x2c8   : > { %6046 = vmatpush1.bf16.msra.mxu1 %v7418_v0  ;;  %v1639_v0 = vld [vmem:[#allocation9 + $0x598] sm:$0xff] }
 0x2c9   : > { %5521 = vmatmul.mubr.bf16.gmra.mrb[100].mxu0 %v9245_v61  ;;  %6047 = vmatprep.subr.bf16.mxu1 %v7427_v47  ;;  %v7450_v47 = vcombine.low %v1631_v59, %v1635_v48  ;;  %v7459_v31 = vcombine.high %v1639_v0, %v1643_v27 }
 0x2ca   : > { %5596 = vmatpush1.bf16.msra.mxu0 %v7424_v11  ;;  %5530 = vmatprep.mubr.bf16.mxu0 %v9305_v38  ;;  %v1646_v11 = vld [vmem:[#allocation9 + $0x5d0] sm:$0xff] }
 0x2cb   : > { %5973 = vmatmul.mubr.bf16.gmra.mrb[100].mxu1 %v9245_v61  ;;  %5597 = vmatprep.subr.bf16.mxu0 %v7433_v21  ;;  %v1642_v61 = vld [vmem:[#allocation9 + $0x5b0] sm:$0xff]  ;;  %v7465_v13 = vcombine.high %v1646_v11, %v1650_v32  ;;  %v7464_v63 = vcombine.low %v1646_v11, %v1650_v32  ;;  %v1671_v32 = vld [vmem:[#allocation9 + $0x698] sm:$0xff] }
 0x2cc   : > { %5982 = vmatprep.mubr.bf16.mxu1 %v9305_v38  ;;  %6048 = vmatpush1.bf16.msra.mxu1 %v7426_v55  ;;  %v7451_v38 = vcombine.high %v1631_v59, %v1635_v48  ;;  %v7457_v51 = vcombine.high %v1638_v56, %v1642_v61  ;;  %v7456_v21 = vcombine.low %v1638_v56, %v1642_v61  ;;  %v1647_v55 = vld [vmem:[#allocation9 + $0x5d8] sm:$0xff]  ;;  %v1662_v48 = vld [vmem:[#allocation9 + $0x650] sm:$0xff] }
 0x2cd   : > { %6049 = vmatprep.subr.bf16.mxu1 %v7435_v2  ;;  %v7458_v2 = vcombine.low %v1639_v0, %v1643_v27  ;;  %v7466_v59 = vcombine.low %v1647_v55, %v1651_v16  ;;  %v1663_v61 = vld [vmem:[#allocation9 + $0x658] sm:$0xff]  ;;  %v1674_v0 = vld [vmem:[#allocation9 + $0x6b0] sm:$0xff]  ;;  %v11137_v27 = vld [vmem:[#allocation34_spill] sm:$0xff] }
 0x2ce   : > { %5598 = vmatpush1.bf16.msra.mxu0 %v7432_v22  ;;  %v1654_v22 = vld [vmem:[#allocation9 + $0x610] sm:$0xff] }
 0x2cf   : > { %5599 = vmatprep.subr.bf16.mxu0 %v7441_v24  ;;  %v7467_v24 = vcombine.high %v1647_v55, %v1651_v16  ;;  %v7472_v56 = vcombine.low %v1654_v22, %v1658_v34  ;;  %v1678_v16 = vld [vmem:[#allocation9 + $0x6d0] sm:$0xff] }
 0x2d0   : > { %6050 = vmatpush1.bf16.msra.mxu1 %v7434_v5  ;;  %v11136_v5 = vld [vmem:[#allocation36_spill] sm:$0xff] }
 0x2d1   : > { %5531 = vmatmul.mubr.bf16.gmra.mrb[104].mxu0 %v11133_v28  ;;  %6051 = vmatprep.subr.bf16.mxu1 %v7443_v36  ;;  %v1659_v36 = vld [vmem:[#allocation9 + $0x638] sm:$0xff] }
 0x2d2   : > { %5600 = vmatpush1.bf16.msra.mxu0 %v7440_v3  ;;  %5540 = vmatprep.mubr.bf16.mxu0 %v11134_v29  ;;  %v7473_v3 = vcombine.high %v1654_v22, %v1658_v34  ;;  %v1679_v34 = vld [vmem:[#allocation9 + $0x6d8] sm:$0xff] }
 0x2d3   : > { %5983 = vmatmul.mubr.bf16.gmra.mrb[104].mxu1 %v11133_v28  ;;  %5601 = vmatprep.subr.bf16.mxu0 %v7449_v9  ;;  %v1666_v9 = vld [vmem:[#allocation9 + $0x670] sm:$0xff]  ;;  %v1667_v28 = vld [vmem:[#allocation9 + $0x678] sm:$0xff] }
 0x2d4   : > { %5992 = vmatprep.mubr.bf16.mxu1 %v11134_v29  ;;  %6052 = vmatpush1.bf16.msra.mxu1 %v7442_v14  ;;  %v7475_v14 = vcombine.high %v1655_v26, %v1659_v36  ;;  %v7474_v29 = vcombine.low %v1655_v26, %v1659_v36  ;;  %v7480_v11 = vcombine.low %v1662_v48, %v1666_v9  ;;  %v1690_v26 = vld [vmem:[#allocation9 + $0x730] sm:$0xff]  ;;  %v11139_v36 = vld [vmem:[#allocation38_spill] sm:$0xff] }
 0x2d5   : > { %6053 = vmatprep.subr.bf16.mxu1 %v7451_v38  ;;  %v7481_v38 = vcombine.high %v1662_v48, %v1666_v9  ;;  %v7482_v55 = vcombine.low %v1663_v61, %v1667_v28  ;;  %v1687_v9 = vld [vmem:[#allocation9 + $0x718] sm:$0xff] }
 0x2d6   : > { %5602 = vmatpush1.bf16.msra.mxu0 %v7448_v43  ;;  %v1670_v43 = vld [vmem:[#allocation9 + $0x690] sm:$0xff] }
 0x2d7   : > { %5603 = vmatprep.subr.bf16.mxu0 %v7457_v51  ;;  %v7483_v51 = vcombine.high %v1663_v61, %v1667_v28  ;;  %v7488_v22 = vcombine.low %v1670_v43, %v1674_v0  ;;  %v1694_v28 = vld [vmem:[#allocation9 + $0x750] sm:$0xff] }
 0x2d8   : > { %6054 = vmatpush1.bf16.msra.mxu1 %v7450_v47  ;;  %v11138_v47 = vld [vmem:[#allocation40_spill] sm:$0xff] }
 0x2d9   : > { %5541 = vmatmul.mubr.bf16.gmra.mrb[108].mxu0 %v11135_v17  ;;  %6055 = vmatprep.subr.bf16.mxu1 %v7459_v31  ;;  %v1675_v31 = vld [vmem:[#allocation9 + $0x6b8] sm:$0xff] }
 0x2da   : > { %5604 = vmatpush1.bf16.msra.mxu0 %v7456_v21  ;;  %5550 = vmatprep.mubr.bf16.mxu0 %v11136_v5  ;;  %v7489_v21 = vcombine.high %v1670_v43, %v1674_v0  ;;  %v1695_v0 = vld [vmem:[#allocation9 + $0x758] sm:$0xff] }
 0x2db   : > { %5993 = vmatmul.mubr.bf16.gmra.mrb[108].mxu1 %v11135_v17  ;;  %5605 = vmatprep.subr.bf16.mxu0 %v7465_v13  ;;  %v1682_v13 = vld [vmem:[#allocation9 + $0x6f0] sm:$0xff]  ;;  %v1683_v17 = vld [vmem:[#allocation9 + $0x6f8] sm:$0xff] }
 0x2dc   : > { %6002 = vmatprep.mubr.bf16.mxu1 %v11136_v5  ;;  %6056 = vmatpush1.bf16.msra.mxu1 %v7458_v2  ;;  %v7491_v2 = vcombine.high %v1671_v32, %v1675_v31  ;;  %v7490_v5 = vcombine.low %v1671_v32, %v1675_v31  ;;  %v7496_v48 = vcombine.low %v1678_v16, %v1682_v13  ;;  %v1706_v32 = vld [vmem:[#allocation9 + $0x7b0] sm:$0xff]  ;;  %v11141_v31 = vld [vmem:[#allocation42_spill] sm:$0xff] }
 0x2dd   : > { %6057 = vmatprep.subr.bf16.mxu1 %v7467_v24  ;;  %v7497_v24 = vcombine.high %v1678_v16, %v1682_v13  ;;  %v7498_v61 = vcombine.low %v1679_v34, %v1683_v17  ;;  %v1703_v13 = vld [vmem:[#allocation9 + $0x798] sm:$0xff] }
 0x2de   : > { %5606 = vmatpush1.bf16.msra.mxu0 %v7464_v63  ;;  %v1686_v63 = vld [vmem:[#allocation9 + $0x710] sm:$0xff] }
 0x2df   : > { %5607 = vmatprep.subr.bf16.mxu0 %v7473_v3  ;;  %v7499_v3 = vcombine.high %v1679_v34, %v1683_v17  ;;  %v7504_v43 = vcombine.low %v1686_v63, %v1690_v26  ;;  %v1710_v17 = vld [vmem:[#allocation9 + $0x7d0] sm:$0xff] }
 0x2e0   : > { %6058 = vmatpush1.bf16.msra.mxu1 %v7466_v59  ;;  %v11140_v59 = vld [vmem:[#allocation44_spill] sm:$0xff] }
 0x2e1   : > { %5551 = vmatmul.mubr.bf16.gmra.mrb[112].mxu0 %v11137_v27  ;;  %6059 = vmatprep.subr.bf16.mxu1 %v7475_v14  ;;  %v1691_v14 = vld [vmem:[#allocation9 + $0x738] sm:$0xff] }
 0x2e2   : > { %5608 = vmatpush1.bf16.msra.mxu0 %v7472_v56  ;;  %5560 = vmatprep.mubr.bf16.mxu0 %v11138_v47  ;;  %v7505_v56 = vcombine.high %v1686_v63, %v1690_v26  ;;  %v1711_v26 = vld [vmem:[#allocation9 + $0x7d8] sm:$0xff] }
 0x2e3   : > { %6003 = vmatmul.mubr.bf16.gmra.mrb[112].mxu1 %v11137_v27  ;;  %5609 = vmatprep.subr.bf16.mxu0 %v7481_v38  ;;  %v1698_v38 = vld [vmem:[#allocation9 + $0x770] sm:$0xff]  ;;  %v1699_v27 = vld [vmem:[#allocation9 + $0x778] sm:$0xff] }
 0x2e4   : > { %6012 = vmatprep.mubr.bf16.mxu1 %v11138_v47  ;;  %6060 = vmatpush1.bf16.msra.mxu1 %v7474_v29  ;;  %v7507_v29 = vcombine.high %v1687_v9, %v1691_v14  ;;  %v7506_v47 = vcombine.low %v1687_v9, %v1691_v14  ;;  %v7512_v16 = vcombine.low %v1694_v28, %v1698_v38  ;;  %v1722_v9 = vld [vmem:[#allocation9 + $0x830] sm:$0xff] }
 0x2e5   : > { %6061 = vmatprep.subr.bf16.mxu1 %v7483_v51  ;;  %v7513_v51 = vcombine.high %v1694_v28, %v1698_v38  ;;  %v7514_v34 = vcombine.low %v1695_v0, %v1699_v27  ;;  %v11143_v14 = vld [vmem:[#allocation48_spill] sm:$0xff] }
 0x2e6   : > { %5610 = vmatpush1.bf16.msra.mxu0 %v7480_v11  ;;  %v1702_v11 = vld [vmem:[#allocation9 + $0x790] sm:$0xff]  ;;  %v1719_v38 = vld [vmem:[#allocation9 + $0x818] sm:$0xff] }
 0x2e7   : > { %5611 = vmatprep.subr.bf16.mxu0 %v7489_v21  ;;  %v7515_v21 = vcombine.high %v1695_v0, %v1699_v27  ;;  %v7520_v63 = vcombine.low %v1702_v11, %v1706_v32  ;;  %v1726_v27 = vld [vmem:[#allocation9 + $0x850] sm:$0xff] }
 0x2e8   : > { %6062 = vmatpush1.bf16.msra.mxu1 %v7482_v55  ;;  %v11142_v55 = vld [vmem:[#allocation50_spill] sm:$0xff] }
 0x2e9   : > { %5561 = vmatmul.mubr.bf16.gmra.mrb[116].mxu0 %v11139_v36  ;;  %6063 = vmatprep.subr.bf16.mxu1 %v7491_v2  ;;  %v1707_v2 = vld [vmem:[#allocation9 + $0x7b8] sm:$0xff] }
 0x2ea   : > { %5612 = vmatpush1.bf16.msra.mxu0 %v7488_v22  ;;  %5570 = vmatprep.mubr.bf16.mxu0 %v11140_v59  ;;  %v7521_v22 = vcombine.high %v1702_v11, %v1706_v32  ;;  %v1727_v32 = vld [vmem:[#allocation9 + $0x858] sm:$0xff] }
 0x2eb   : > { %6013 = vmatmul.mubr.bf16.gmra.mrb[116].mxu1 %v11139_v36  ;;  %5613 = vmatprep.subr.bf16.mxu0 %v7497_v24  ;;  %v1714_v24 = vld [vmem:[#allocation9 + $0x7f0] sm:$0xff]  ;;  %v1715_v36 = vld [vmem:[#allocation9 + $0x7f8] sm:$0xff] }
 0x2ec   : > { %6022 = vmatprep.mubr.bf16.mxu1 %v11140_v59  ;;  %6064 = vmatpush1.bf16.msra.mxu1 %v7490_v5  ;;  %v7523_v5 = vcombine.high %v1703_v13, %v1707_v2  ;;  %v7522_v59 = vcombine.low %v1703_v13, %v1707_v2  ;;  %v7528_v28 = vcombine.low %v1710_v17, %v1714_v24  ;;  %v1738_v13 = vld [vmem:[#allocation9 + $0x8b0] sm:$0xff]  ;;  %v11145_v2 = vld [vmem:[#allocation25_spill] sm:$0xff] }
 0x2ed   : > { %6065 = vmatprep.subr.bf16.mxu1 %v7499_v3  ;;  %v7529_v3 = vcombine.high %v1710_v17, %v1714_v24  ;;  %v7530_v0 = vcombine.low %v1711_v26, %v1715_v36  ;;  %v1735_v24 = vld [vmem:[#allocation9 + $0x898] sm:$0xff] }
 0x2ee   : > { %5614 = vmatpush1.bf16.msra.mxu0 %v7496_v48  ;;  %v1718_v48 = vld [vmem:[#allocation9 + $0x810] sm:$0xff] }
 0x2ef   : > { %5615 = vmatprep.subr.bf16.mxu0 %v7505_v56  ;;  %v7531_v56 = vcombine.high %v1711_v26, %v1715_v36  ;;  %v7536_v11 = vcombine.low %v1718_v48, %v1722_v9  ;;  %v1742_v36 = vld [vmem:[#allocation9 + $0x8d0] sm:$0xff] }
 0x2f0   : > { %6066 = vmatpush1.bf16.msra.mxu1 %v7498_v61  ;;  %v11144_v61 = vld [vmem:[#allocation26_spill] sm:$0xff] }
 0x2f1   : > { %5571 = vmatmul.mubr.bf16.gmra.mrb[120].mxu0 %v11141_v31  ;;  %6067 = vmatprep.subr.bf16.mxu1 %v7507_v29  ;;  %v1723_v29 = vld [vmem:[#allocation9 + $0x838] sm:$0xff] }
 0x2f2   : > { %5616 = vmatpush1.bf16.msra.mxu0 %v7504_v43  ;;  %5580 = vmatprep.mubr.bf16.mxu0 %v11142_v55  ;;  %v7537_v43 = vcombine.high %v1718_v48, %v1722_v9  ;;  %v1743_v9 = vld [vmem:[#allocation9 + $0x8d8] sm:$0xff] }
 0x2f3   : > { %6023 = vmatmul.mubr.bf16.gmra.mrb[120].mxu1 %v11141_v31  ;;  %5617 = vmatprep.subr.bf16.mxu0 %v7513_v51  ;;  %v1730_v51 = vld [vmem:[#allocation9 + $0x870] sm:$0xff]  ;;  %v1731_v31 = vld [vmem:[#allocation9 + $0x878] sm:$0xff] }
 0x2f4   : > { %6032 = vmatprep.mubr.bf16.mxu1 %v11142_v55  ;;  %6068 = vmatpush1.bf16.msra.mxu1 %v7506_v47  ;;  %v7539_v47 = vcombine.high %v1719_v38, %v1723_v29  ;;  %v7538_v55 = vcombine.low %v1719_v38, %v1723_v29  ;;  %v7544_v17 = vcombine.low %v1726_v27, %v1730_v51  ;;  %v1754_v38 = vld [vmem:[#allocation9 + $0x930] sm:$0xff] }
 0x2f5   : > { %6069 = vmatprep.subr.bf16.mxu1 %v7515_v21  ;;  %v7545_v21 = vcombine.high %v1726_v27, %v1730_v51  ;;  %v7546_v26 = vcombine.low %v1727_v32, %v1731_v31  ;;  %v11147_v29 = vld [vmem:[#allocation28_spill] sm:$0xff] }
 0x2f6   : > { %5618 = vmatpush1.bf16.msra.mxu0 %v7512_v16  ;;  %v1734_v16 = vld [vmem:[#allocation9 + $0x890] sm:$0xff]  ;;  %v1751_v51 = vld [vmem:[#allocation9 + $0x918] sm:$0xff] }
 0x2f7   : > { %5619 = vmatprep.subr.bf16.mxu0 %v7521_v22  ;;  %v7547_v22 = vcombine.high %v1727_v32, %v1731_v31  ;;  %v7552_v48 = vcombine.low %v1734_v16, %v1738_v13  ;;  %v1758_v31 = vld [vmem:[#allocation9 + $0x950] sm:$0xff] }
 0x2f8   : > { %6070 = vmatpush1.bf16.msra.mxu1 %v7514_v34  ;;  %v11146_v34 = vld [vmem:[#allocation29_spill] sm:$0xff] }
 0x2f9   : > { %5581 = vmatmul.mubr.bf16.gmra.mrb[124].mxu0 %v11143_v14  ;;  %6071 = vmatprep.subr.bf16.mxu1 %v7523_v5  ;;  %v1739_v5 = vld [vmem:[#allocation9 + $0x8b8] sm:$0xff] }
 0x2fa   : > { %5620 = vmatpush1.bf16.msra.mxu0 %v7520_v63  ;;  %5623 = vmatprep.mubr.bf16.mxu0 %v11144_v61  ;;  %v7553_v63 = vcombine.high %v1734_v16, %v1738_v13  ;;  %v1759_v13 = vld [vmem:[#allocation9 + $0x958] sm:$0xff] }
 0x2fb   : > { %6033 = vmatmul.mubr.bf16.gmra.mrb[124].mxu1 %v11143_v14  ;;  %5621 = vmatprep.subr.bf16.mxu0 %v7529_v3  ;;  %v1746_v3 = vld [vmem:[#allocation9 + $0x8f0] sm:$0xff]  ;;  %v1747_v14 = vld [vmem:[#allocation9 + $0x8f8] sm:$0xff] }
 0x2fc   : > { %6072 = vmatpush1.bf16.msra.mxu1 %v7522_v59  ;;  %6075 = vmatprep.mubr.bf16.mxu1 %v11144_v61  ;;  %v7555_v59 = vcombine.high %v1735_v24, %v1739_v5  ;;  %v7554_v61 = vcombine.low %v1735_v24, %v1739_v5  ;;  %v7560_v27 = vcombine.low %v1742_v36, %v1746_v3  ;;  %v1770_v24 = vld [vmem:[#allocation9 + $0x9b0] sm:$0xff] }
 0x2fd   : > { %6073 = vmatprep.subr.bf16.mxu1 %v7531_v56  ;;  %v7561_v56 = vcombine.high %v1742_v36, %v1746_v3  ;;  %v7562_v32 = vcombine.low %v1743_v9, %v1747_v14  ;;  %v11149_v5 = vld [vmem:[#allocation31_spill] sm:$0xff]  ;;  %v1767_v3 = vld [vmem:[#allocation9 + $0x998] sm:$0xff] }
 0x2fe   : > { %5622 = vmatpush1.bf16.msra.mxu0 %v7528_v28  ;;  %v1750_v28 = vld [vmem:[#allocation9 + $0x910] sm:$0xff] }
 0x2ff   : > { %5704 = vmatprep.subr.bf16.mxu0 %v7537_v43  ;;  %v7563_v43 = vcombine.high %v1743_v9, %v1747_v14  ;;  %v7568_v16 = vcombine.low %v1750_v28, %v1754_v38  ;;  %v1774_v14 = vld [vmem:[#allocation9 + $0x9d0] sm:$0xff] }
 0x300   : > { %6074 = vmatpush1.bf16.msra.mxu1 %v7530_v0  ;;  %v11148_v0 = vld [vmem:[#allocation33_spill] sm:$0xff] }
 0x301   : > { %5624 = vmatmul.mubr.bf16.vlgmr.msra.gmra.mrb[96].mxu0 %v11145_v2  ;;  %6156 = vmatprep.subr.bf16.mxu1 %v7539_v47  ;;  %v1755_v47 = vld [vmem:[#allocation9 + $0x938] sm:$0xff] }
 0x302   : > { %5705 = vmatpush1.bf16.msra.mxu0 %v7536_v11  ;;  %5633 = vmatprep.mubr.bf16.mxu0 %v11146_v34  ;;  %v7569_v11 = vcombine.high %v1750_v28, %v1754_v38  ;;  %v1775_v38 = vld [vmem:[#allocation9 + $0x9d8] sm:$0xff] }
 0x303   : > { %6076 = vmatmul.mubr.bf16.vlgmr.msra.gmra.mrb[96].mxu1 %v11145_v2  ;;  %5706 = vmatprep.subr.bf16.mxu0 %v7545_v21  ;;  %v1762_v21 = vld [vmem:[#allocation9 + $0x970] sm:$0xff]  ;;  %v1763_v2 = vld [vmem:[#allocation9 + $0x978] sm:$0xff] }
 0x304   : > { %6085 = vmatprep.mubr.bf16.mxu1 %v11146_v34  ;;  %6157 = vmatpush1.bf16.msra.mxu1 %v7538_v55  ;;  %v7571_v55 = vcombine.high %v1751_v51, %v1755_v47  ;;  %v7570_v34 = vcombine.low %v1751_v51, %v1755_v47  ;;  %v7576_v36 = vcombine.low %v1758_v31, %v1762_v21  ;;  %v1786_v51 = vld [vmem:[#allocation9 + $0xa30] sm:$0xff] }
 0x305   : > { %6158 = vmatprep.subr.bf16.mxu1 %v7547_v22  ;;  %v7577_v22 = vcombine.high %v1758_v31, %v1762_v21  ;;  %v7578_v9 = vcombine.low %v1759_v13, %v1763_v2  ;;  %v11151_v47 = vld [vmem:[#allocation35_spill] sm:$0xff]  ;;  %v1783_v21 = vld [vmem:[#allocation9 + $0xa18] sm:$0xff] }
 0x306   : > { %5707 = vmatpush1.bf16.msra.mxu0 %v7544_v17  ;;  %v1766_v17 = vld [vmem:[#allocation9 + $0x990] sm:$0xff] }
 0x307   : > { %5708 = vmatprep.subr.bf16.mxu0 %v7553_v63  ;;  %v7579_v63 = vcombine.high %v1759_v13, %v1763_v2  ;;  %v7584_v28 = vcombine.low %v1766_v17, %v1770_v24  ;;  %v1790_v2 = vld [vmem:[#allocation9 + $0xa50] sm:$0xff] }
 0x308   : > { %6159 = vmatpush1.bf16.msra.mxu1 %v7546_v26  ;;  %v11150_v26 = vld [vmem:[#allocation37_spill] sm:$0xff] }
 0x309   : > { %5634 = vmatmul.mubr.bf16.gmra.mrb[100].mxu0 %v11147_v29  ;;  %6160 = vmatprep.subr.bf16.mxu1 %v7555_v59  ;;  %v1771_v59 = vld [vmem:[#allocation9 + $0x9b8] sm:$0xff] }
 0x30a   : > { %5709 = vmatpush1.bf16.msra.mxu0 %v7552_v48  ;;  %5643 = vmatprep.mubr.bf16.mxu0 %v11148_v0  ;;  %v7585_v48 = vcombine.high %v1766_v17, %v1770_v24  ;;  %v1791_v24 = vld [vmem:[#allocation9 + $0xa58] sm:$0xff] }
 0x30b   : > { %6086 = vmatmul.mubr.bf16.gmra.mrb[100].mxu1 %v11147_v29  ;;  %5710 = vmatprep.subr.bf16.mxu0 %v7561_v56  ;;  %v1778_v56 = vld [vmem:[#allocation9 + $0x9f0] sm:$0xff]  ;;  %v1779_v29 = vld [vmem:[#allocation9 + $0x9f8] sm:$0xff] }
 0x30c   : > { %6095 = vmatprep.mubr.bf16.mxu1 %v11148_v0  ;;  %6161 = vmatpush1.bf16.msra.mxu1 %v7554_v61  ;;  %v7587_v61 = vcombine.high %v1767_v3, %v1771_v59  ;;  %v7586_v0 = vcombine.low %v1767_v3, %v1771_v59  ;;  %v7592_v31 = vcombine.low %v1774_v14, %v1778_v56  ;;  %v1802_v3 = vld [vmem:[#allocation9 + $0xab0] sm:$0xff] }
 0x30d   : > { %6162 = vmatprep.subr.bf16.mxu1 %v7563_v43  ;;  %v7593_v43 = vcombine.high %v1774_v14, %v1778_v56  ;;  %v7594_v13 = vcombine.low %v1775_v38, %v1779_v29  ;;  %v11153_v59 = vld [vmem:[#allocation39_spill] sm:$0xff]  ;;  %v1799_v56 = vld [vmem:[#allocation9 + $0xa98] sm:$0xff] }
 0x30e   : > { %5711 = vmatpush1.bf16.msra.mxu0 %v7560_v27  ;;  %v1782_v27 = vld [vmem:[#allocation9 + $0xa10] sm:$0xff] }
 0x30f   : > { %5712 = vmatprep.subr.bf16.mxu0 %v7569_v11  ;;  %v7595_v11 = vcombine.high %v1775_v38, %v1779_v29  ;;  %v7600_v17 = vcombine.low %v1782_v27, %v1786_v51  ;;  %v1806_v29 = vld [vmem:[#allocation9 + $0xad0] sm:$0xff] }
 0x310   : > { %6163 = vmatpush1.bf16.msra.mxu1 %v7562_v32  ;;  %v11152_v32 = vld [vmem:[#allocation41_spill] sm:$0xff] }
 0x311   : > { %5644 = vmatmul.mubr.bf16.gmra.mrb[104].mxu0 %v11149_v5  ;;  %6164 = vmatprep.subr.bf16.mxu1 %v7571_v55  ;;  %v1787_v55 = vld [vmem:[#allocation9 + $0xa38] sm:$0xff] }
 0x312   : > { %5713 = vmatpush1.bf16.msra.mxu0 %v7568_v16  ;;  %5653 = vmatprep.mubr.bf16.mxu0 %v11150_v26  ;;  %v7601_v16 = vcombine.high %v1782_v27, %v1786_v51  ;;  %v1807_v51 = vld [vmem:[#allocation9 + $0xad8] sm:$0xff] }
 0x313   : > { %6096 = vmatmul.mubr.bf16.gmra.mrb[104].mxu1 %v11149_v5  ;;  %5714 = vmatprep.subr.bf16.mxu0 %v7577_v22  ;;  %v1794_v22 = vld [vmem:[#allocation9 + $0xa70] sm:$0xff]  ;;  %v1795_v5 = vld [vmem:[#allocation9 + $0xa78] sm:$0xff] }
 0x314   : > { %6105 = vmatprep.mubr.bf16.mxu1 %v11150_v26  ;;  %6165 = vmatpush1.bf16.msra.mxu1 %v7570_v34  ;;  %v7603_v34 = vcombine.high %v1783_v21, %v1787_v55  ;;  %v7602_v26 = vcombine.low %v1783_v21, %v1787_v55  ;;  %v7608_v14 = vcombine.low %v1790_v2, %v1794_v22  ;;  %v1818_v21 = vld [vmem:[#allocation9 + $0xb30] sm:$0xff] }
 0x315   : > { %6166 = vmatprep.subr.bf16.mxu1 %v7579_v63  ;;  %v7609_v63 = vcombine.high %v1790_v2, %v1794_v22  ;;  %v7610_v38 = vcombine.low %v1791_v24, %v1795_v5  ;;  %v11155_v55 = vld [vmem:[#allocation43_spill] sm:$0xff]  ;;  %v1815_v22 = vld [vmem:[#allocation9 + $0xb18] sm:$0xff] }
 0x316   : > { %5715 = vmatpush1.bf16.msra.mxu0 %v7576_v36  ;;  %v1798_v36 = vld [vmem:[#allocation9 + $0xa90] sm:$0xff] }
 0x317   : > { %5716 = vmatprep.subr.bf16.mxu0 %v7585_v48  ;;  %v7611_v48 = vcombine.high %v1791_v24, %v1795_v5  ;;  %v7616_v27 = vcombine.low %v1798_v36, %v1802_v3  ;;  %v1822_v5 = vld [vmem:[#allocation9 + $0xb50] sm:$0xff] }
 0x318   : > { %6167 = vmatpush1.bf16.msra.mxu1 %v7578_v9  ;;  %v11154_v9 = vld [vmem:[#allocation45_spill] sm:$0xff] }
 0x319   : > { %5654 = vmatmul.mubr.bf16.gmra.mrb[108].mxu0 %v11151_v47  ;;  %6168 = vmatprep.subr.bf16.mxu1 %v7587_v61  ;;  %v1803_v61 = vld [vmem:[#allocation9 + $0xab8] sm:$0xff] }
 0x31a   : > { %5717 = vmatpush1.bf16.msra.mxu0 %v7584_v28  ;;  %5663 = vmatprep.mubr.bf16.mxu0 %v11152_v32  ;;  %v7617_v28 = vcombine.high %v1798_v36, %v1802_v3  ;;  %v1823_v3 = vld [vmem:[#allocation9 + $0xb58] sm:$0xff] }
 0x31b   : > { %6106 = vmatmul.mubr.bf16.gmra.mrb[108].mxu1 %v11151_v47  ;;  %5718 = vmatprep.subr.bf16.mxu0 %v7593_v43  ;;  %v1810_v43 = vld [vmem:[#allocation9 + $0xaf0] sm:$0xff]  ;;  %v1811_v47 = vld [vmem:[#allocation9 + $0xaf8] sm:$0xff] }
 0x31c   : > { %6115 = vmatprep.mubr.bf16.mxu1 %v11152_v32  ;;  %6169 = vmatpush1.bf16.msra.mxu1 %v7586_v0  ;;  %v7619_v0 = vcombine.high %v1799_v56, %v1803_v61  ;;  %v7618_v32 = vcombine.low %v1799_v56, %v1803_v61  ;;  %v7624_v2 = vcombine.low %v1806_v29, %v1810_v43  ;;  %v1834_v56 = vld [vmem:[#allocation9 + $0xbb0] sm:$0xff]  ;;  %v11157_v61 = vld [vmem:[#allocation49_spill] sm:$0xff] }
 0x31d   : > { %6170 = vmatprep.subr.bf16.mxu1 %v7595_v11  ;;  %v7625_v11 = vcombine.high %v1806_v29, %v1810_v43  ;;  %v7626_v24 = vcombine.low %v1807_v51, %v1811_v47  ;;  %v1831_v43 = vld [vmem:[#allocation9 + $0xb98] sm:$0xff] }
 0x31e   : > { %5719 = vmatpush1.bf16.msra.mxu0 %v7592_v31  ;;  %v1814_v31 = vld [vmem:[#allocation9 + $0xb10] sm:$0xff] }
 0x31f   : > { %5720 = vmatprep.subr.bf16.mxu0 %v7601_v16  ;;  %v7627_v16 = vcombine.high %v1807_v51, %v1811_v47  ;;  %v7632_v36 = vcombine.low %v1814_v31, %v1818_v21  ;;  %v1838_v47 = vld [vmem:[#allocation9 + $0xbd0] sm:$0xff] }
 0x320   : > { %6171 = vmatpush1.bf16.msra.mxu1 %v7594_v13  ;;  %v11156_v13 = vld [vmem:[#allocation51_spill] sm:$0xff] }
 0x321   : > { %5664 = vmatmul.mubr.bf16.gmra.mrb[112].mxu0 %v11153_v59  ;;  %6172 = vmatprep.subr.bf16.mxu1 %v7603_v34  ;;  %v1819_v34 = vld [vmem:[#allocation9 + $0xb38] sm:$0xff] }
 0x322   : > { %5721 = vmatpush1.bf16.msra.mxu0 %v7600_v17  ;;  %5673 = vmatprep.mubr.bf16.mxu0 %v11154_v9  ;;  %v7633_v17 = vcombine.high %v1814_v31, %v1818_v21  ;;  %v1839_v21 = vld [vmem:[#allocation9 + $0xbd8] sm:$0xff] }
 0x323   : > { %6116 = vmatmul.mubr.bf16.gmra.mrb[112].mxu1 %v11153_v59  ;;  %5722 = vmatprep.subr.bf16.mxu0 %v7609_v63  ;;  %v1826_v63 = vld [vmem:[#allocation9 + $0xb70] sm:$0xff]  ;;  %v1827_v59 = vld [vmem:[#allocation9 + $0xb78] sm:$0xff] }
 0x324   : > { %6125 = vmatprep.mubr.bf16.mxu1 %v11154_v9  ;;  %6173 = vmatpush1.bf16.msra.mxu1 %v7602_v26  ;;  %v7635_v26 = vcombine.high %v1815_v22, %v1819_v34  ;;  %v7634_v9 = vcombine.low %v1815_v22, %v1819_v34  ;;  %v7640_v29 = vcombine.low %v1822_v5, %v1826_v63  ;;  %v1850_v22 = vld [vmem:[#allocation9 + $0xc30] sm:$0xff] }
 0x325   : > { %6174 = vmatprep.subr.bf16.mxu1 %v7611_v48  ;;  %v7641_v48 = vcombine.high %v1822_v5, %v1826_v63  ;;  %v7642_v51 = vcombine.low %v1823_v3, %v1827_v59  ;;  %v1851_v5 = vld [vmem:[#allocation9 + $0xc38] sm:$0xff] }
 0x326   : > { %5723 = vmatpush1.bf16.msra.mxu0 %v7608_v14  ;;  %v1830_v14 = vld [vmem:[#allocation9 + $0xb90] sm:$0xff] }
 0x327   : > { %5724 = vmatprep.subr.bf16.mxu0 %v7617_v28  ;;  %v7643_v28 = vcombine.high %v1823_v3, %v1827_v59  ;;  %v7648_v31 = vcombine.low %v1830_v14, %v1834_v56  ;;  %v1858_v3 = vld [vmem:[#allocation9 + $0xc70] sm:$0xff] }
 0x328   : > { %6175 = vmatpush1.bf16.msra.mxu1 %v7610_v38  ;;  %v11158_v38 = vld [vmem:[#allocation54_spill] sm:$0xff] }
 0x329   : > { %5674 = vmatmul.mubr.bf16.gmra.mrb[116].mxu0 %v11155_v55  ;;  %6176 = vmatprep.subr.bf16.mxu1 %v7619_v0  ;;  %v1835_v0 = vld [vmem:[#allocation9 + $0xbb8] sm:$0xff] }
 0x32a   : > { %5725 = vmatpush1.bf16.msra.mxu0 %v7616_v27  ;;  %5683 = vmatprep.mubr.bf16.mxu0 %v11156_v13  ;;  %v7649_v27 = vcombine.high %v1830_v14, %v1834_v56  ;;  %v1859_v14 = vld [vmem:[#allocation9 + $0xc78] sm:$0xff] }
 0x32b   : > { %6126 = vmatmul.mubr.bf16.gmra.mrb[116].mxu1 %v11155_v55  ;;  %5726 = vmatprep.subr.bf16.mxu0 %v7625_v11  ;;  %v1842_v11 = vld [vmem:[#allocation9 + $0xbf0] sm:$0xff]  ;;  %v1843_v55 = vld [vmem:[#allocation9 + $0xbf8] sm:$0xff] }
 0x32c   : > { %6135 = vmatprep.mubr.bf16.mxu1 %v11156_v13  ;;  %6177 = vmatpush1.bf16.msra.mxu1 %v7618_v32  ;;  %v7651_v32 = vcombine.high %v1831_v43, %v1835_v0  ;;  %v7650_v13 = vcombine.low %v1831_v43, %v1835_v0  ;;  %v7659_v34 = vcombine.high %v1839_v21, %v1843_v55  ;;  %v1867_v43 = vld [vmem:[#allocation9 + $0xcb8] sm:$0xff] }
 0x32d   : > { %6178 = vmatprep.subr.bf16.mxu1 %v7627_v16  ;;  %v7657_v16 = vcombine.high %v1838_v47, %v1842_v11 }
 0x32e   : > { %5727 = vmatpush1.bf16.msra.mxu0 %v7624_v2  ;;  %v1846_v2 = vld [vmem:[#allocation9 + $0xc10] sm:$0xff] }
 0x32f   : > { %5728 = vmatprep.subr.bf16.mxu0 %v7633_v17  ;;  %v7656_v17 = vcombine.low %v1838_v47, %v1842_v11  ;;  %v7665_v63 = vcombine.high %v1846_v2, %v1850_v22  ;;  %v1874_v47 = vld [vmem:[#allocation9 + $0xcf0] sm:$0xff] }
 0x330   : > { %6179 = vmatpush1.bf16.msra.mxu1 %v7626_v24  ;;  %v1847_v24 = vld [vmem:[#allocation9 + $0xc18] sm:$0xff] }
 0x331   : > { %5684 = vmatmul.mubr.bf16.gmra.mrb[120].mxu0 %v11157_v61  ;;  %6180 = vmatprep.subr.bf16.mxu1 %v7635_v26  ;;  %v7658_v26 = vcombine.low %v1839_v21, %v1843_v55  ;;  %v7667_v59 = vcombine.high %v1847_v24, %v1851_v5  ;;  %v10103_v21 = vld [vmem:[#allocation9 + $0xcf8] sm:$0xff]  ;;  %v10105_v55 = vld [vmem:[#allocation9 + $0xd10] sm:$0xff] }
 0x332   : > { %5729 = vmatpush1.bf16.msra.mxu0 %v7632_v36  ;;  %5693 = vmatprep.mubr.bf16.mxu0 %v11158_v38  ;;  %v1854_v36 = vld [vmem:[#allocation9 + $0xc50] sm:$0xff] }
 0x333   : > { %6136 = vmatmul.mubr.bf16.gmra.mrb[120].mxu1 %v11157_v61  ;;  %5730 = vmatprep.subr.bf16.mxu0 %v7641_v48  ;;  %v7664_v48 = vcombine.low %v1846_v2, %v1850_v22  ;;  %v7673_v56 = vcombine.high %v1854_v36, %v1858_v3  ;;  %v7666_v61 = vcombine.low %v1847_v24, %v1851_v5  ;;  %v1972_v22 = vld [vmem:[#allocation11] sm:$0xff]  ;;  %v10118_v5 = vld [vmem:[#allocation9 + $0xd50] sm:$0xff] }
 0x334   : > { %6145 = vmatprep.mubr.bf16.mxu1 %v11158_v38  ;;  %6181 = vmatpush1.bf16.msra.mxu1 %v7634_v9  ;;  %v1855_v9 = vld [vmem:[#allocation9 + $0xc58] sm:$0xff] }
 0x335   : > { %6182 = vmatprep.subr.bf16.mxu1 %v7643_v28  ;;  %v1862_v28 = vld [vmem:[#allocation9 + $0xc90] sm:$0xff]  ;;  %v7675_v38 = vcombine.high %v1855_v9, %v1859_v14 }
 0x336   : > { %5731 = vmatpush1.bf16.msra.mxu0 %v7640_v29  ;;  %v1863_v29 = vld [vmem:[#allocation9 + $0xc98] sm:$0xff] }
 0x337   : > { %5732 = vmatprep.subr.bf16.mxu0 %v7649_v27  ;;  %v7674_v27 = vcombine.low %v1855_v9, %v1859_v14  ;;  %v7683_v11 = vcombine.high %v1863_v29, %v1867_v43  ;;  %v7682_v2 = vcombine.low %v1863_v29, %v1867_v43  ;;  %v10131_v9 = vld [vmem:[#allocation9 + $0xd78] sm:$0xff]  ;;  %v10133_v14 = vld [vmem:[#allocation9 + $0xd90] sm:$0xff] }
 0x338   : > { %6183 = vmatpush1.bf16.msra.mxu1 %v7642_v51  ;;  %v1870_v51 = vld [vmem:[#allocation9 + $0xcd0] sm:$0xff]  ;;  %v10146_v29 = vld [vmem:[#allocation9 + $0xd98] sm:$0xff] }
 0x339   : > { %5694 = vmatmul.mubr.bf16.gmra.mrb[124].mxu0 %v9654_v60  ;;  %6184 = vmatprep.subr.bf16.mxu1 %v7651_v32  ;;  %v10148_v43 = vld [vmem:[#allocation9 + $0xdb8] sm:$0xff] }
 0x33a   : > { %5733 = vmatpush1.bf16.msra.mxu0 %v7648_v31  ;;  %5736 = vmatprep.mubr.bf16.mxu0 %v9665_v45  ;;  %v10101_v31 = vld [vmem:[#allocation9 + $0xcd8] sm:$0xff] }
 0x33b   : > { %6146 = vmatmul.mubr.bf16.gmra.mrb[124].mxu1 %v9654_v60  ;;  %5734 = vmatprep.subr.bf16.mxu0 %v7657_v16  ;;  %v1866_v60 = vld [vmem:[#allocation9 + $0xcb0] sm:$0xff]  ;;  %v7691_v24 = vcombine.high %v10101_v31, %v10103_v21 }
 0x33c   : > { %6185 = vmatpush1.bf16.msra.mxu1 %v7650_v13  ;;  %6188 = vmatprep.mubr.bf16.mxu1 %v9665_v45  ;;  %v7672_v45 = vcombine.low %v1854_v36, %v1858_v3  ;;  %v7681_v0 = vcombine.high %v1862_v28, %v1866_v60  ;;  %v7680_v32 = vcombine.low %v1862_v28, %v1866_v60  ;;  %v10107_v16 = vld [vmem:[#allocation9 + $0xd30] sm:$0xff]  ;;  %v10109_v13 = vld [vmem:[#allocation9 + $0xd18] sm:$0xff] }
 0x33d   : > { %6186 = vmatprep.subr.bf16.mxu1 %v7659_v34  ;;  %v7688_v34 = vcombine.low %v1870_v51, %v1874_v47  ;;  %v7696_v36 = vcombine.low %v10105_v55, %v10107_v16  ;;  %v7697_v3 = vcombine.high %v10105_v55, %v10107_v16  ;;  %v11160_v60 = vld [vmem:[#allocation23_spill] sm:$0xff]  ;;  %v10174_v16 = vld [vmem:[#allocation9 + $0xdf8] sm:$0xff] }
 0x33e   : > { %5735 = vmatpush1.bf16.msra.mxu0 %v7656_v17  ;;  %v7690_v17 = vcombine.low %v10101_v31, %v10103_v21  ;;  %v10207_v55 = vld [vmem:[#allocation9 + $0xe58] sm:$0xff] }
 0x33f   : > { %5817 = vmatprep.subr.bf16.mxu0 %v7665_v63  ;;  %v10120_v63 = vld [vmem:[#allocation9 + $0xd70] sm:$0xff] }
 0x340   : > { %6187 = vmatpush1.bf16.msra.mxu1 %v7658_v26  ;;  %v10122_v26 = vld [vmem:[#allocation9 + $0xd58] sm:$0xff] }
 0x341   : > { %5737 = vmatmul.mubr.bf16.vlgmr.msra.gmra.mrb[96].mxu0 %v9656_v15  ;;  %6269 = vmatprep.subr.bf16.mxu1 %v7667_v59  ;;  %v10191_v59 = vld [vmem:[#allocation9 + $0xe18] sm:$0xff] }
 0x342   : > { %5818 = vmatpush1.bf16.msra.mxu0 %v7664_v48  ;;  %5746 = vmatprep.mubr.bf16.mxu0 %v9707_v52  ;;  %v6510_v48 = vld [vmem:[#allocation12] sm:$0xff] }
 0x343   : > { %6189 = vmatmul.mubr.bf16.vlgmr.msra.gmra.mrb[96].mxu1 %v9656_v15  ;;  %5819 = vmatprep.subr.bf16.mxu0 %v7673_v56  ;;  %v7689_v15 = vcombine.high %v1870_v51, %v1874_v47  ;;  %v10158_v47 = vld [vmem:[#allocation9 + $0xdd0] sm:$0xff] }
 0x344   : > { %6198 = vmatprep.mubr.bf16.mxu1 %v9707_v52  ;;  %6270 = vmatpush1.bf16.msra.mxu1 %v7666_v61  ;;  %v10111_v52 = vld [vmem:[#allocation9 + $0xd38] sm:$0xff] }
 0x345   : > { %6271 = vmatprep.subr.bf16.mxu1 %v7675_v38  ;;  %v7699_v56 = vcombine.high %v10109_v13, %v10111_v52  ;;  %v11159_v61 = vld [vmem:[#allocation21_spill] sm:$0xff]  ;;  %v10142_v38 = vrot.slane %v1972_v22, %v11160_v60 }
 0x346   : > { %5820 = vmatpush1.bf16.msra.mxu0 %v7672_v45  ;;  %v10139_v28 = vrot.slane %v1972_v22, %v11159_v61  ;;  %v10144_v45 = vld [vmem:[#allocation9 + $0xdb0] sm:$0xff]  ;;  %v10165_v31 = vrot.slane %v6510_v48, %v11159_v61 }
 0x347   : > { %5821 = vmatprep.subr.bf16.mxu0 %v7681_v0  ;;  %v7705_v0 = vcombine.high %v10118_v5, %v10120_v63 }
 0x348   : > { %6272 = vmatpush1.bf16.msra.mxu1 %v7674_v27  ;;  %v11161_v27 = vld [vmem:[#allocation22_spill] sm:$0xff] }
 0x349   : > { %5747 = vmatmul.mubr.bf16.gmra.mrb[100].mxu0 %v9701_v35  ;;  %6273 = vmatprep.subr.bf16.mxu1 %v7683_v11  ;;  %v10156_v51 = vrot.slane %v1972_v22, %v11161_v27  ;;  %v10160_v11 = vld [vmem:[#allocation9 + $0xdf0] sm:$0xff]  ;;  %v10184_v61 = vrot.slane %v6510_v48, %v11161_v27 }
 0x34a   : > { %5822 = vmatpush1.bf16.msra.mxu0 %v7680_v32  ;;  %5756 = vmatprep.mubr.bf16.mxu0 %v9751_v46  ;;  %v10162_v32 = vld [vmem:[#allocation9 + $0xdd8] sm:$0xff]  ;;  %v10219_v27 = vld [vmem:[#allocation9 + $0xe90] sm:$0xff] }
 0x34b   : > { %6199 = vmatmul.mubr.bf16.gmra.mrb[100].mxu1 %v9701_v35  ;;  %5823 = vmatprep.subr.bf16.mxu0 %v7689_v15  ;;  %v7707_v15 = vcombine.high %v10122_v26, %v10131_v9  ;;  %v10178_v35 = vld [vmem:[#allocation9 + $0xe30] sm:$0xff] }
 0x34c   : > { %6208 = vmatprep.mubr.bf16.mxu1 %v9751_v46  ;;  %6274 = vmatpush1.bf16.msra.mxu1 %v7682_v2  ;;  %v11162_v46 = vld [vmem:[#allocation24_spill] sm:$0xff] }
 0x34d   : > { %6275 = vmatprep.subr.bf16.mxu1 %v7691_v24  ;;  %v10168_v21 = vrot.slane %v1972_v22, %v11162_v46  ;;  %v10176_v2 = vld [vmem:[#allocation9 + $0xe10] sm:$0xff]  ;;  %v10181_v24 = vrot.slane %v6510_v48, %v11160_v60  ;;  %v10187_v22 = vrot.slane %v6510_v48, %v11162_v46  ;;  %v10232_v60 = vld [vmem:[#allocation9 + $0xeb8] sm:$0xff] }
 0x34e   : > { %5824 = vmatpush1.bf16.msra.mxu0 %v7688_v34  ;;  %v10205_v46 = vld [vmem:[#allocation9 + $0xe70] sm:$0xff]  ;;  %v11163_v34 = vcombine.low %v10109_v13, %v10111_v52 }
 0x34f   : > { %5825 = vmatprep.subr.bf16.mxu0 %v7697_v3  ;;  %v10234_v48 = vld [vmem:[#allocation9 + $0xed0] sm:$0xff]  ;;  %v10247_v3 = vld [vmem:[#allocation9 + $0xef8] sm:$0xff] }
 0x350   : > { %6276 = vmatpush1.bf16.msra.mxu1 %v7690_v17  ;;  %v10256_v17 = vld [vmem:[#allocation9 + $0xf10] sm:$0xff] }
 0x351   : > { %5757 = vmatmul.mubr.bf16.gmra.mrb[104].mxu0 %v9745_v62  ;;  %6277 = vmatprep.subr.bf16.mxu1 %v7699_v56  ;;  %v10302_v13 = vld [vmem:[#allocation9 + $0xf50] sm:$0xff] }
 0x352   : > { %5826 = vmatpush1.bf16.msra.mxu0 %v7696_v36  ;;  %5766 = vmatprep.mubr.bf16.mxu0 %v9795_v33  ;;  %v10270_v36 = vld [vmem:[#allocation9 + $0xf18] sm:$0xff] }
 0x353   : > { %6209 = vmatmul.mubr.bf16.gmra.mrb[104].mxu1 %v9745_v62  ;;  %5827 = vmatprep.subr.bf16.mxu0 %v7705_v0 }
 0x354   : > { %6218 = vmatprep.mubr.bf16.mxu1 %v9795_v33  ;;  %6278 = vmatpush1.bf16.msra.mxu1 %v11163_v34  ;;  %v4947_v62 = vpop.f32.mrb[64].mxu0 }
 0x355   : > { %v7808_v33 = vadd.f32 %v4947_v62, %v10139_v28  ;;  %v5399_v20 = vpop.f32.mrb[64].mxu1  ;;  %v4949_v4 = vpop.f32.mrb[65].mxu0  ;;  %6279 = vmatprep.subr.bf16.mxu1 %v7707_v15  ;;  %v11164_v62 = vcombine.low %v10118_v5, %v10120_v63 }
 0x356   : > { %v7840_v56 = vadd.f32 %v5399_v20, %v10142_v38  ;;  %v7809_v0 = vadd.f32 %v4949_v4, %v10156_v51  ;;  %v5401_v37 = vpop.f32.mrb[65].mxu1  ;;  %v4951_v1 = vpop.f32.mrb[66].mxu0  ;;  %v11165_v4 = vcombine.high %v10133_v14, %v10144_v45 }
 0x357   : > { %5828 = vmatpush1.bf16.msra.mxu0 %v11164_v62  ;;  %v6382_v52 = vmax.f32 %v7808_v33, 0.0  ;;  %v7841_v54 = vadd.f32 %v5401_v37, %v10168_v21  ;;  %v7810_v34 = vadd.f32 %v4951_v1, %v10139_v28  ;;  %v5403_v20 = vpop.f32.mrb[66].mxu1  ;;  %v4953_v57 = vpop.f32.mrb[67].mxu0  ;;  %v11166_v33 = vcombine.low %v10122_v26, %v10131_v9 }
 0x358   : > { %5829 = vmatprep.subr.bf16.mxu0 %v11165_v4  ;;  %v6384_v63 = vmax.f32 %v7840_v56, 0.0  ;;  %v6383_v62 = vmax.f32 %v7809_v0, 0.0  ;;  %v7842_v15 = vadd.f32 %v5403_v20, %v10142_v38  ;;  %v7811_v37 = vadd.f32 %v4953_v57, %v10156_v51  ;;  %v5405_v1 = vpop.f32.mrb[67].mxu1 }
 0x359   : > { %6280 = vmatpush1.bf16.msra.mxu1 %v11166_v33  ;;  %v6552_v4 = vmul.f32 %v10165_v31, %v6382_v52  ;;  %v6385_v25 = vmax.f32 %v7841_v54, 0.0  ;;  %v6390_v19 = vmax.f32 %v7810_v34, 0.0  ;;  %v7843_v56 = vadd.f32 %v5405_v1, %v10168_v21  ;;  %5767 = vmatmul.mubr.bf16.gmra.mrb[108].mxu0 %v9789_v6  ;;  %v10319_v52 = vld [vmem:[#allocation9 + $0xf58] sm:$0xff] }
 0x35a   : > { %v11167_v0 = vcombine.high %v10146_v29, %v10148_v43  ;;  %v6553_v26 = vmul.f32 %v10184_v61, %v6383_v62  ;;  %v6392_v57 = vmax.f32 %v7842_v15, 0.0  ;;  %v6391_v9 = vmax.f32 %v7811_v37, 0.0  ;;  %5776 = vmatprep.mubr.bf16.mxu0 %v9839_v10  ;;  %v10321_v34 = vld [vmem:[#allocation9 + $0xf78] sm:$0xff] }
 0x35b   : > { %v11168_v20 = vcombine.low %v10133_v14, %v10144_v45  ;;  %v7763_v54 = vcombine.high %v10270_v36, %v10272_v53  ;;  %v6560_v33 = vmul.f32 %v10165_v31, %v6390_v19  ;;  %v6393_v1 = vmax.f32 %v7843_v56, 0.0  ;;  %6219 = vmatmul.mubr.bf16.gmra.mrb[108].mxu1 %v9789_v6 }
 0x35c   : > { %6281 = vmatprep.subr.bf16.mxu1 %v11167_v0  ;;  %v11169_v15 = vcombine.high %v10158_v47, %v10160_v11  ;;  %v6554_v62 = vmul.f32 %v10181_v24, %v6384_v63  ;;  %v6680_v37 = vadd.f32 %v6553_v26, %v6552_v4  ;;  %v6561_v0 = vmul.f32 %v10184_v61, %v6391_v9  ;;  %v4957_v19 = vpop.f32.mrb[68].mxu0 }
 0x35d   : > { %5830 = vmatpush1.bf16.msra.mxu0 %v11168_v20  ;;  %6228 = vmatprep.mubr.bf16.mxu1 %v9839_v10  ;;  %v11170_v6 = vcombine.low %v10146_v29, %v10148_v43  ;;  %v6555_v56 = vmul.f32 %v10187_v22, %v6385_v25  ;;  %v6562_v20 = vmul.f32 %v10181_v24, %v6392_v57  ;;  %v5409_v14 = vpop.f32.mrb[68].mxu1  ;;  %v4959_v45 = vpop.f32.mrb[69].mxu0 }
 0x35e   : > { %5831 = vmatprep.subr.bf16.mxu0 %v11169_v15  ;;  %v7812_v15 = vadd.f32 %v4957_v19, %v10139_v28  ;;  %v11171_v63 = vcombine.high %v10162_v32, %v10174_v16  ;;  %v6681_v4 = vadd.f32 %v6680_v37, %v6554_v62  ;;  %v6689_v26 = vadd.f32 %v6561_v0, %v6560_v33  ;;  %v5411_v25 = vpop.f32.mrb[69].mxu1  ;;  %v4961_v9 = vpop.f32.mrb[70].mxu0  ;;  %v10362_v0 = vld [vmem:[#allocation9 + $0xf90] sm:$0xff] }
 0x35f   : > { %6282 = vmatpush1.bf16.msra.mxu1 %v11170_v6  ;;  %v7844_v29 = vadd.f32 %v5409_v14, %v10142_v38  ;;  %v7813_v43 = vadd.f32 %v4959_v45, %v10156_v51  ;;  %v11172_v57 = vcombine.low %v10158_v47, %v10160_v11  ;;  %v6563_v6 = vmul.f32 %v10187_v22, %v6393_v1  ;;  %v5413_v10 = vpop.f32.mrb[70].mxu1  ;;  %v4963_v62 = vpop.f32.mrb[71].mxu0 }
 0x360   : > { %6283 = vmatprep.subr.bf16.mxu1 %v11171_v63  ;;  %v6398_v19 = vmax.f32 %v7812_v15, 0.0  ;;  %v7845_v63 = vadd.f32 %v5411_v25, %v10168_v21  ;;  %v7814_v5 = vadd.f32 %v4961_v9, %v10139_v28  ;;  %v11173_v33 = vcombine.high %v10176_v2, %v10178_v35  ;;  %v5415_v1 = vpop.f32.mrb[71].mxu1  ;;  %v10364_v15 = vld [vmem:[#allocation9 + $0xfb0] sm:$0xff] }
 0x361   : > { %5832 = vmatpush1.bf16.msra.mxu0 %v11172_v57  ;;  %v10357_v14 = vadd.f32 %v6681_v4, %v6555_v56  ;;  %v6690_v45 = vadd.f32 %v6689_v26, %v6562_v20  ;;  %v6400_v37 = vmax.f32 %v7844_v29, 0.0  ;;  %v6399_v47 = vmax.f32 %v7813_v43, 0.0  ;;  %v10383_v26 = vld [vmem:[#allocation9 + $0xfb8] sm:$0xff] }
 0x362   : > { %5833 = vmatprep.subr.bf16.mxu0 %v11173_v33  ;;  %v11174_v11 = vcombine.low %v10162_v32, %v10174_v16  ;;  %v6568_v25 = vmul.f32 %v10165_v31, %v6398_v19  ;;  %v6401_v57 = vmax.f32 %v7845_v63, 0.0  ;;  %v6406_v9 = vmax.f32 %v7814_v5, 0.0  ;;  %5777 = vmatmul.mubr.bf16.gmra.mrb[112].mxu0 %v9833_v23 }
 0x363   : > { %v7846_v33 = vadd.f32 %v5413_v10, %v10142_v38  ;;  %v11175_v56 = vcombine.high %v10191_v59, %v10193_v12  ;;  %v10372_v20 = vadd.f32 %v6690_v45, %v6563_v6  ;;  %v6569_v32 = vmul.f32 %v10184_v61, %v6399_v47  ;;  %v10381_v10 = vld [vmem:[#allocation9 + $0xf98] sm:$0xff]  ;;  %6229 = vmatmul.mubr.bf16.gmra.mrb[112].mxu1 %v9833_v23 }
 0x364   : > { %6284 = vmatpush1.bf16.msra.mxu1 %v11174_v11  ;;  %v7815_v16 = vadd.f32 %v4963_v62, %v10156_v51  ;;  %v11176_v4 = vcombine.low %v10176_v2, %v10178_v35  ;;  %v7771_v5 = vcombine.high %v10319_v52, %v10321_v34  ;;  %v7847_v43 = vadd.f32 %v5415_v1, %v10168_v21  ;;  %v4967_v23 = vpop.f32.mrb[72].mxu0 }
 0x365   : > { %6285 = vmatprep.subr.bf16.mxu1 %v11175_v56  ;;  %v6408_v29 = vmax.f32 %v7846_v33, 0.0  ;;  %5786 = vmatprep.mubr.bf16.mxu0 %v9883_v44  ;;  %v7776_v6 = vcombine.low %v10362_v0, %v10364_v15  ;;  %v7777_v35 = vcombine.high %v10362_v0, %v10364_v15  ;;  %v6570_v2 = vmul.f32 %v10181_v24, %v6400_v37  ;;  %v5419_v33 = vpop.f32.mrb[72].mxu1 }
 0x366   : > { %5834 = vmatpush1.bf16.msra.mxu0 %v11176_v4  ;;  %v6698_v19 = vadd.f32 %v6569_v32, %v6568_v25  ;;  %v6576_v63 = vmul.f32 %v10165_v31, %v6406_v9  ;;  %v6407_v62 = vmax.f32 %v7815_v16, 0.0  ;;  %6238 = vmatprep.mubr.bf16.mxu1 %v9883_v44  ;;  %v11177_v45 = vcombine.low %v10191_v59, %v10193_v12  ;;  %v4969_v25 = vpop.f32.mrb[73].mxu0  ;;  %v5421_v32 = vpop.f32.mrb[73].mxu1 }
 0x367   : > { %v6571_v47 = vmul.f32 %v10187_v22, %v6401_v57  ;;  %v6409_v11 = vmax.f32 %v7847_v43, 0.0  ;;  %v7816_v1 = vadd.f32 %v4967_v23, %v10139_v28  ;;  %v11178_v37 = vcombine.high %v10195_v7, %v10205_v46  ;;  %v4971_v4 = vpop.f32.mrb[74].mxu0 }
 0x368   : > { %6286 = vmatpush1.bf16.msra.mxu1 %v11177_v45  ;;  %v11179_v9 = vcombine.high %v10207_v55, %v10209_v18  ;;  %v7778_v44 = vcombine.low %v10381_v10, %v10383_v26  ;;  %v6699_v12 = vadd.f32 %v6698_v19, %v6570_v2  ;;  %v6577_v59 = vmul.f32 %v10184_v61, %v6407_v62  ;;  %v5423_v2 = vpop.f32.mrb[74].mxu1  ;;  %v4973_v19 = vpop.f32.mrb[75].mxu0 }
 0x369   : > { %5835 = vmatprep.subr.bf16.mxu0 %v11178_v37  ;;  %v7848_v57 = vadd.f32 %v5419_v33, %v10142_v38  ;;  %v7817_v56 = vadd.f32 %v4969_v25, %v10156_v51  ;;  %v11180_v16 = vcombine.low %v10195_v7, %v10205_v46  ;;  %v6578_v43 = vmul.f32 %v10181_v24, %v6408_v29  ;;  %v5425_v29 = vpop.f32.mrb[75].mxu1 }
 0x36a   : > { %6287 = vmatprep.subr.bf16.mxu1 %v11179_v9  ;;  %v6414_v45 = vmax.f32 %v7816_v1, 0.0  ;;  %v7849_v23 = vadd.f32 %v5421_v32, %v10168_v21  ;;  %v7818_v37 = vadd.f32 %v4971_v4, %v10139_v28  ;;  %v11181_v62 = vcombine.high %v10219_v27, %v10221_v40  ;;  %5787 = vmatmul.mubr.bf16.gmra.mrb[116].mxu0 %v9877_v8 }
 0x36b   : > { %5836 = vmatpush1.bf16.msra.mxu0 %v11180_v16  ;;  %v10420_v33 = vadd.f32 %v6699_v12, %v6571_v47  ;;  %v6707_v25 = vadd.f32 %v6577_v59, %v6576_v63  ;;  %v6416_v9 = vmax.f32 %v7848_v57, 0.0  ;;  %v6415_v7 = vmax.f32 %v7817_v56, 0.0  ;;  %v10437_v57 = vld [vmem:[#allocation9 + $0xfd0] sm:$0xff]  ;;  %6239 = vmatmul.mubr.bf16.gmra.mrb[116].mxu1 %v9877_v8 }
 0x36c   : > { %5837 = vmatprep.subr.bf16.mxu0 %v11181_v62  ;;  %v11182_v46 = vcombine.low %v10207_v55, %v10209_v18  ;;  %v6584_v1 = vmul.f32 %v10165_v31, %v6414_v45  ;;  %v6417_v32 = vmax.f32 %v7849_v23, 0.0  ;;  %v6422_v16 = vmax.f32 %v7818_v37, 0.0  ;;  %v10439_v56 = vld [vmem:[#allocation9 + $0xff0] sm:$0xff]  ;;  %5796 = vmatprep.mubr.bf16.mxu0 %v9927_v58  ;;  %v4977_v62 = vpop.f32.mrb[76].mxu0 }
 0x36d   : > { %v7850_v4 = vadd.f32 %v5423_v2, %v10142_v38  ;;  %v11183_v47 = vcombine.high %v10223_v30, %v10232_v60  ;;  %v6579_v63 = vmul.f32 %v10187_v22, %v6409_v11  ;;  %v6708_v12 = vadd.f32 %v6707_v25, %v6578_v43  ;;  %6248 = vmatprep.mubr.bf16.mxu1 %v9927_v58 }
 0x36e   : > { %6288 = vmatpush1.bf16.msra.mxu1 %v11182_v46  ;;  %v6585_v59 = vmul.f32 %v10184_v61, %v6415_v7  ;;  %v7819_v18 = vadd.f32 %v4973_v19, %v10156_v51  ;;  %v11184_v55 = vcombine.low %v10219_v27, %v10221_v40  ;;  %v6586_v45 = vmul.f32 %v10181_v24, %v6416_v9  ;;  %v5429_v7 = vpop.f32.mrb[76].mxu1 }
 0x36f   : > { %6289 = vmatprep.subr.bf16.mxu1 %v11183_v47  ;;  %v6424_v23 = vmax.f32 %v7850_v4, 0.0  ;;  %v7851_v37 = vadd.f32 %v5425_v29, %v10168_v21  ;;  %v7779_v11 = vcombine.high %v10381_v10, %v10383_v26  ;;  %v10447_v43 = vadd.f32 %v6708_v12, %v6579_v63  ;;  %v4979_v29 = vpop.f32.mrb[77].mxu0  ;;  %v5431_v4 = vpop.f32.mrb[77].mxu1 }
 0x370   : > { %5838 = vmatpush1.bf16.msra.mxu0 %v11184_v55  ;;  %v6716_v40 = vadd.f32 %v6585_v59, %v6584_v1  ;;  %v6592_v27 = vmul.f32 %v10165_v31, %v6422_v16  ;;  %v6423_v2 = vmax.f32 %v7819_v18, 0.0  ;;  %v11185_v19 = vcombine.low %v10223_v30, %v10232_v60  ;;  %v4981_v63 = vpop.f32.mrb[78].mxu0 }
 0x371   : > { %v6587_v8 = vmul.f32 %v10187_v22, %v6417_v32  ;;  %v6425_v25 = vmax.f32 %v7851_v37, 0.0  ;;  %v7820_v9 = vadd.f32 %v4977_v62, %v10139_v28  ;;  %v11186_v46 = vcombine.high %v10234_v48, %v10236_v49  ;;  %v4983_v37 = vpop.f32.mrb[79].mxu0 }
 0x372   : > { %6290 = vmatpush1.bf16.msra.mxu1 %v11185_v19  ;;  %v11187_v1 = vcombine.high %v10245_v50, %v10247_v3  ;;  %v7785_v30 = vcombine.high %v10437_v57, %v10439_v56  ;;  %v6717_v58 = vadd.f32 %v6716_v40, %v6586_v45  ;;  %v6593_v60 = vmul.f32 %v10184_v61, %v6423_v2  ;;  %v5433_v45 = vpop.f32.mrb[78].mxu1 }
 0x373   : > { %5839 = vmatprep.subr.bf16.mxu0 %v11186_v46  ;;  %v7852_v32 = vadd.f32 %v5429_v7, %v10142_v38  ;;  %v7821_v16 = vadd.f32 %v4979_v29, %v10156_v51  ;;  %v11188_v47 = vcombine.low %v10234_v48, %v10236_v49  ;;  %v6594_v12 = vmul.f32 %v10181_v24, %v6424_v23  ;;  %v5435_v23 = vpop.f32.mrb[79].mxu1 }
 0x374   : > { %6291 = vmatprep.subr.bf16.mxu1 %v11187_v1  ;;  %v6430_v59 = vmax.f32 %v7820_v9, 0.0  ;;  %v7853_v18 = vadd.f32 %v5431_v4, %v10168_v21  ;;  %v7822_v55 = vadd.f32 %v4981_v63, %v10139_v28  ;;  %v11189_v40 = vcombine.high %v10256_v17, %v10258_v39  ;;  %5797 = vmatmul.mubr.bf16.gmra.mrb[120].mxu0 %v9921_v41 }
 0x375   : > { %5840 = vmatpush1.bf16.msra.mxu0 %v11188_v47  ;;  %v10476_v2 = vadd.f32 %v6717_v58, %v6587_v8  ;;  %v6725_v19 = vadd.f32 %v6593_v60, %v6592_v27  ;;  %v6432_v62 = vmax.f32 %v7852_v32, 0.0  ;;  %v6431_v49 = vmax.f32 %v7821_v16, 0.0  ;;  %v10493_v58 = vld [vmem:[#allocation9 + $0xfd8] sm:$0xff]  ;;  %6249 = vmatmul.mubr.bf16.gmra.mrb[120].mxu1 %v9921_v41 }
 0x376   : > { %5841 = vmatprep.subr.bf16.mxu0 %v11189_v40  ;;  %v11190_v48 = vcombine.low %v10245_v50, %v10247_v3  ;;  %v6600_v9 = vmul.f32 %v10165_v31, %v6430_v59  ;;  %v6433_v7 = vmax.f32 %v7853_v18, 0.0  ;;  %v6438_v46 = vmax.f32 %v7822_v55, 0.0  ;;  %v10495_v60 = vld [vmem:[#allocation9 + $0xff8] sm:$0xff]  ;;  %v4987_v59 = vpop.f32.mrb[80].mxu0 }
 0x377   : > { %v7854_v29 = vadd.f32 %v5433_v45, %v10142_v38  ;;  %v6595_v27 = vmul.f32 %v10187_v22, %v6425_v25  ;;  %v6726_v8 = vadd.f32 %v6725_v19, %v6594_v12  ;;  %v6601_v1 = vmul.f32 %v10184_v61, %v6431_v49  ;;  %v11192_v25 = vld [vmem:[#allocation69_spill] sm:$0xff]  ;;  %v5439_v45 = vpop.f32.mrb[80].mxu1  ;;  %v4989_v40 = vpop.f32.mrb[81].mxu0 }
 0x378   : > { %6292 = vmatpush1.bf16.msra.mxu1 %v11190_v48  ;;  %v7823_v50 = vadd.f32 %v4983_v37, %v10156_v51  ;;  %v11191_v3 = vcombine.low %v10256_v17, %v10258_v39  ;;  %v6602_v32 = vmul.f32 %v10181_v24, %v6432_v62  ;;  %5806 = vmatprep.mubr.bf16.mxu0 %v11192_v25  ;;  %v5441_v48 = vpop.f32.mrb[81].mxu1 }
 0x379   : > { %6293 = vmatprep.subr.bf16.mxu1 %v7763_v54  ;;  %v6440_v16 = vmax.f32 %v7854_v29, 0.0  ;;  %v7855_v54 = vadd.f32 %v5435_v23, %v10168_v21  ;;  %v7784_v4 = vcombine.low %v10437_v57, %v10439_v56  ;;  %v10503_v47 = vadd.f32 %v6726_v8, %v6595_v27  ;;  %6258 = vmatprep.mubr.bf16.mxu1 %v11192_v25  ;;  %v5443_v27 = vpop.f32.mrb[82].mxu1 }
 0x37a   : > { %5842 = vmatpush1.bf16.msra.mxu0 %v11191_v3  ;;  %v6734_v39 = vadd.f32 %v6601_v1, %v6600_v9  ;;  %v6608_v17 = vmul.f32 %v10165_v31, %v6438_v46  ;;  %v6439_v63 = vmax.f32 %v7823_v50, 0.0  ;;  %v11193_v12 = vcombine.low %v10270_v36, %v10272_v53  ;;  %v4991_v9 = vpop.f32.mrb[82].mxu0 }
 0x37b   : > { %v6603_v41 = vmul.f32 %v10187_v22, %v6433_v7  ;;  %v6441_v18 = vmax.f32 %v7855_v54, 0.0  ;;  %v7824_v55 = vadd.f32 %v4987_v59, %v10139_v28  ;;  %v11194_v37 = vcombine.high %v10302_v13, %v10304_v42  ;;  %v4993_v8 = vpop.f32.mrb[83].mxu0 }
 0x37c   : > { %6294 = vmatpush1.bf16.msra.mxu1 %v11193_v12  ;;  %v7787_v53 = vcombine.high %v10493_v58, %v10495_v60  ;;  %v6735_v36 = vadd.f32 %v6734_v39, %v6602_v32  ;;  %v6609_v19 = vmul.f32 %v10184_v61, %v6439_v63  ;;  %v7856_v62 = vadd.f32 %v5439_v45, %v10142_v38  ;;  %v5445_v32 = vpop.f32.mrb[83].mxu1  ;;  %v11197_v63 = vld [vmem:[#allocation67_spill] sm:$0xff]  ;;  %v4997_v0 = vpop.f32.mrb[84].mxu0 }
 0x37d   : > { %5843 = vmatprep.subr.bf16.mxu0 %v11194_v37  ;;  %6295 = vmatprep.subr.bf16.mxu1 %v7771_v5  ;;  %v7825_v49 = vadd.f32 %v4989_v40, %v10156_v51  ;;  %v11195_v23 = vcombine.low %v10302_v13, %v10304_v42  ;;  %v6610_v7 = vmul.f32 %v10181_v24, %v6440_v16  ;;  %v6446_v46 = vmax.f32 %v7824_v55, 0.0  ;;  %v11198_v55 = vld [vmem:[#allocation56_spill] sm:$0xff] }
 0x37e   : > { %v7857_v5 = vadd.f32 %v5441_v48, %v10168_v21  ;;  %v7826_v29 = vadd.f32 %v4991_v9, %v10139_v28  ;;  %v10532_v1 = vadd.f32 %v6735_v36, %v6603_v41  ;;  %v6743_v50 = vadd.f32 %v6609_v19, %v6608_v17  ;;  %5807 = vmatmul.mubr.bf16.gmra.mrb[124].mxu0 %v11197_v63  ;;  %v5449_v19 = vpop.f32.mrb[84].mxu1 }
 0x37f   : > { %5844 = vmatpush1.bf16.msra.mxu0 %v11195_v23  ;;  %v6448_v3 = vmax.f32 %v7856_v62, 0.0  ;;  %v6447_v42 = vmax.f32 %v7825_v49, 0.0  ;;  %v11196_v13 = vcombine.low %v10319_v52, %v10321_v34  ;;  %v6616_v16 = vmul.f32 %v10165_v31, %v6446_v46  ;;  %6259 = vmatmul.mubr.bf16.gmra.mrb[124].mxu1 %v11197_v63 }
 0x380   : > { %5845 = vmatprep.subr.bf16.mxu0 %v7777_v35  ;;  %v6449_v54 = vmax.f32 %v7857_v5, 0.0  ;;  %v6454_v25 = vmax.f32 %v7826_v29, 0.0  ;;  %v7858_v39 = vadd.f32 %v5443_v27, %v10142_v38  ;;  %v6611_v35 = vmul.f32 %v10187_v22, %v6441_v18  ;;  %5849 = vmatprep.mubr.bf16.mxu0 %v11198_v55 }
 0x381   : > { %6296 = vmatpush1.bf16.msra.mxu1 %v11196_v13  ;;  %v6744_v17 = vadd.f32 %v6743_v50, %v6610_v7  ;;  %v6617_v12 = vmul.f32 %v10184_v61, %v6447_v42  ;;  %v7827_v52 = vadd.f32 %v4993_v8, %v10156_v51  ;;  %v6618_v34 = vmul.f32 %v10181_v24, %v6448_v3  ;;  %v11199_v3 = vld [vmem:[#allocation55_spill] sm:$0xff] }
 0x382   : > { %6297 = vmatprep.subr.bf16.mxu1 %v7779_v11  ;;  %v6456_v59 = vmax.f32 %v7858_v39, 0.0  ;;  %v7859_v41 = vadd.f32 %v5445_v32, %v10168_v21  ;;  %v7786_v11 = vcombine.low %v10493_v58, %v10495_v60  ;;  %v6624_v37 = vmul.f32 %v10165_v31, %v6454_v25  ;;  %6301 = vmatprep.mubr.bf16.mxu1 %v11198_v55  ;;  %v4999_v58 = vpop.f32.mrb[85].mxu0 }
 0x383   : > { %5846 = vmatpush1.bf16.msra.mxu0 %v7776_v6  ;;  %v10555_v18 = vadd.f32 %v6744_v17, %v6611_v35  ;;  %v6752_v45 = vadd.f32 %v6617_v12, %v6616_v16  ;;  %v6455_v40 = vmax.f32 %v7827_v52, 0.0  ;;  %v6619_v15 = vmul.f32 %v10187_v22, %v6449_v54  ;;  %v5001_v49 = vpop.f32.mrb[86].mxu0  ;;  %v11200_v54 = vld [vmem:[#allocation58_spill] sm:$0xff] }
 0x384   : > { %v6457_v6 = vmax.f32 %v7859_v41, 0.0  ;;  %v7828_v36 = vadd.f32 %v4997_v0, %v10139_v28  ;;  %5847 = vmatprep.subr.bf16.mxu0 %v7785_v30  ;;  %v7860_v10 = vadd.f32 %v5449_v19, %v10142_v38  ;;  %v7829_v26 = vadd.f32 %v4999_v58, %v10156_v51  ;;  %v5003_v7 = vpop.f32.mrb[87].mxu0 }
 0x385   : > { %6298 = vmatpush1.bf16.msra.mxu1 %v7778_v44  ;;  %v6753_v60 = vadd.f32 %v6752_v45, %v6618_v34  ;;  %v6625_v62 = vmul.f32 %v10184_v61, %v6455_v40  ;;  %v5451_v44 = vpop.f32.mrb[85].mxu1  ;;  %v6626_v48 = vmul.f32 %v10181_v24, %v6456_v59  ;;  %v7831_v16 = vadd.f32 %v5003_v7, %v10156_v51  ;;  %v5007_v34 = vpop.f32.mrb[88].mxu0 }
 0x386   : > { %6299 = vmatprep.subr.bf16.mxu1 %v7787_v53  ;;  %v6462_v23 = vmax.f32 %v7828_v36, 0.0  ;;  %v7861_v30 = vadd.f32 %v5451_v44, %v10168_v21  ;;  %v7830_v53 = vadd.f32 %v5001_v49, %v10139_v28  ;;  %v5453_v9 = vpop.f32.mrb[86].mxu1  ;;  %v6464_v29 = vmax.f32 %v7860_v10, 0.0  ;;  %v5009_v45 = vpop.f32.mrb[89].mxu0 }
 0x387   : > { %5848 = vmatpush1.bf16.msra.mxu0 %v7784_v4  ;;  %v10576_v46 = vadd.f32 %v6753_v60, %v6619_v15  ;;  %v6761_v5 = vadd.f32 %v6625_v62, %v6624_v37  ;;  %v6463_v27 = vmax.f32 %v7829_v26, 0.0  ;;  %v5455_v8 = vpop.f32.mrb[87].mxu1  ;;  %v7862_v50 = vadd.f32 %v5453_v9, %v10142_v38  ;;  %v5011_v36 = vpop.f32.mrb[90].mxu0 }
 0x388   : > { %v6632_v57 = vmul.f32 %v10165_v31, %v6462_v23  ;;  %v6465_v56 = vmax.f32 %v7861_v30, 0.0  ;;  %v6470_v4 = vmax.f32 %v7830_v53, 0.0  ;;  %v6627_v42 = vmul.f32 %v10187_v22, %v6457_v6  ;;  %v5013_v26 = vpop.f32.mrb[91].mxu0 }
 0x389   : > { %6300 = vmatpush1.bf16.msra.mxu1 %v7786_v11  ;;  %v6762_v13 = vadd.f32 %v6761_v5, %v6626_v48  ;;  %v6633_v32 = vmul.f32 %v10184_v61, %v6463_v27  ;;  %v6634_v25 = vmul.f32 %v10181_v24, %v6464_v29  ;;  %v6472_v39 = vmax.f32 %v7862_v50, 0.0  ;;  %v5459_v11 = vpop.f32.mrb[88].mxu1  ;;  %v11201_v29 = vld [vmem:[#allocation57_spill] sm:$0xff] }
 0x38a   : > { %5850 = vmatmul.mubr.bf16.vlgmr.msra.gmra.mrb[96].mxu0 %v11199_v3  ;;  %v7863_v63 = vadd.f32 %v5455_v8, %v10168_v21  ;;  %v6640_v12 = vmul.f32 %v10165_v31, %v6470_v4  ;;  %v6471_v52 = vmax.f32 %v7831_v16, 0.0  ;;  %v6635_v59 = vmul.f32 %v10187_v22, %v6465_v56  ;;  %v5461_v6 = vpop.f32.mrb[89].mxu1  ;;  %v11202_v4 = vld [vmem:[#allocation60_spill] sm:$0xff] }
 0x38b   : > { %5859 = vmatprep.mubr.bf16.mxu0 %v11200_v54  ;;  %v10588_v35 = vadd.f32 %v6762_v13, %v6627_v42  ;;  %v6770_v17 = vadd.f32 %v6633_v32, %v6632_v57  ;;  %v7832_v55 = vadd.f32 %v5007_v34, %v10139_v28  ;;  %v7864_v0 = vadd.f32 %v5459_v11, %v10142_v38  ;;  %v5463_v10 = vpop.f32.mrb[90].mxu1 }
 0x38c   : > { %6302 = vmatmul.mubr.bf16.vlgmr.msra.gmra.mrb[96].mxu1 %v11199_v3  ;;  %v6473_v41 = vmax.f32 %v7863_v63, 0.0  ;;  %v6641_v40 = vmul.f32 %v10184_v61, %v6471_v52  ;;  %v7833_v15 = vadd.f32 %v5009_v45, %v10156_v51  ;;  %v6642_v19 = vmul.f32 %v10181_v24, %v6472_v39  ;;  %v5465_v30 = vpop.f32.mrb[91].mxu1 }
 0x38d   : > { %6311 = vmatprep.mubr.bf16.mxu1 %v11200_v54  ;;  %v6771_v37 = vadd.f32 %v6770_v17, %v6634_v25  ;;  %v6478_v58 = vmax.f32 %v7832_v55, 0.0  ;;  %v7865_v60 = vadd.f32 %v5461_v6, %v10168_v21  ;;  %v7834_v62 = vadd.f32 %v5011_v36, %v10139_v28  ;;  %v5017_v25 = vpop.f32.mrb[92].mxu0 }
 0x38e   : > { %v6779_v49 = vadd.f32 %v6641_v40, %v6640_v12  ;;  %v6480_v48 = vmax.f32 %v7864_v0, 0.0  ;;  %v6479_v23 = vmax.f32 %v7833_v15, 0.0  ;;  %v7866_v5 = vadd.f32 %v5463_v10, %v10142_v38  ;;  %v5469_v12 = vpop.f32.mrb[92].mxu1  ;;  %v5019_v52 = vpop.f32.mrb[93].mxu0 }
 0x38f   : > { %v10600_v44 = vadd.f32 %v6771_v37, %v6635_v59  ;;  %v6648_v53 = vmul.f32 %v10165_v31, %v6478_v58  ;;  %v6481_v9 = vmax.f32 %v7865_v60, 0.0  ;;  %v6486_v7 = vmax.f32 %v7834_v62, 0.0  ;;  %v5471_v11 = vpop.f32.mrb[93].mxu1  ;;  %v5021_v45 = vpop.f32.mrb[94].mxu0 }
 0x390   : > { %v6643_v27 = vmul.f32 %v10187_v22, %v6473_v41  ;;  %v6780_v8 = vadd.f32 %v6779_v49, %v6642_v19  ;;  %v6649_v57 = vmul.f32 %v10184_v61, %v6479_v23  ;;  %v7835_v56 = vadd.f32 %v5013_v26, %v10156_v51  ;;  %v5473_v6 = vpop.f32.mrb[94].mxu1  ;;  %v5023_v36 = vpop.f32.mrb[95].mxu0 }
 0x391   : > { %v6650_v50 = vmul.f32 %v10181_v24, %v6480_v48  ;;  %v6488_v3 = vmax.f32 %v7866_v5, 0.0  ;;  %v7867_v42 = vadd.f32 %v5465_v30, %v10168_v21  ;;  %v6656_v16 = vmul.f32 %v10165_v31, %v6486_v7  ;;  %v5475_v10 = vpop.f32.mrb[95].mxu1  ;;  %v11203_v30 = vld [vmem:[#allocation59_spill] sm:$0xff]  ;;  %v11204_v5 = vld [vmem:[#allocation62_spill] sm:$0xff] }
 0x392   : > { %5860 = vmatmul.mubr.bf16.gmra.mrb[100].mxu0 %v11201_v29  ;;  %v10612_v13 = vadd.f32 %v6780_v8, %v6643_v27  ;;  %v6788_v32 = vadd.f32 %v6649_v57, %v6648_v53  ;;  %v6487_v54 = vmax.f32 %v7835_v56, 0.0  ;;  %v6651_v39 = vmul.f32 %v10187_v22, %v6481_v9 }
 0x393   : > { %5869 = vmatprep.mubr.bf16.mxu0 %v11202_v4  ;;  %v6489_v63 = vmax.f32 %v7867_v42, 0.0  ;;  %v7836_v17 = vadd.f32 %v5017_v25, %v10139_v28  ;;  %v7868_v41 = vadd.f32 %v5469_v12, %v10142_v38  ;;  %v7837_v55 = vadd.f32 %v5019_v52, %v10156_v51  ;;  %v11211_v12 = vld [vmem:[#allocation68_spill] sm:$0xff] }
 0x394   : > { %6312 = vmatmul.mubr.bf16.gmra.mrb[100].mxu1 %v11201_v29  ;;  %v6789_v34 = vadd.f32 %v6788_v32, %v6650_v50  ;;  %v6657_v59 = vmul.f32 %v10184_v61, %v6487_v54  ;;  %v6658_v37 = vmul.f32 %v10181_v24, %v6488_v3  ;;  %v7869_v0 = vadd.f32 %v5471_v11, %v10168_v21  ;;  %v11212_v52 = vld [vmem:[#allocation72_spill] sm:$0xff]  ;;  %v11215_v11 = vld [vmem:[#allocation47_spill] sm:$0xff] }
 0x395   : > { %6321 = vmatprep.mubr.bf16.mxu1 %v11202_v4  ;;  %v6494_v40 = vmax.f32 %v7836_v17, 0.0  ;;  %v7838_v15 = vadd.f32 %v5021_v45, %v10139_v28  ;;  %v6496_v60 = vmax.f32 %v7868_v41, 0.0  ;;  %v6495_v62 = vmax.f32 %v7837_v55, 0.0  ;;  %v11208_v17 = vld [vmem:[#allocation66_spill] sm:$0xff] }
 0x396   : > { %v10624_v19 = vadd.f32 %v6789_v34, %v6651_v39  ;;  %v6797_v58 = vadd.f32 %v6657_v59, %v6656_v16  ;;  %v6659_v26 = vmul.f32 %v10187_v22, %v6489_v63  ;;  %v7870_v23 = vadd.f32 %v5473_v6, %v10142_v38  ;;  %v11205_v16 = vld [vmem:[#allocation61_spill] sm:$0xff]  ;;  %v11206_v39 = vld [vmem:[#allocation64_spill] sm:$0xff]  ;;  %v11213_v34 = vld [vmem:[#allocation71_spill] sm:$0xff] }
 0x397   : > { %v6664_v49 = vmul.f32 %v10165_v31, %v6494_v40  ;;  %v6502_v48 = vmax.f32 %v7838_v15, 0.0  ;;  %v6665_v28 = vmul.f32 %v10184_v61, %v6495_v62  ;;  %v6497_v9 = vmax.f32 %v7869_v0, 0.0  ;;  %v8486_v59 = vld [vmem:[#allocation11] sm:$0xff] }
 0x398   : > { %v6798_v53 = vadd.f32 %v6797_v58, %v6658_v37  ;;  %v7839_v7 = vadd.f32 %v5023_v36, %v10156_v51  ;;  %v6666_v29 = vmul.f32 %v10181_v24, %v6496_v60  ;;  %v7871_v8 = vadd.f32 %v5475_v10, %v10168_v21  ;;  %v11214_v41 = vld [vmem:[#allocation46_spill] sm:$0xff]  ;;  %v11216_v37 = vld [vmem:[#allocation52_spill] sm:$0xff]  ;;  %v11217_v15 = vld [vmem:[#allocation53_spill] sm:$0xff] }
 0x399   : > { %v6672_v27 = vmul.f32 %v10165_v31, %v6502_v48  ;;  %v6806_v38 = vadd.f32 %v6665_v28, %v6664_v49  ;;  %v6504_v56 = vmax.f32 %v7870_v23, 0.0  ;;  %v6667_v50 = vmul.f32 %v10187_v22, %v6497_v9  ;;  %v8487_v58 = vld [vmem:[#allocation12] sm:$0xff] }
 0x39a   : > { %5870 = vmatmul.mubr.bf16.gmra.mrb[104].mxu0 %v11203_v30  ;;  %v10637_v57 = vadd.f32 %v6798_v53, %v6659_v26  ;;  %v6503_v4 = vmax.f32 %v7839_v7, 0.0  ;;  %v6505_v42 = vmax.f32 %v7871_v8, 0.0  ;;  %v10667_v55 = vrot.slane %v8486_v59, %v11214_v41 }
 0x39b   : > { %5879 = vmatprep.mubr.bf16.mxu0 %v11204_v5  ;;  %v6807_v51 = vadd.f32 %v6806_v38, %v6666_v29  ;;  %v6674_v31 = vmul.f32 %v10181_v24, %v6504_v56  ;;  %v11209_v24 = vld [vmem:[#allocation65_spill] sm:$0xff]  ;;  %v10670_v45 = vrot.slane %v8486_v59, %v11215_v11  ;;  %v10673_v40 = vrot.slane %v8486_v59, %v11216_v37 }
 0x39c   : > { %6322 = vmatmul.mubr.bf16.gmra.mrb[104].mxu1 %v11203_v30  ;;  %v6673_v3 = vmul.f32 %v10184_v61, %v6503_v4  ;;  %v6675_v54 = vmul.f32 %v10187_v22, %v6505_v42  ;;  %v11207_v61 = vld [vmem:[#allocation63_spill] sm:$0xff]  ;;  %v11210_v22 = vld [vmem:[#allocation70_spill] sm:$0xff]  ;;  %v10676_v6 = vrot.slane %v8486_v59, %v11217_v15  ;;  %v10680_v60 = vrot.slane %v8487_v58, %v11214_v41 }
 0x39d   : > { %6331 = vmatprep.mubr.bf16.mxu1 %v11204_v5  ;;  %v10642_v32 = vadd.f32 %v6807_v51, %v6667_v50  ;;  %v10684_v49 = vrot.slane %v8487_v58, %v11215_v11  ;;  %v10688_v53 = vrot.slane %v8487_v58, %v11216_v37  ;;  %v10694_v38 = vrot.slane %v8487_v58, %v11217_v15 }
 0x39e   : > { %v6815_v21 = vadd.f32 %v6673_v3, %v6672_v27 }
 0x3a0   : > { %v6816_v25 = vadd.f32 %v6815_v21, %v6674_v31 }
 0x3a2   : > { %5880 = vmatmul.mubr.bf16.gmra.mrb[108].mxu0 %v11205_v16  ;;  %v10649_v63 = vadd.f32 %v6816_v25, %v6675_v54 }
 0x3a3   : > { %5889 = vmatprep.mubr.bf16.mxu0 %v11206_v39 }
 0x3a4   : > { %6332 = vmatmul.mubr.bf16.gmra.mrb[108].mxu1 %v11205_v16 }
 0x3a5   : > { %6341 = vmatprep.mubr.bf16.mxu1 %v11206_v39 }
 0x3aa   : > { %5890 = vmatmul.mubr.bf16.gmra.mrb[112].mxu0 %v11207_v61 }
 0x3ab   : > { %5899 = vmatprep.mubr.bf16.mxu0 %v11208_v17 }
 0x3ac   : > { %6342 = vmatmul.mubr.bf16.gmra.mrb[112].mxu1 %v11207_v61 }
 0x3ad   : > { %6351 = vmatprep.mubr.bf16.mxu1 %v11208_v17 }
 0x3b2   : > { %5900 = vmatmul.mubr.bf16.gmra.mrb[116].mxu0 %v11209_v24 }
 0x3b3   : > { %5909 = vmatprep.mubr.bf16.mxu0 %v11210_v22 }
 0x3b4   : > { %6352 = vmatmul.mubr.bf16.gmra.mrb[116].mxu1 %v11209_v24 }
 0x3b5   : > { %6361 = vmatprep.mubr.bf16.mxu1 %v11210_v22 }
 0x3ba   : > { %5910 = vmatmul.mubr.bf16.gmra.mrb[120].mxu0 %v11211_v12 }
 0x3bb   : > { %5919 = vmatprep.mubr.bf16.mxu0 %v11212_v52 }
 0x3bc   : > { %6362 = vmatmul.mubr.bf16.gmra.mrb[120].mxu1 %v11211_v12 }
 0x3bd   : > { %6371 = vmatprep.mubr.bf16.mxu1 %v11212_v52 }
 0x3c2   : > { %5920 = vmatmul.mubr.bf16.gmra.mrb[124].mxu0 %v11213_v34 }
 0x3c4   : > { %6372 = vmatmul.mubr.bf16.gmra.mrb[124].mxu1 %v11213_v34 }
 0x45d   : > { %v5851_v0 = vpop.f32.mrb[96].mxu0 }
 0x45e   : > { %v7872_v36 = vadd.f32 %v5851_v0, %v10667_v55  ;;  %v5853_v62 = vpop.f32.mrb[97].mxu0 }
 0x45f   : > { %v6303_v10 = vpop.f32.mrb[96].mxu1  ;;  %v7873_v26 = vadd.f32 %v5853_v62, %v10670_v45  ;;  %v5855_v48 = vpop.f32.mrb[98].mxu0 }
 0x460   : > { %v6386_v23 = vmax.f32 %v7872_v36, 0.0  ;;  %v7904_v30 = vadd.f32 %v6303_v10, %v10673_v40  ;;  %v6305_v28 = vpop.f32.mrb[97].mxu1  ;;  %v7874_v9 = vadd.f32 %v5855_v48, %v10667_v55  ;;  %v5857_v7 = vpop.f32.mrb[99].mxu0 }
 0x461   : > { %v6387_v5 = vmax.f32 %v7873_v26, 0.0  ;;  %v7905_v29 = vadd.f32 %v6305_v28, %v10676_v6  ;;  %v6307_v27 = vpop.f32.mrb[98].mxu1  ;;  %v7875_v8 = vadd.f32 %v5857_v7, %v10670_v45 }
 0x462   : > { %v6556_v56 = vmul.f32 %v10680_v60, %v6386_v23  ;;  %v6388_v4 = vmax.f32 %v7904_v30, 0.0  ;;  %v6394_v50 = vmax.f32 %v7874_v9, 0.0  ;;  %v7906_v51 = vadd.f32 %v6307_v27, %v10673_v40  ;;  %v6309_v3 = vpop.f32.mrb[99].mxu1 }
 0x463   : > { %v6557_v42 = vmul.f32 %v10684_v49, %v6387_v5  ;;  %v6389_v31 = vmax.f32 %v7905_v29, 0.0  ;;  %v6395_v21 = vmax.f32 %v7875_v8, 0.0  ;;  %v7907_v16 = vadd.f32 %v6309_v3, %v10676_v6 }
 0x464   : > { %v6683_v54 = vadd.f32 %v10357_v14, %v6556_v56  ;;  %v6564_v25 = vmul.f32 %v10680_v60, %v6394_v50  ;;  %v6396_v39 = vmax.f32 %v7906_v51, 0.0  ;;  %v6558_v24 = vmul.f32 %v10688_v53, %v6388_v4 }
 0x465   : > { %v6565_v61 = vmul.f32 %v10684_v49, %v6395_v21  ;;  %v5861_v17 = vpop.f32.mrb[100].mxu0  ;;  %v6397_v41 = vmax.f32 %v7907_v16, 0.0  ;;  %v6559_v0 = vmul.f32 %v10694_v38, %v6389_v31 }
 0x466   : > { %v6692_v22 = vadd.f32 %v10372_v20, %v6564_v25  ;;  %v7876_v12 = vadd.f32 %v5861_v17, %v10667_v55  ;;  %v5863_v52 = vpop.f32.mrb[101].mxu0  ;;  %v6684_v34 = vadd.f32 %v6683_v54, %v6557_v42  ;;  %v6566_v59 = vmul.f32 %v10688_v53, %v6396_v39 }
 0x467   : > { %v6313_v11 = vpop.f32.mrb[100].mxu1  ;;  %v7877_v14 = vadd.f32 %v5863_v52, %v10670_v45  ;;  %v5865_v37 = vpop.f32.mrb[102].mxu0  ;;  %v6567_v51 = vmul.f32 %v10694_v38, %v6397_v41 }
 0x468   : > { %v6693_v15 = vadd.f32 %v6692_v22, %v6565_v61  ;;  %v6402_v36 = vmax.f32 %v7876_v12, 0.0  ;;  %v7908_v58 = vadd.f32 %v6313_v11, %v10673_v40  ;;  %v6315_v62 = vpop.f32.mrb[101].mxu1  ;;  %v7878_v20 = vadd.f32 %v5865_v37, %v10667_v55  ;;  %v5867_v10 = vpop.f32.mrb[103].mxu0 }
 0x469   : > { %v6403_v26 = vmax.f32 %v7877_v14, 0.0  ;;  %v7909_v48 = vadd.f32 %v6315_v62, %v10676_v6  ;;  %v6317_v23 = vpop.f32.mrb[102].mxu1  ;;  %v7879_v30 = vadd.f32 %v5867_v10, %v10670_v45  ;;  %v6685_v28 = vadd.f32 %v6684_v34, %v6558_v24 }
 0x46a   : > { %v6572_v9 = vmul.f32 %v10680_v60, %v6402_v36  ;;  %v6404_v7 = vmax.f32 %v7908_v58, 0.0  ;;  %v6410_v5 = vmax.f32 %v7878_v20, 0.0  ;;  %v7910_v29 = vadd.f32 %v6317_v23, %v10673_v40  ;;  %v6319_v27 = vpop.f32.mrb[103].mxu1 }
 0x46b   : > { %v6573_v8 = vmul.f32 %v10684_v49, %v6403_v26  ;;  %v6405_v56 = vmax.f32 %v7909_v48, 0.0  ;;  %v6411_v4 = vmax.f32 %v7879_v30, 0.0  ;;  %v7911_v50 = vadd.f32 %v6319_v27, %v10676_v6 }
 0x46c   : > { %v6701_v3 = vadd.f32 %v10420_v33, %v6572_v9  ;;  %v6580_v42 = vmul.f32 %v10680_v60, %v6410_v5  ;;  %v6574_v31 = vmul.f32 %v10688_v53, %v6404_v7  ;;  %v6686_v16 = vadd.f32 %v6685_v28, %v6559_v0 }
 0x46d   : > { %v6581_v21 = vmul.f32 %v10684_v49, %v6411_v4  ;;  %v5871_v54 = vpop.f32.mrb[104].mxu0  ;;  %v6694_v25 = vadd.f32 %v6693_v15, %v6566_v59  ;;  %v6412_v61 = vmax.f32 %v7910_v29, 0.0  ;;  %v6413_v17 = vmax.f32 %v7911_v50, 0.0 }
 0x46e   : > { %v6710_v39 = vadd.f32 %v10447_v43, %v6580_v42  ;;  %v7880_v24 = vadd.f32 %v5871_v54, %v10667_v55  ;;  %v5873_v22 = vpop.f32.mrb[105].mxu0  ;;  %6687 = vadd.xlane.f32.xlu0 %v6686_v16  ;;  %v6575_v41 = vmul.f32 %v10694_v38, %v6405_v56  ;;  %v6702_v11 = vadd.f32 %v6701_v3, %v6573_v8 }
 0x46f   : > { %v6323_v12 = vpop.f32.mrb[104].mxu1  ;;  %v7881_v33 = vadd.f32 %v5873_v22, %v10670_v45  ;;  %v5875_v52 = vpop.f32.mrb[106].mxu0  ;;  %v6695_v34 = vadd.f32 %v6694_v25, %v6567_v51  ;;  %v6582_v27 = vmul.f32 %v10688_v53, %v6412_v61  ;;  %v6583_v4 = vmul.f32 %v10694_v38, %v6413_v17 }
 0x470   : > { %v6711_v14 = vadd.f32 %v6710_v39, %v6581_v21  ;;  %v6418_v37 = vmax.f32 %v7880_v24, 0.0  ;;  %v7912_v59 = vadd.f32 %v6323_v12, %v10673_v40  ;;  %v6325_v0 = vpop.f32.mrb[105].mxu1  ;;  %v7882_v43 = vadd.f32 %v5875_v52, %v10667_v55  ;;  %v5877_v15 = vpop.f32.mrb[107].mxu0 }
 0x471   : > { %v6419_v36 = vmax.f32 %v7881_v33, 0.0  ;;  %v7913_v58 = vadd.f32 %v6325_v0, %v10676_v6  ;;  %v6327_v62 = vpop.f32.mrb[106].mxu1  ;;  %v7883_v20 = vadd.f32 %v5877_v15, %v10670_v45  ;;  %v6703_v10 = vadd.f32 %v6702_v11, %v6574_v31 }
 0x472   : > { %v6588_v26 = vmul.f32 %v10680_v60, %v6418_v37  ;;  %v6420_v48 = vmax.f32 %v7912_v59, 0.0  ;;  %v6426_v23 = vmax.f32 %v7882_v43, 0.0  ;;  %v7914_v30 = vadd.f32 %v6327_v62, %v10673_v40  ;;  %v6329_v28 = vpop.f32.mrb[107].mxu1  ;;  %6696 = vadd.xlane.f32.xlu0 %v6695_v34 }
 0x473   : > { %v6589_v9 = vmul.f32 %v10684_v49, %v6419_v36  ;;  %v6421_v7 = vmax.f32 %v7913_v58, 0.0  ;;  %v6427_v5 = vmax.f32 %v7883_v20, 0.0  ;;  %v7915_v29 = vadd.f32 %v6329_v28, %v10676_v6 }
 0x474   : > { %v6719_v8 = vadd.f32 %v10476_v2, %v6588_v26  ;;  %v6596_v56 = vmul.f32 %v10680_v60, %v6426_v23  ;;  %v6590_v50 = vmul.f32 %v10688_v53, %v6420_v48  ;;  %v6704_v3 = vadd.f32 %v6703_v10, %v6575_v41 }
 0x475   : > { %v6597_v51 = vmul.f32 %v10684_v49, %v6427_v5  ;;  %v5881_v42 = vpop.f32.mrb[108].mxu0  ;;  %v6428_v16 = vmax.f32 %v7914_v30, 0.0  ;;  %v6591_v39 = vmul.f32 %v10694_v38, %v6421_v7  ;;  %v6429_v2 = vmax.f32 %v7915_v29, 0.0 }
 0x476   : > { %v6720_v31 = vadd.f32 %v6719_v8, %v6589_v9  ;;  %v6728_v21 = vadd.f32 %v10503_v47, %v6596_v56  ;;  %v7884_v54 = vadd.f32 %v5881_v42, %v10667_v55  ;;  %v5883_v25 = vpop.f32.mrb[109].mxu0  ;;  %6705 = vadd.xlane.f32.xlu1 %v6704_v3  ;;  %v6712_v22 = vadd.f32 %v6711_v14, %v6582_v27 }
 0x477   : > { %v6333_v61 = vpop.f32.mrb[108].mxu1  ;;  %v7885_v17 = vadd.f32 %v5883_v25, %v10670_v45  ;;  %v5885_v24 = vpop.f32.mrb[110].mxu0  ;;  %v6598_v23 = vmul.f32 %v10688_v53, %v6428_v16  ;;  %v6599_v30 = vmul.f32 %v10694_v38, %v6429_v2 }
 0x478   : > { %v6729_v12 = vadd.f32 %v6728_v21, %v6597_v51  ;;  %v6434_v33 = vmax.f32 %v7884_v54, 0.0  ;;  %v7916_v52 = vadd.f32 %v6333_v61, %v10673_v40  ;;  %v6335_v34 = vpop.f32.mrb[109].mxu1  ;;  %v7886_v47 = vadd.f32 %v5885_v24, %v10667_v55  ;;  %v5887_v41 = vpop.f32.mrb[111].mxu0 }
 0x479   : > { %v6435_v11 = vmax.f32 %v7885_v17, 0.0  ;;  %v7917_v37 = vadd.f32 %v6335_v34, %v10676_v6  ;;  %v6337_v59 = vpop.f32.mrb[110].mxu1  ;;  %v7887_v0 = vadd.f32 %v5887_v41, %v10670_v45  ;;  %v6713_v43 = vadd.f32 %v6712_v22, %v6583_v4 }
 0x47a   : > { %v6604_v15 = vmul.f32 %v10680_v60, %v6434_v33  ;;  %v6436_v36 = vmax.f32 %v7916_v52, 0.0  ;;  %v6442_v58 = vmax.f32 %v7886_v47, 0.0  ;;  %v7918_v14 = vadd.f32 %v6337_v59, %v10673_v40  ;;  %v6339_v62 = vpop.f32.mrb[111].mxu1 }
 0x47b   : > { %v6605_v20 = vmul.f32 %v10684_v49, %v6435_v11  ;;  %v6437_v10 = vmax.f32 %v7917_v37, 0.0  ;;  %v6443_v26 = vmax.f32 %v7887_v0, 0.0  ;;  %v7919_v48 = vadd.f32 %v6339_v62, %v10676_v6  ;;  %6714 = vadd.xlane.f32.xlu1 %v6713_v43 }
 0x47c   : > { %v6737_v28 = vadd.f32 %v10532_v1, %v6604_v15  ;;  %v6612_v9 = vmul.f32 %v10680_v60, %v6442_v58  ;;  %v6606_v7 = vmul.f32 %v10688_v53, %v6436_v36  ;;  %v6444_v5 = vmax.f32 %v7918_v14, 0.0 }
 0x47d   : > { %v6613_v29 = vmul.f32 %v10684_v49, %v6443_v26  ;;  %v6721_v27 = vadd.f32 %v6720_v31, %v6590_v50  ;;  %v5891_v8 = vpop.f32.mrb[112].mxu0  ;;  %v6607_v4 = vmul.f32 %v10694_v38, %v6437_v10  ;;  %v6445_v21 = vmax.f32 %v7919_v48, 0.0 }
 0x47e   : > { %v6738_v56 = vadd.f32 %v6737_v28, %v6605_v20  ;;  %v6746_v51 = vadd.f32 %v10555_v18, %v6612_v9  ;;  %v7888_v3 = vadd.f32 %v5891_v8, %v10667_v55  ;;  %v5893_v42 = vpop.f32.mrb[113].mxu0  ;;  %v6730_v25 = vadd.f32 %v6729_v12, %v6598_v23 }
 0x47f   : > { %v6722_v16 = vadd.f32 %v6721_v27, %v6591_v39  ;;  %v6343_v1 = vpop.f32.mrb[112].mxu1  ;;  %v7889_v54 = vadd.f32 %v5893_v42, %v10670_v45  ;;  %v5895_v2 = vpop.f32.mrb[114].mxu0  ;;  %v6614_v36 = vmul.f32 %v10688_v53, %v6444_v5  ;;  %v6615_v58 = vmul.f32 %v10694_v38, %v6445_v21 }
 0x480   : > { %v6747_v61 = vadd.f32 %v6746_v51, %v6613_v29  ;;  %v6450_v17 = vmax.f32 %v7888_v3, 0.0  ;;  %v7920_v50 = vadd.f32 %v6343_v1, %v10673_v40  ;;  %v6345_v31 = vpop.f32.mrb[113].mxu1  ;;  %v7890_v24 = vadd.f32 %v5895_v2, %v10667_v55  ;;  %v5897_v22 = vpop.f32.mrb[115].mxu0 }
 0x481   : > { %6723 = vadd.xlane.f32.xlu0 %v6722_v16  ;;  %v6451_v18 = vmax.f32 %v7889_v54, 0.0  ;;  %v7921_v33 = vadd.f32 %v6345_v31, %v10676_v6  ;;  %v6731_v52 = vadd.f32 %v6730_v25, %v6599_v30  ;;  %v6347_v34 = vpop.f32.mrb[114].mxu1  ;;  %v7891_v39 = vadd.f32 %v5897_v22, %v10670_v45 }
 0x482   : > { %v6620_v47 = vmul.f32 %v10680_v60, %v6450_v17  ;;  %v6452_v12 = vmax.f32 %v7920_v50, 0.0  ;;  %v6458_v41 = vmax.f32 %v7890_v24, 0.0  ;;  %v7922_v11 = vadd.f32 %v6347_v34, %v10673_v40  ;;  %v6349_v37 = vpop.f32.mrb[115].mxu1 }
 0x483   : > { %v6621_v59 = vmul.f32 %v10684_v49, %v6451_v18  ;;  %v6453_v0 = vmax.f32 %v7921_v33, 0.0  ;;  %6732 = vadd.xlane.f32.xlu1 %v6731_v52  ;;  %v6459_v43 = vmax.f32 %v7891_v39, 0.0  ;;  %v7923_v15 = vadd.f32 %v6349_v37, %v10676_v6 }
 0x484   : > { %v6755_v14 = vadd.f32 %v10576_v46, %v6620_v47  ;;  %v6628_v62 = vmul.f32 %v10680_v60, %v6458_v41  ;;  %v6622_v20 = vmul.f32 %v10688_v53, %v6452_v12  ;;  %v6460_v10 = vmax.f32 %v7922_v11, 0.0 }
 0x485   : > { %v6629_v26 = vmul.f32 %v10684_v49, %v6459_v43  ;;  %v6739_v48 = vadd.f32 %v6738_v56, %v6606_v7  ;;  %v5901_v23 = vpop.f32.mrb[116].mxu0  ;;  %v6623_v28 = vmul.f32 %v10694_v38, %v6453_v0  ;;  %v6461_v27 = vmax.f32 %v7923_v15, 0.0 }
 0x486   : > { %v6756_v30 = vadd.f32 %v6755_v14, %v6621_v59  ;;  %v6764_v9 = vadd.f32 %v10588_v35, %v6628_v62  ;;  %v7892_v5 = vadd.f32 %v5901_v23, %v10667_v55  ;;  %v5903_v29 = vpop.f32.mrb[117].mxu0  ;;  %v6748_v3 = vadd.f32 %v6747_v61, %v6614_v36 }
 0x487   : > { %v6740_v8 = vadd.f32 %v6739_v48, %v6607_v4  ;;  %v6353_v46 = vpop.f32.mrb[116].mxu1  ;;  %v7893_v51 = vadd.f32 %v5903_v29, %v10670_v45  ;;  %v5905_v42 = vpop.f32.mrb[118].mxu0  ;;  %v6630_v39 = vmul.f32 %v10688_v53, %v6460_v10  ;;  %v6631_v47 = vmul.f32 %v10694_v38, %v6461_v27 }
 0x488   : > { %v6765_v21 = vadd.f32 %v6764_v9, %v6629_v26  ;;  %v6466_v16 = vmax.f32 %v7892_v5, 0.0  ;;  %v7924_v7 = vadd.f32 %v6353_v46, %v10673_v40  ;;  %v6355_v56 = vpop.f32.mrb[117].mxu1  ;;  %v7894_v1 = vadd.f32 %v5905_v42, %v10667_v55  ;;  %v5907_v54 = vpop.f32.mrb[119].mxu0 }
 0x489   : > { %6741 = vadd.xlane.f32.xlu0 %v6740_v8  ;;  %v6467_v35 = vmax.f32 %v7893_v51, 0.0  ;;  %v7925_v25 = vadd.f32 %v6355_v56, %v10676_v6  ;;  %v6749_v2 = vadd.f32 %v6748_v3, %v6615_v58  ;;  %v6357_v17 = vpop.f32.mrb[118].mxu1  ;;  %v7895_v4 = vadd.f32 %v5907_v54, %v10670_v45 }
 0x48a   : > { %v6636_v50 = vmul.f32 %v10680_v60, %v6466_v16  ;;  %v6468_v61 = vmax.f32 %v7924_v7, 0.0  ;;  %v6474_v31 = vmax.f32 %v7894_v1, 0.0  ;;  %v7926_v24 = vadd.f32 %v6357_v17, %v10673_v40  ;;  %v6359_v22 = vpop.f32.mrb[119].mxu1 }
 0x48b   : > { %v6637_v18 = vmul.f32 %v10684_v49, %v6467_v35  ;;  %v6469_v33 = vmax.f32 %v7925_v25, 0.0  ;;  %6750 = vadd.xlane.f32.xlu1 %v6749_v2  ;;  %v6475_v52 = vmax.f32 %v7895_v4, 0.0  ;;  %v7927_v34 = vadd.f32 %v6359_v22, %v10676_v6 }
 0x48c   : > { %v6773_v12 = vadd.f32 %v10600_v44, %v6636_v50  ;;  %v6644_v41 = vmul.f32 %v10680_v60, %v6474_v31  ;;  %v6638_v11 = vmul.f32 %v10688_v53, %v6468_v61  ;;  %v6476_v37 = vmax.f32 %v7926_v24, 0.0 }
 0x48d   : > { %v6645_v59 = vmul.f32 %v10684_v49, %v6475_v52  ;;  %v6757_v0 = vadd.f32 %v6756_v30, %v6622_v20  ;;  %v5911_v43 = vpop.f32.mrb[120].mxu0  ;;  %v6639_v36 = vmul.f32 %v10694_v38, %v6469_v33  ;;  %v6477_v10 = vmax.f32 %v7927_v34, 0.0 }
 0x48e   : > { %v6774_v15 = vadd.f32 %v6773_v12, %v6637_v18  ;;  %v6782_v58 = vadd.f32 %v10612_v13, %v6644_v41  ;;  %v7896_v14 = vadd.f32 %v5911_v43, %v10667_v55  ;;  %v5913_v62 = vpop.f32.mrb[121].mxu0  ;;  %v6766_v23 = vadd.f32 %v6765_v21, %v6630_v39 }
 0x48f   : > { %v6758_v26 = vadd.f32 %v6757_v0, %v6623_v28  ;;  %v6363_v44 = vpop.f32.mrb[120].mxu1  ;;  %v7897_v48 = vadd.f32 %v5913_v62, %v10670_v45  ;;  %v5915_v9 = vpop.f32.mrb[122].mxu0  ;;  %v6646_v2 = vmul.f32 %v10688_v53, %v6476_v37  ;;  %v6647_v17 = vmul.f32 %v10694_v38, %v6477_v10 }
 0x490   : > { %v6783_v5 = vadd.f32 %v6782_v58, %v6645_v59  ;;  %v6482_v29 = vmax.f32 %v7896_v14, 0.0  ;;  %v7928_v20 = vadd.f32 %v6363_v44, %v10673_v40  ;;  %v6365_v30 = vpop.f32.mrb[121].mxu1  ;;  %v7898_v27 = vadd.f32 %v5915_v9, %v10667_v55  ;;  %v5917_v8 = vpop.f32.mrb[123].mxu0 }
 0x491   : > { %6759 = vadd.xlane.f32.xlu0 %v6758_v26  ;;  %v6483_v13 = vmax.f32 %v7897_v48, 0.0  ;;  %v7929_v46 = vadd.f32 %v6365_v30, %v10676_v6  ;;  %v6767_v51 = vadd.f32 %v6766_v23, %v6631_v47  ;;  %v6367_v3 = vpop.f32.mrb[122].mxu1  ;;  %v7899_v28 = vadd.f32 %v5917_v8, %v10670_v45 }
 0x492   : > { %v6652_v42 = vmul.f32 %v10680_v60, %v6482_v29  ;;  %v6484_v21 = vmax.f32 %v7928_v20, 0.0  ;;  %v6490_v16 = vmax.f32 %v7898_v27, 0.0  ;;  %v7930_v7 = vadd.f32 %v6367_v3, %v10673_v40  ;;  %v6369_v56 = vpop.f32.mrb[123].mxu1 }
 0x493   : > { %v6653_v1 = vmul.f32 %v10684_v49, %v6483_v13  ;;  %v6485_v54 = vmax.f32 %v7929_v46, 0.0  ;;  %6768 = vadd.xlane.f32.xlu1 %v6767_v51  ;;  %v6491_v35 = vmax.f32 %v7899_v28, 0.0  ;;  %v7931_v25 = vadd.f32 %v6369_v56, %v10676_v6 }
 0x494   : > { %v6791_v4 = vadd.f32 %v10624_v19, %v6652_v42  ;;  %v6660_v50 = vmul.f32 %v10680_v60, %v6490_v16  ;;  %v6654_v61 = vmul.f32 %v10688_v53, %v6484_v21  ;;  %v6492_v31 = vmax.f32 %v7930_v7, 0.0 }
 0x495   : > { %v6661_v24 = vmul.f32 %v10684_v49, %v6491_v35  ;;  %v6775_v22 = vadd.f32 %v6774_v15, %v6638_v11  ;;  %v5921_v18 = vpop.f32.mrb[124].mxu0  ;;  %v6655_v52 = vmul.f32 %v10694_v38, %v6485_v54  ;;  %v6493_v12 = vmax.f32 %v7931_v25, 0.0 }
 0x496   : > { %v6792_v33 = vadd.f32 %v6791_v4, %v6653_v1  ;;  %v6800_v34 = vadd.f32 %v10637_v57, %v6660_v50  ;;  %v7900_v39 = vadd.f32 %v5921_v18, %v10667_v55  ;;  %v5923_v47 = vpop.f32.mrb[125].mxu0  ;;  %v6784_v59 = vadd.f32 %v6783_v5, %v6646_v2 }
 0x497   : > { %v6776_v41 = vadd.f32 %v6775_v22, %v6639_v36  ;;  %v6373_v19 = vpop.f32.mrb[124].mxu1  ;;  %v7901_v37 = vadd.f32 %v5923_v47, %v10670_v45  ;;  %v5925_v0 = vpop.f32.mrb[126].mxu0  ;;  %v6662_v8 = vmul.f32 %v10688_v53, %v6492_v31  ;;  %v6663_v51 = vmul.f32 %v10694_v38, %v6493_v12 }
 0x498   : > { %v6801_v43 = vadd.f32 %v6800_v34, %v6661_v24  ;;  %v6498_v58 = vmax.f32 %v7900_v39, 0.0  ;;  %v7932_v11 = vadd.f32 %v6373_v19, %v10673_v40  ;;  %v6375_v15 = vpop.f32.mrb[125].mxu1  ;;  %v7902_v14 = vadd.f32 %v5925_v0, %v10667_v55  ;;  %v5927_v62 = vpop.f32.mrb[127].mxu0 }
 0x499   : > { %6777 = vadd.xlane.f32.xlu0 %v6776_v41  ;;  %v6499_v57 = vmax.f32 %v7901_v37, 0.0  ;;  %v7933_v10 = vadd.f32 %v6375_v15, %v10676_v6  ;;  %v6785_v26 = vadd.f32 %v6784_v59, %v6647_v17  ;;  %v6377_v44 = vpop.f32.mrb[126].mxu1  ;;  %v7903_v36 = vadd.f32 %v5927_v62, %v10670_v45 }
 0x49a   : > { %v6668_v48 = vmul.f32 %v10680_v60, %v6498_v58  ;;  %v6500_v23 = vmax.f32 %v7932_v11, 0.0  ;;  %v6506_v9 = vmax.f32 %v7902_v14, 0.0  ;;  %v7934_v5 = vadd.f32 %v6377_v44, %v10673_v40  ;;  %v6379_v29 = vpop.f32.mrb[127].mxu1 }
 0x49b   : > { %v6669_v20 = vmul.f32 %v10684_v49, %v6499_v57  ;;  %v6501_v30 = vmax.f32 %v7933_v10, 0.0  ;;  %6786 = vadd.xlane.f32.xlu1 %v6785_v26  ;;  %v6507_v55 = vmax.f32 %v7903_v36, 0.0  ;;  %v7935_v27 = vadd.f32 %v6379_v29, %v10676_v6 }
 0x49c   : > { %v6809_v13 = vadd.f32 %v10642_v32, %v6668_v48  ;;  %v6676_v45 = vmul.f32 %v10680_v60, %v6506_v9  ;;  %v6508_v46 = vmax.f32 %v7934_v5, 0.0  ;;  %v6670_v3 = vmul.f32 %v10688_v53, %v6500_v23 }
 0x49d   : > { %v6677_v40 = vmul.f32 %v10684_v49, %v6507_v55  ;;  %v6793_v28 = vadd.f32 %v6792_v33, %v6654_v61  ;;  %v6509_v16 = vmax.f32 %v7935_v27, 0.0  ;;  %v6802_v7 = vadd.f32 %v6801_v43, %v6662_v8 }
 0x49e   : > { %v6810_v42 = vadd.f32 %v6809_v13, %v6669_v20  ;;  %v6818_v21 = vadd.f32 %v10649_v63, %v6676_v45  ;;  %v6671_v6 = vmul.f32 %v10694_v38, %v6501_v30  ;;  %v6678_v32 = vmul.f32 %v10688_v53, %v6508_v46 }
 0x49f   : > { %v6794_v56 = vadd.f32 %v6793_v28, %v6655_v52  ;;  %v6803_v60 = vadd.f32 %v6802_v7, %v6663_v51  ;;  %v6679_v35 = vmul.f32 %v10694_v38, %v6509_v16  ;;  %v10834_v4 = vstv %s6824_s9 }
 0x4a0   : > { %v6819_v1 = vadd.f32 %v6818_v21, %v6677_v40  ;;  %v6811_v54 = vadd.f32 %v6810_v42, %v6670_v3  ;;  %v11218_v21 = vlaneseq }
 0x4a1   : > { %6795 = vadd.xlane.f32.xlu0 %v6794_v56  ;;  %6804 = vadd.xlane.f32.xlu1 %v6803_v60 }
 0x4a2   : > { %v6812_v25 = vadd.f32 %v6811_v54, %v6671_v6  ;;  %v6820_v49 = vadd.f32 %v6819_v1, %v6678_v32  ;;  %v10849_v16 = vand.u32 127, %v11218_v21 }
 0x4a4   : > { %v6821_v2 = vadd.f32 %v6820_v49, %v6679_v35  ;;  %v6960_v32 = vadd.s32 4294967288, %v10849_v16  ;;  %v6967_v35 = vadd.s32 4294967280, %v10849_v16  ;;  %v7023_v21 = vadd.s32 4294967216, %v10849_v16 }
 0x4a5   : > { %6813 = vadd.xlane.f32.xlu0 %v6812_v25 }
 0x4a6   : > { %6822 = vadd.xlane.f32.xlu1 %v6821_v2  ;;  %v11219_v2 = vld [vmem:[#allocation20_spill] sm:$0xff] }
 0x4fb   : > { %v6688_v63 = vpop.xlane.xlu0 %6687 }
 0x4fc   : > { %v6826_v53 = vadd.f32 %v10834_v4, %v6688_v63  ;;  %v6958_v63 = vsub.s32 %v10849_v16, %v11219_v2 }
 0x4fe   : > { %v7788_v18 = vmul.f32 -1.442695, %v6826_v53 }
 0x4ff   : > { %v6697_v50 = vpop.xlane.xlu0 %6696 }
 0x500   : > { %v6827_v31 = vadd.f32 %v10834_v4, %v6697_v50  ;;  %8422 = vpow2.f32 %v7788_v18 }
 0x502   : > { %v7789_v33 = vmul.f32 -1.442695, %v6827_v31 }
 0x503   : > { %v6706_v17 = vpop.xlane.xlu1 %6705 }
 0x504   : > { %v6828_v24 = vadd.f32 %v10834_v4, %v6706_v17  ;;  %8424 = vpow2.f32 %v7789_v33  ;;  %v6974_v17 = vadd.s32 4294967272, %v10849_v16 }
 0x506   : > { %v7790_v39 = vmul.f32 -1.442695, %v6828_v24 }
 0x508   : > { %v6715_v61 = vpop.xlane.xlu1 %6714  ;;  %8426 = vpow2.f32 %v7790_v39  ;;  %v6988_v39 = vadd.s32 4294967256, %v10849_v16 }
 0x509   : > { %v6829_v22 = vadd.f32 %v10834_v4, %v6715_v61  ;;  %v6981_v61 = vadd.s32 4294967264, %v10849_v16 }
 0x50a   : > { %v8423_v62 = vpop.eup %8422 }
 0x50b   : > { %v7791_v47 = vmul.f32 -1.442695, %v6829_v22  ;;  %v6890_v23 = vadd.f32 1.0, %v8423_v62 }
 0x50d   : > { %8428 = vpow2.f32 %v7791_v47 }
 0x50e   : > { %v6724_v38 = vpop.xlane.xlu0 %6723  ;;  %v8425_v10 = vpop.eup %8424 }
 0x50f   : > { %v6830_v52 = vadd.f32 %v10834_v4, %v6724_v38  ;;  %v6891_v5 = vadd.f32 1.0, %v8425_v10  ;;  %v6963_v38 = vsub.s32 %v6960_v32, %v11219_v2 }
 0x510   : > { %v6733_v34 = vpop.xlane.xlu1 %6732 }
 0x511   : > { %v6831_v12 = vadd.f32 %v10834_v4, %v6733_v34  ;;  %v7792_v19 = vmul.f32 -1.442695, %v6830_v52  ;;  %v6970_v34 = vsub.s32 %v6967_v35, %v11219_v2 }
 0x512   : > { %v8427_v36 = vpop.eup %8426 }
 0x513   : > { %v7793_v43 = vmul.f32 -1.442695, %v6831_v12  ;;  %8430 = vpow2.f32 %v7792_v19  ;;  %v6892_v20 = vadd.f32 1.0, %v8427_v36  ;;  %v6977_v19 = vsub.s32 %v6974_v17, %v11219_v2 }
 0x514   : > { %v7026_v17 = vsub.s32 %v7023_v21, %v11219_v2 }
 0x515   : > { %8432 = vpow2.f32 %v7793_v43  ;;  %v6995_v43 = vadd.s32 4294967248, %v10849_v16 }
 0x516   : > { %v6742_v41 = vpop.xlane.xlu0 %6741 }
 0x517   : > { %v6832_v37 = vadd.f32 %v10834_v4, %v6742_v41  ;;  %v8429_v48 = vpop.eup %8428 }
 0x518   : > { %v6751_v59 = vpop.xlane.xlu1 %6750  ;;  %v6893_v30 = vadd.f32 1.0, %v8429_v48 }
 0x519   : > { %v6833_v0 = vadd.f32 %v10834_v4, %v6751_v59  ;;  %v7794_v58 = vmul.f32 -1.442695, %v6832_v37 }
 0x51b   : > { %v7795_v11 = vmul.f32 -1.442695, %v6833_v0  ;;  %8434 = vpow2.f32 %v7794_v58  ;;  %v6984_v0 = vsub.s32 %v6981_v61, %v11219_v2 }
 0x51d   : > { %8436 = vpow2.f32 %v7795_v11  ;;  %v8431_v29 = vpop.eup %8430 }
 0x51e   : > { %v6760_v15 = vpop.xlane.xlu0 %6759  ;;  %v6894_v13 = vadd.f32 1.0, %v8431_v29  ;;  %v7009_v29 = vadd.s32 4294967232, %v10849_v16 }
 0x51f   : > { %v6834_v14 = vadd.f32 %v10834_v4, %v6760_v15  ;;  %v8433_v8 = vpop.eup %8432 }
 0x520   : > { %v6769_v57 = vpop.xlane.xlu1 %6768  ;;  %v6895_v28 = vadd.f32 1.0, %v8433_v8 }
 0x521   : > { %v7796_v26 = vmul.f32 -1.442695, %v6834_v14  ;;  %v6835_v44 = vadd.f32 %v10834_v4, %v6769_v57 }
 0x523   : > { %8438 = vpow2.f32 %v7796_v26  ;;  %v7797_v9 = vmul.f32 -1.442695, %v6835_v44  ;;  %v6991_v26 = vsub.s32 %v6988_v39, %v11219_v2  ;;  %v7002_v44 = vadd.s32 4294967240, %v10849_v16 }
 0x525   : > { %8440 = vpow2.f32 %v7797_v9  ;;  %v8435_v46 = vpop.eup %8434 }
 0x526   : > { %v6778_v55 = vpop.xlane.xlu0 %6777  ;;  %8442 = vrcp.f32 %v6890_v23  ;;  %v6896_v7 = vadd.f32 1.0, %v8435_v46  ;;  %v7005_v46 = vsub.s32 %v7002_v44, %v11219_v2 }
 0x527   : > { %v6836_v27 = vadd.f32 %v10834_v4, %v6778_v55  ;;  %8444 = vrcp.f32 %v6891_v5  ;;  %v8437_v40 = vpop.eup %8436  ;;  %v6998_v5 = vsub.s32 %v6995_v43, %v11219_v2 }
 0x528   : > { %v6787_v45 = vpop.xlane.xlu1 %6786  ;;  %8446 = vrcp.f32 %v6892_v20  ;;  %v6897_v56 = vadd.f32 1.0, %v8437_v40 }
 0x529   : > { %v7798_v51 = vmul.f32 -1.442695, %v6836_v27  ;;  %v6837_v3 = vadd.f32 %v10834_v4, %v6787_v45  ;;  %8448 = vrcp.f32 %v6893_v30 }
 0x52b   : > { %8450 = vpow2.f32 %v7798_v51  ;;  %v7799_v42 = vmul.f32 -1.442695, %v6837_v3  ;;  %v7016_v51 = vadd.s32 4294967224, %v10849_v16 }
 0x52c   : > { %8452 = vrcp.f32 %v6894_v13 }
 0x52d   : > { %v8439_v6 = vpop.eup %8438  ;;  %8454 = vpow2.f32 %v7799_v42  ;;  %v7012_v42 = vsub.s32 %v7009_v29, %v11219_v2  ;;  %v7019_v35 = vsub.s32 %v7016_v51, %v11219_v2 }
 0x52e   : > { %v6898_v1 = vadd.f32 1.0, %v8439_v6  ;;  %v6796_v60 = vpop.xlane.xlu0 %6795  ;;  %8456 = vrcp.f32 %v6895_v28  ;;  %v6805_v49 = vpop.xlane.xlu1 %6804 }
 0x52f   : > { %v8441_v54 = vpop.eup %8440  ;;  %v6838_v25 = vadd.f32 %v10834_v4, %v6796_v60  ;;  %8458 = vrcp.f32 %v6896_v7  ;;  %v6839_v50 = vadd.f32 %v10834_v4, %v6805_v49 }
 0x530   : > { %v8443_v53 = vpop.eup %8442  ;;  %8460 = vrcp.f32 %v6897_v56  ;;  %v6899_v22 = vadd.f32 1.0, %v8441_v54  ;;  %v7030_v56 = vadd.s32 4294967208, %v10849_v16 }
 0x531   : > { %v7800_v31 = vmul.f32 -1.442695, %v6838_v25  ;;  %v8445_v24 = vpop.eup %8444  ;;  %8462 = vrcp.f32 %v6898_v1  ;;  %v7801_v18 = vmul.f32 -1.442695, %v6839_v50 }
 0x532   : > { %v6814_v33 = vpop.xlane.xlu0 %6813  ;;  %v8447_v52 = vpop.eup %8446  ;;  %v6964_v15 = vrot.slane %v8445_v24, %v6963_v38  ;;  %v7037_v24 = vadd.s32 4294967200, %v10849_v16  ;;  %v7044_v38 = vadd.s32 4294967192, %v10849_v16 }
 0x533   : > { %8464 = vpow2.f32 %v7800_v31  ;;  %v6840_v47 = vadd.f32 %v10834_v4, %v6814_v33  ;;  %v6823_v12 = vpop.xlane.xlu1 %6822  ;;  %v8449_v41 = vpop.eup %8448  ;;  %v6971_v10 = vrot.slane %v8447_v52, %v6970_v34  ;;  %v7033_v31 = vsub.s32 %v7030_v56, %v11219_v2 }
 0x534   : > { %8466 = vpow2.f32 %v7801_v18  ;;  %v6841_v37 = vadd.f32 %v10834_v4, %v6823_v12  ;;  %v6959_v4 = vrot.slane %v8443_v53, %v6958_v63  ;;  %v6978_v36 = vrot.slane %v8449_v41, %v6977_v19 }
 0x535   : > { %v8451_v59 = vpop.eup %8450  ;;  %v7802_v58 = vmul.f32 -1.442695, %v6840_v47  ;;  %8468 = vrcp.f32 %v6899_v22  ;;  %v7040_v47 = vsub.s32 %v7037_v24, %v11219_v2  ;;  %v7051_v12 = vadd.s32 4294967184, %v10849_v16 }
 0x536   : > { %v8453_v11 = vpop.eup %8452  ;;  %v6900_v14 = vadd.f32 1.0, %v8451_v59  ;;  %v7803_v62 = vmul.f32 -1.442695, %v6841_v37  ;;  %v6966_v30 = vsel %vm6965_vm0, %v6964_v15, %v6959_v4  ;;  %v7047_v37 = vsub.s32 %v7044_v38, %v11219_v2 }
 0x537   : > { %v8455_v57 = vpop.eup %8454  ;;  %8470 = vpow2.f32 %v7802_v58  ;;  %v6985_v9 = vrot.slane %v8453_v11, %v6984_v0  ;;  %v6973_v27 = vsel %vm6972_vm1, %v6971_v10, %v6966_v30  ;;  %v7058_v0 = vadd.s32 4294967176, %v10849_v16 }
 0x538   : > { %8472 = vrcp.f32 %v6900_v14  ;;  %v6901_v48 = vadd.f32 1.0, %v8455_v57  ;;  %v8457_v23 = vpop.eup %8456  ;;  %v6980_v13 = vsel %vm6979_vm2, %v6978_v36, %v6973_v27  ;;  %v7054_v15 = vsub.s32 %v7051_v12, %v11219_v2 }
 0x539   : > { %8474 = vpow2.f32 %v7803_v62  ;;  %v8459_v20 = vpop.eup %8458  ;;  %v6992_v45 = vrot.slane %v8457_v23, %v6991_v26  ;;  %v6987_v40 = vsel %vm6986_vm3, %v6985_v9, %v6980_v13  ;;  %v7061_v10 = vsub.s32 %v7058_v0, %v11219_v2 }
 0x53a   : > { %v8461_v55 = vpop.eup %8460  ;;  %8476 = vrcp.f32 %v6901_v48  ;;  %v6999_v28 = vrot.slane %v8459_v20, %v6998_v5 }
 0x53b   : > { %v8463_v8 = vpop.eup %8462  ;;  %v6994_v60 = vsel %vm6993_vm4, %v6992_v45, %v6987_v40  ;;  %v7006_v54 = vrot.slane %v8461_v55, %v7005_v46 }
 0x53c   : > { %v7001_v49 = vsel %vm7000_vm5, %v6999_v28, %v6994_v60  ;;  %v7013_v63 = vrot.slane %v8463_v8, %v7012_v42 }
 0x53d   : > { %v8465_v3 = vpop.eup %8464  ;;  %v7008_v22 = vsel %vm7007_vm6, %v7006_v54, %v7001_v49 }
 0x53e   : > { %v8467_v7 = vpop.eup %8466  ;;  %v6902_v6 = vadd.f32 1.0, %v8465_v3  ;;  %v7015_v34 = vsel %vm7014_vm7, %v7013_v63, %v7008_v22 }
 0x53f   : > { %v6903_v32 = vadd.f32 1.0, %v8467_v7  ;;  %v8469_v1 = vpop.eup %8468 }
 0x540   : > { %8478 = vrcp.f32 %v6902_v6  ;;  %v7020_v18 = vrot.slane %v8469_v1, %v7019_v35 }
 0x541   : > { %v8471_v25 = vpop.eup %8470  ;;  %8480 = vrcp.f32 %v6903_v32 }
 0x542   : > { %v8473_v50 = vpop.eup %8472  ;;  %v6904_v53 = vadd.f32 1.0, %v8471_v25  ;;  %v7022_v41 = vsel %vm7021_vm8, %v7020_v18, %v7015_v34 }
 0x543   : > { %v8475_v61 = vpop.eup %8474  ;;  %v7027_v39 = vrot.slane %v8473_v50, %v7026_v17 }
 0x544   : > { %8482 = vrcp.f32 %v6904_v53  ;;  %v6905_v33 = vadd.f32 1.0, %v8475_v61  ;;  %v8477_v52 = vpop.eup %8476 }
 0x545   : > { %v7034_v19 = vrot.slane %v8477_v52, %v7033_v31  ;;  %v7029_v59 = vsel %vm7028_vm9, %v7027_v39, %v7022_v41 }
 0x546   : > { %8484 = vrcp.f32 %v6905_v33 }
 0x547   : > { %v7036_v62 = vsel %vm7035_vm10, %v7034_v19, %v7029_v59 }
 0x54a   : > { %v8479_v43 = vpop.eup %8478 }
 0x54b   : > { %v8481_v58 = vpop.eup %8480  ;;  %v7041_v11 = vrot.slane %v8479_v43, %v7040_v47 }
 0x54c   : > { %v7048_v14 = vrot.slane %v8481_v58, %v7047_v37 }
 0x54d   : > { %v7043_v57 = vsel %vm7042_vm11, %v7041_v11, %v7036_v62 }
 0x54e   : > { %v8483_v26 = vpop.eup %8482  ;;  %v7050_v4 = vsel %vm7049_vm12, %v7048_v14, %v7043_v57 }
 0x54f   : > { %v7055_v44 = vrot.slane %v8483_v26, %v7054_v15 }
 0x550   : > { %v8485_v16 = vpop.eup %8484 }
 0x551   : > { %v7057_v36 = vsel %vm7056_vm13, %v7055_v44, %v7050_v4  ;;  %v7062_v48 = vrot.slane %v8485_v16, %v7061_v10 }
 0x553   : > { %v7064_v2 = vsel %vm7063_vm14, %v7062_v48, %v7057_v36 }
 0x554   : > { %7066 = vst [vmem:[%s363_s6] sm:$0x1] %v7064_v2 }
 0x555   : > { %8671 = shalt.err (!%p8668_p8)
}
 0x556   : > { %s8672_s25 = scalar_lea.hbm %s10897_s23, 16  ;;  %s8676_s11 = scalar_lea.hbm %s10948_s7, 32 }
 0x557   : > { %p8673_p6 = scmp.ne.s32.totalorder %s10897_s23, %s8672_s25  ;;  %p8677_p0 = scmp.lt.u32.totalorder %s10897_s23, %s10948_s7 }
 0x558   : > { %p8678_p5 = scmp.lt.u32.totalorder %s8676_s11, %s8672_s25  ;;  %p8680_p7 = scmp.lt.u32.totalorder %s8672_s25, %s10897_s23 }
 0x559   : > { %p8674_p10 = pnand %p8673_p6, %p11220_p4 }
 0x55a   : > { %p8679_p9 = por %p8678_p5, %p8677_p0 }
 0x55b   : > { %p8675_p11 = pneg %p8674_p10 }
 0x55c   : > { %p8681_p12 = por %p8680_p7, %p8679_p9 }
 0x55e   : > { %p8682_p13 = pnand %p8681_p12, %p8675_p11 }
 0x560   : > { %8685 = shalt.err (!%p8682_p13)
}
 0x561   : > { %8342 = dma.vmem_to_hbm [thread:$0]  (%p11220_p4), %s10899_s13, 16, %s10897_s23, %s7068_s8  }
 0x562 PF: > { %s7092_s6 = sand.u32 1, %s8724_s26   ;;  %p11221_p1 = scmp.ne.s32.totalorder %s11065_s24, 0 }
 0x563   : > { %p11222_p3 = scmp.ge.s32.totalorder %s8736_s29, 2  ;;  %s7093_s21 = scalar_lea.sflag [#allocation5], %s7092_s6 }
 0x565   : > { %p8365_p2 = pnand %p11222_p3, %p11221_p1 }
 0x567   : > { %8719 = dma.done.wait (!%p8365_p2), %s7093_s21, 16  }
 0x568   : > { %8721 = vsyncadd (!%p8365_p2), %s7093_s21, 4294967280  ;;  %p24_p8 = scmp.ge.s32.totalorder %s8951_s12, 4   ;;  %s11223_s26 = smov %s8728_s27 }
 0x569   : > { %s11224_s27 = smov %s8732_s28  ;;  %s11225_s28 = smov %s8963_s14 }
 0x56a   : > { %s11226_s29 = smov %s8951_s12  ;;  %26 = sbr.rel (!%p24_p8) target bundleno = 10 (0xa), region = 113 }
 0x571   :  { %7097 = vsyncpa [#allocation4], 1 }
 0x572   :  { %7099 = vsyncpa [#allocation4 + $0x1], 1 }
 0x573   :  { %7100 = vsyncpa [#allocation7], 1 }
 0x574   :  { %7101 = vsyncpa [#allocation10], 1 }
 0x575   :  { %7102 = vsyncpa [#allocation13], 1 }
 0x576   :  { %7103 = vsyncpa [#allocation5], 1 }
 0x577   :  { %7105 = vsyncpa [#allocation5 + $0x1], 1 }

</bundles_post_ra>
